<compile_context>
chip_gen: v6e
topology: v6e:2x2x1
jax: 0.10.0
libtpu: 0.0.40
codegen_flags: <defaults>
</compile_context>

<pallas_src>
import functools

import jax
import jax.numpy as jnp
from jax.experimental import pallas as pl
from jax.experimental.pallas import tpu as pltpu


# ----------------------------------------------------------------------------
# Pallas kernels
# ----------------------------------------------------------------------------
def _conv_tap_kernel(*refs, kd, kh, kw, stride, Ho, Wo, apply_relu, has_shortcut):
    """Implicit-GEMM conv step for one (n, do) output plane and one depth tap.

    Grid = (N, Do, kd); the kd axis is a reduction accumulated in acc_ref.
      x_ref  : (kw*s, 1, Hph*Wo, Cin)  bf16 pre-arranged activation slabs
      w_ref  : (1, kh*kw, Cin, Cout)   bf16 weights (BN scale folded in)
      b_ref  : (1, Cout)               f32 shift (BN beta/mean/bias folded)
      sc_ref : (1, M, Cout)            optional bf16 residual shortcut
      o_ref  : (1, M, Cout)            bf16 output plane, M = Ho*Wo
      acc_ref: (M, Cout)               f32 VMEM accumulator
    """
    if has_shortcut:
        x_ref, w_ref, b_ref, sc_ref, o_ref, acc_ref = refs
    else:
        x_ref, w_ref, b_ref, o_ref, acc_ref = refs
        sc_ref = None
    di = pl.program_id(2)

    @pl.when(di == 0)
    def _init():
        acc_ref[...] = jnp.zeros_like(acc_ref)

    s = stride
    M = Ho * Wo
    acc = acc_ref[...]
    for j in range(kh):                      # in-plane taps stay in-kernel:
        q, hh = j % s, j // s                #   H-phase / row offset
        for k in range(kw):                  #   W-tap selects a slab
            slab = x_ref[k * s + q, 0, pl.ds(hh * Wo, M), :]       # (M, Cin)
            wt = w_ref[0, j * kw + k, :, :]                        # (Cin, Cout)
            acc = acc + jnp.dot(slab, wt, preferred_element_type=jnp.float32)
    acc_ref[...] = acc

    @pl.when(di == kd - 1)
    def _finalize():
        y = acc_ref[...] + b_ref[...]
        if has_shortcut:
            y = y + sc_ref[0].astype(jnp.float32)
        if apply_relu:
            y = jnp.maximum(y, 0.0)
        o_ref[0] = y.astype(o_ref.dtype)


def _maxpool_tap_kernel(x_ref, o_ref, acc_ref, *, kd, kh, kw, stride, Ho, Wo):
    """Running max over pooling taps; same slab layout / grid as the conv."""
    di = pl.program_id(2)

    @pl.when(di == 0)
    def _init():
        acc_ref[...] = jnp.full(acc_ref.shape, -jnp.inf, acc_ref.dtype)

    s = stride
    M = Ho * Wo
    cur = acc_ref[...]
    for j in range(kh):
        q, hh = j % s, j // s
        for k in range(kw):
            slab = x_ref[k * s + q, 0, pl.ds(hh * Wo, M), :].astype(jnp.float32)
            cur = jnp.maximum(cur, slab)
    acc_ref[...] = cur

    @pl.when(di == kd - 1)
    def _finalize():
        o_ref[0] = acc_ref[...].astype(o_ref.dtype)


def _avgpool_kernel(x_ref, o_ref):
    # x: (1, S, C) -> o: (1, C), accumulate in f32.
    o_ref[...] = jnp.mean(x_ref[...].astype(jnp.float32), axis=1)
    # TODO(synk): for very large D*H*W, add a grid reduction over the spatial
    # axis instead of a single block per sample.


# ----------------------------------------------------------------------------
# Activation pre-arrangement: make every (kh, kw) tap a contiguous 2-D slab
# ----------------------------------------------------------------------------
def _slab_stack(x, kh, kw, stride, padding, pad_value):
    """Rearrange padded NDHWC activations so that for every W-tap k and
    H-phase q the (Ho*Wo, C) window of any height tap is a contiguous slice.

    Returns slabs of shape (kw*s, N*Dp, Hph*Wo, C) with Hph = (kh-1)//s + Ho.
    Inside the kernel, tap (j, k) reads slab index k*s + j%s, rows
    [(j//s)*Wo, (j//s)*Wo + Ho*Wo).  Materialisation is ~kw/s^2 x the input
    (vs. k^3 x for full im2col).
    """
    N, D, H, W, C = x.shape
    s = stride
    Ho = (H + 2 * padding - kh) // s + 1
    Wo = (W + 2 * padding - kw) // s + 1
    Hph = (kh - 1) // s + Ho
    Dp = D + 2 * padding
    Hs = max(H + 2 * padding, s * Hph)
    xp = jnp.pad(
        x,
        ((0, 0), (padding, padding), (padding, Hs - H - padding),
         (padding, padding), (0, 0)),
        constant_values=pad_value)
    slabs = []
    for k in range(kw):
        for q in range(s):
            v = xp[:, :, q:q + s * Hph:s, k:k + s * (Wo - 1) + 1:s, :]
            slabs.append(v.reshape(N, Dp, Hph * Wo, C))
    st = jnp.stack(slabs, axis=0)                     # (kw*s, N, Dp, Hph*Wo, C)
    return st.reshape(kw * s, N * Dp, Hph * Wo, C), (Dp, Ho, Wo)


# ----------------------------------------------------------------------------
# Fused conv3d + BN (+ residual) (+ ReLU), max-pool, avg-pool wrappers
# ----------------------------------------------------------------------------
def conv3d_bn_act(x, weight, bias, bn, stride, padding, apply_relu, shortcut=None):
    """x: [N,D,H,W,Cin], weight: [Cout,Cin,kd,kh,kw] (PyTorch order).

    Computes relu?(BN(conv3d(x)) [+ shortcut]) in one fused Pallas pass.
    Returns bf16 NDHWC.
    """
    N, D, H, W, Cin = x.shape
    Cout, Cin_w, kd, kh, kw = weight.shape
    assert Cin_w == Cin
    s = stride
    Do = (D + 2 * padding - kd) // s + 1

    slabs, (Dp, Ho, Wo) = _slab_stack(x.astype(jnp.bfloat16), kh, kw, s, padding, 0.0)
    S0, _, R, _ = slabs.shape                 # S0 = kw*s, R = Hph*Wo
    M = Ho * Wo

    gamma, beta, mean, var = bn
    scale = gamma / jnp.sqrt(var + 1e-5)
    b = bias if bias is not None else jnp.zeros((Cout,), jnp.float32)
    shift = (beta + (b - mean) * scale).reshape(1, Cout).astype(jnp.float32)
    # Fold BN scale into the weights: y = x@(w*scale) + shift.
    w = jnp.transpose(weight, (2, 3, 4, 1, 0)) * scale
    w = w.reshape(kd, kh * kw, Cin, Cout).astype(jnp.bfloat16)

    in_specs = [
        pl.BlockSpec((S0, 1, R, Cin), lambda n, d, t: (0, n * Dp + d * s + t, 0, 0)),
        pl.BlockSpec((1, kh * kw, Cin, Cout), lambda n, d, t: (t, 0, 0, 0)),
        pl.BlockSpec((1, Cout), lambda n, d, t: (0, 0)),
    ]
    inputs = [slabs, w, shift]
    has_shortcut = shortcut is not None
    if has_shortcut:
        inputs.append(shortcut.reshape(N * Do, M, Cout).astype(jnp.bfloat16))
        in_specs.append(pl.BlockSpec((1, M, Cout), lambda n, d, t: (n * Do + d, 0, 0)))

    kernel = functools.partial(
        _conv_tap_kernel, kd=kd, kh=kh, kw=kw, stride=s, Ho=Ho, Wo=Wo,
        apply_relu=apply_relu, has_shortcut=has_shortcut)
    out = pl.pallas_call(
        kernel,
        out_shape=jax.ShapeDtypeStruct((N * Do, M, Cout), jnp.bfloat16),
        grid=(N, Do, kd),
        in_specs=in_specs,
        out_specs=pl.BlockSpec((1, M, Cout), lambda n, d, t: (n * Do + d, 0, 0)),
        scratch_shapes=[pltpu.VMEM((M, Cout), jnp.float32)],
        compiler_params=pltpu.CompilerParams(
            dimension_semantics=("parallel", "parallel", "arbitrary")),
    )(*inputs)
    return out.reshape(N, Do, Ho, Wo, Cout)


def maxpool3d(x, ksize=3, stride=2, padding=1):
    N, D, H, W, C = x.shape
    s = stride
    Do = (D + 2 * padding - ksize) // s + 1
    slabs, (Dp, Ho, Wo) = _slab_stack(
        x.astype(jnp.bfloat16), ksize, ksize, s, padding, -jnp.inf)
    S0, _, R, _ = slabs.shape
    M = Ho * Wo
    kernel = functools.partial(_maxpool_tap_kernel, kd=ksize, kh=ksize, kw=ksize,
                               stride=s, Ho=Ho, Wo=Wo)
    out = pl.pallas_call(
        kernel,
        out_shape=jax.ShapeDtypeStruct((N * Do, M, C), jnp.bfloat16),
        grid=(N, Do, ksize),
        in_specs=[pl.BlockSpec((S0, 1, R, C),
                               lambda n, d, t: (0, n * Dp + d * s + t, 0, 0))],
        out_specs=pl.BlockSpec((1, M, C), lambda n, d, t: (n * Do + d, 0, 0)),
        scratch_shapes=[pltpu.VMEM((M, C), jnp.float32)],
        compiler_params=pltpu.CompilerParams(
            dimension_semantics=("parallel", "parallel", "arbitrary")),
    )(slabs)
    return out.reshape(N, Do, Ho, Wo, C)


def global_avgpool(x):
    N, D, H, W, C = x.shape
    S = D * H * W
    xr = x.reshape(N, S, C)
    return pl.pallas_call(
        _avgpool_kernel,
        out_shape=jax.ShapeDtypeStruct((N, C), jnp.float32),
        grid=(N,),
        in_specs=[pl.BlockSpec((1, S, C), lambda n: (n, 0, 0))],
        out_specs=pl.BlockSpec((1, C), lambda n: (n, 0)),
        compiler_params=pltpu.CompilerParams(dimension_semantics=("parallel",)),
    )(xr)


def basic_block(x, bp):
    s = bp["stride"]
    out1 = conv3d_bn_act(x, bp["conv1_w"], None, bp["bn1"],
                         stride=s, padding=1, apply_relu=True)
    if "down_w" in bp:
        sc = conv3d_bn_act(x, bp["down_w"], None, bp["down_bn"],
                           stride=s, padding=0, apply_relu=False)
    else:
        sc = x
    # conv2 + BN + residual add + ReLU fused in one Pallas epilogue.
    return conv3d_bn_act(out1, bp["conv2_w"], None, bp["bn2"],
                         stride=1, padding=1, apply_relu=True, shortcut=sc)


# ----------------------------------------------------------------------------
# Parameters (deterministic, synthetic) and forward pass
# ----------------------------------------------------------------------------
def _bn_params(c):
    idx = jnp.arange(c, dtype=jnp.float32)
    gamma = 1.0 + 0.01 * idx
    beta = 0.005 * idx
    mean = 0.001 * idx
    var = 1.0 + 0.02 * idx
    return gamma, beta, mean, var


def init_params(key, in_channels=5, initial_filters=8, layers=(1, 1, 1, 1), num_classes=1):
    def nk():
        nonlocal key
        key, sub = jax.random.split(key)
        return sub

    f = initial_filters
    params = {
        "conv1_w": 0.05 * jax.random.normal(nk(), (f, in_channels, 7, 7, 7), jnp.float32),
        "conv1_b": 0.01 * jnp.arange(f, dtype=jnp.float32),
        "bn1": _bn_params(f),
    }
    in_c = f
    blocks = []
    for mult, nblocks, stride in zip((1, 2, 4, 8), layers, (1, 2, 2, 2)):
        out_c = f * mult
        strides = [stride] + [1] * (nblocks - 1)
        layer_blocks = []
        for s in strides:
            bp = {
                "stride": s,
                "conv1_w": 0.1 * jax.random.normal(nk(), (out_c, in_c, 3, 3, 3), jnp.float32),
                "bn1": _bn_params(out_c),
                "conv2_w": 0.1 * jax.random.normal(nk(), (out_c, out_c, 3, 3, 3), jnp.float32),
                "bn2": _bn_params(out_c),
            }
            if s != 1 or in_c != out_c:
                bp["down_w"] = 0.1 * jax.random.normal(nk(), (out_c, in_c, 1, 1, 1), jnp.float32)
                bp["down_bn"] = _bn_params(out_c)
            layer_blocks.append(bp)
            in_c = out_c
        blocks.append(layer_blocks)
    params["blocks"] = blocks
    params["fc_w"] = 0.05 * jax.random.normal(nk(), (num_classes, f * 8), jnp.float32)
    params["fc_b"] = jnp.zeros((num_classes,), jnp.float32)
    return params


def resnet3d_forward(x_ncdhw, params, latent=True):
    # PyTorch NCDHW -> channels-last NDHWC; zero-pad channels to a multiple of 8
    # so channel-last tiles are sublane-aligned (numerically identical).
    x = jnp.transpose(x_ncdhw, (0, 2, 3, 4, 1)).astype(jnp.float32)
    cpad = (-x.shape[-1]) % 8
    if cpad:
        x = jnp.pad(x, ((0, 0),) * 4 + ((0, cpad),))
    # GaussianNoise: identity in eval mode.
    # TODO(synk): training-mode additive Gaussian noise not applied (eval semantics).
    w1 = params["conv1_w"]
    if cpad:
        w1 = jnp.pad(w1, ((0, 0), (0, cpad), (0, 0), (0, 0), (0, 0)))
    out = conv3d_bn_act(x, w1, params["conv1_b"], params["bn1"],
                        stride=2, padding=3, apply_relu=True)
    out = maxpool3d(out, ksize=3, stride=2, padding=1)
    for layer_blocks in params["blocks"]:
        for bp in layer_blocks:
            out = basic_block(out, bp)
        # Dropout3d(p=0.0) -> identity; skipped.
    lat = global_avgpool(out)                      # [N, initial_filters*8] f32
    if latent:
        return lat
    # FC head (M=batch, N=num_classes tiny) stays in XLA per review; the
    # reference module applies ReLU to the FC output.
    return jnp.maximum(lat @ params["fc_w"].T + params["fc_b"], 0.0)


if __name__ == "__main__":
    key = jax.random.PRNGKey(0)
    pkey, xkey = jax.random.split(key)

    initial_filters = 8
    params = init_params(pkey, in_channels=5, initial_filters=initial_filters,
                         layers=(1, 1, 1, 1), num_classes=1)

    # Input like PyTorch: [N, C, D, H, W]
    x = jax.random.normal(xkey, (2, 5, 16, 16, 16), jnp.float32)

    out = resnet3d_forward(x, params, latent=True)
    out = jax.block_until_ready(out)
    assert out.shape == (2, initial_filters * 8), out.shape
    assert jnp.all(jnp.isfinite(out))
    print("KERNEL_OK")
</pallas_src>

<mosaic_0001>
module attributes {stable_mosaic.version = 11 : i64} {
  func.func @_conv_tap_kernel(%arg0: i32, %arg1: i32, %arg2: i32, %arg3: memref<14x1x88x8xbf16, #tpu.memory_space<vmem>>, %arg4: memref<1x49x8x8xbf16, #tpu.memory_space<vmem>>, %arg5: memref<1x8xf32, #tpu.memory_space<vmem>>, %arg6: memref<1x64x8xbf16, #tpu.memory_space<vmem>>, %arg7: memref<64x8xf32, #tpu.memory_space<vmem>>) attributes {dimension_semantics = [#tpu.dimension_semantics<parallel>, #tpu.dimension_semantics<parallel>, #tpu.dimension_semantics<arbitrary>], iteration_bounds = array<i64: 2, 8, 7>, scalar_prefetch = 0 : i64, scratch_operands = 1 : i64, tpu.core_type = #tpu.core_type<tc>, window_params = [{transform_indices = @transform_0, window_bounds = array<i64: 14, 1, 88, 8>}, {transform_indices = @transform_1, window_bounds = array<i64: 1, 49, 8, 8>}, {pipeline_mode = #tpu.pipeline_mode<synchronous>, transform_indices = @transform_2, window_bounds = array<i64: 1, 8>}, {transform_indices = @transform_3, window_bounds = array<i64: 1, 64, 8>}]} {
    %c0_i32 = arith.constant 0 : i32
    %0 = arith.cmpi eq, %arg2, %c0_i32 : i32
    %1 = arith.extui %0 : i1 to i32
    %c0_i32_0 = arith.constant 0 : i32
    %2 = arith.cmpi ne, %1, %c0_i32_0 : i32
    scf.if %2 {
      %cst_397 = arith.constant 0.000000e+00 : f32
      %302 = vector.broadcast %cst_397 : f32 to vector<64x8xf32>
      %c0_398 = arith.constant 0 : index
      %c0_399 = arith.constant 0 : index
      %303 = vector.load %arg7[%c0_398, %c0_399] : memref<64x8xf32, #tpu.memory_space<vmem>>, vector<64x8xf32>
      tpu.vector_store %arg7[%c0_398, %c0_399], %302 {strides = array<i32>} : memref<64x8xf32, #tpu.memory_space<vmem>>, vector<64x8xf32>,
    } else {
    }
    %c0 = arith.constant 0 : index
    %c0_1 = arith.constant 0 : index
    %3 = vector.load %arg7[%c0, %c0_1] : memref<64x8xf32, #tpu.memory_space<vmem>>, vector<64x8xf32>
    %c0_2 = arith.constant 0 : index
    %c0_3 = arith.constant 0 : index
    %c0_4 = arith.constant 0 : index
    %c0_5 = arith.constant 0 : index
    %4 = vector.load %arg3[%c0_2, %c0_3, %c0_4, %c0_5] : memref<14x1x88x8xbf16, #tpu.memory_space<vmem>>, vector<1x1x64x8xbf16>
    %5 = vector.shape_cast %4 : vector<1x1x64x8xbf16> to vector<64x8xbf16>
    %c0_6 = arith.constant 0 : index
    %c0_7 = arith.constant 0 : index
    %c0_8 = arith.constant 0 : index
    %c0_9 = arith.constant 0 : index
    %6 = vector.load %arg4[%c0_6, %c0_7, %c0_8, %c0_9] : memref<1x49x8x8xbf16, #tpu.memory_space<vmem>>, vector<1x1x8x8xbf16>
    %7 = vector.shape_cast %6 : vector<1x1x8x8xbf16> to vector<8x8xbf16>
    %cst = arith.constant dense<0.000000e+00> : vector<64x8xf32>
    %8 = tpu.matmul %5, %7, %cst {dimension_numbers = #tpu.dot_dimension_numbers<[1], [0], [0], [1], [0, 0, 1, 1], [], []>} : vector<64x8xbf16>, vector<8x8xbf16>, vector<64x8xf32> -> vector<64x8xf32>
    %9 = arith.addf %3, %8 : vector<64x8xf32>
    %c2 = arith.constant 2 : index
    %c0_10 = arith.constant 0 : index
    %c0_11 = arith.constant 0 : index
    %c0_12 = arith.constant 0 : index
    %10 = vector.load %arg3[%c2, %c0_10, %c0_11, %c0_12] : memref<14x1x88x8xbf16, #tpu.memory_space<vmem>>, vector<1x1x64x8xbf16>
    %11 = vector.shape_cast %10 : vector<1x1x64x8xbf16> to vector<64x8xbf16>
    %c0_13 = arith.constant 0 : index
    %c1 = arith.constant 1 : index
    %c0_14 = arith.constant 0 : index
    %c0_15 = arith.constant 0 : index
    %12 = vector.load %arg4[%c0_13, %c1, %c0_14, %c0_15] : memref<1x49x8x8xbf16, #tpu.memory_space<vmem>>, vector<1x1x8x8xbf16>
    %13 = vector.shape_cast %12 : vector<1x1x8x8xbf16> to vector<8x8xbf16>
    %cst_16 = arith.constant dense<0.000000e+00> : vector<64x8xf32>
    %14 = tpu.matmul %11, %13, %cst_16 {dimension_numbers = #tpu.dot_dimension_numbers<[1], [0], [0], [1], [0, 0, 1, 1], [], []>} : vector<64x8xbf16>, vector<8x8xbf16>, vector<64x8xf32> -> vector<64x8xf32>
    %15 = arith.addf %9, %14 : vector<64x8xf32>
    %c4 = arith.constant 4 : index
    %c0_17 = arith.constant 0 : index
    %c0_18 = arith.constant 0 : index
    %c0_19 = arith.constant 0 : index
    %16 = vector.load %arg3[%c4, %c0_17, %c0_18, %c0_19] : memref<14x1x88x8xbf16, #tpu.memory_space<vmem>>, vector<1x1x64x8xbf16>
    %17 = vector.shape_cast %16 : vector<1x1x64x8xbf16> to vector<64x8xbf16>
    %c0_20 = arith.constant 0 : index
    %c2_21 = arith.constant 2 : index
    %c0_22 = arith.constant 0 : index
    %c0_23 = arith.constant 0 : index
    %18 = vector.load %arg4[%c0_20, %c2_21, %c0_22, %c0_23] : memref<1x49x8x8xbf16, #tpu.memory_space<vmem>>, vector<1x1x8x8xbf16>
    %19 = vector.shape_cast %18 : vector<1x1x8x8xbf16> to vector<8x8xbf16>
    %cst_24 = arith.constant dense<0.000000e+00> : vector<64x8xf32>
    %20 = tpu.matmul %17, %19, %cst_24 {dimension_numbers = #tpu.dot_dimension_numbers<[1], [0], [0], [1], [0, 0, 1, 1], [], []>} : vector<64x8xbf16>, vector<8x8xbf16>, vector<64x8xf32> -> vector<64x8xf32>
    %21 = arith.addf %15, %20 : vector<64x8xf32>
    %c6 = arith.constant 6 : index
    %c0_25 = arith.constant 0 : index
    %c0_26 = arith.constant 0 : index
    %c0_27 = arith.constant 0 : index
    %22 = vector.load %arg3[%c6, %c0_25, %c0_26, %c0_27] : memref<14x1x88x8xbf16, #tpu.memory_space<vmem>>, vector<1x1x64x8xbf16>
    %23 = vector.shape_cast %22 : vector<1x1x64x8xbf16> to vector<64x8xbf16>
    %c0_28 = arith.constant 0 : index
    %c3 = arith.constant 3 : index
    %c0_29 = arith.constant 0 : index
    %c0_30 = arith.constant 0 : index
    %24 = vector.load %arg4[%c0_28, %c3, %c0_29, %c0_30] : memref<1x49x8x8xbf16, #tpu.memory_space<vmem>>, vector<1x1x8x8xbf16>
    %25 = vector.shape_cast %24 : vector<1x1x8x8xbf16> to vector<8x8xbf16>
    %cst_31 = arith.constant dense<0.000000e+00> : vector<64x8xf32>
    %26 = tpu.matmul %23, %25, %cst_31 {dimension_numbers = #tpu.dot_dimension_numbers<[1], [0], [0], [1], [0, 0, 1, 1], [], []>} : vector<64x8xbf16>, vector<8x8xbf16>, vector<64x8xf32> -> vector<64x8xf32>
    %27 = arith.addf %21, %26 : vector<64x8xf32>
    %c8 = arith.constant 8 : index
    %c0_32 = arith.constant 0 : index
    %c0_33 = arith.constant 0 : index
    %c0_34 = arith.constant 0 : index
    %28 = vector.load %arg3[%c8, %c0_32, %c0_33, %c0_34] : memref<14x1x88x8xbf16, #tpu.memory_space<vmem>>, vector<1x1x64x8xbf16>
    %29 = vector.shape_cast %28 : vector<1x1x64x8xbf16> to vector<64x8xbf16>
    %c0_35 = arith.constant 0 : index
    %c4_36 = arith.constant 4 : index
    %c0_37 = arith.constant 0 : index
    %c0_38 = arith.constant 0 : index
    %30 = vector.load %arg4[%c0_35, %c4_36, %c0_37, %c0_38] : memref<1x49x8x8xbf16, #tpu.memory_space<vmem>>, vector<1x1x8x8xbf16>
    %31 = vector.shape_cast %30 : vector<1x1x8x8xbf16> to vector<8x8xbf16>
    %cst_39 = arith.constant dense<0.000000e+00> : vector<64x8xf32>
    %32 = tpu.matmul %29, %31, %cst_39 {dimension_numbers = #tpu.dot_dimension_numbers<[1], [0], [0], [1], [0, 0, 1, 1], [], []>} : vector<64x8xbf16>, vector<8x8xbf16>, vector<64x8xf32> -> vector<64x8xf32>
    %33 = arith.addf %27, %32 : vector<64x8xf32>
    %c10 = arith.constant 10 : index
    %c0_40 = arith.constant 0 : index
    %c0_41 = arith.constant 0 : index
    %c0_42 = arith.constant 0 : index
    %34 = vector.load %arg3[%c10, %c0_40, %c0_41, %c0_42] : memref<14x1x88x8xbf16, #tpu.memory_space<vmem>>, vector<1x1x64x8xbf16>
    %35 = vector.shape_cast %34 : vector<1x1x64x8xbf16> to vector<64x8xbf16>
    %c0_43 = arith.constant 0 : index
    %c5 = arith.constant 5 : index
    %c0_44 = arith.constant 0 : index
    %c0_45 = arith.constant 0 : index
    %36 = vector.load %arg4[%c0_43, %c5, %c0_44, %c0_45] : memref<1x49x8x8xbf16, #tpu.memory_space<vmem>>, vector<1x1x8x8xbf16>
    %37 = vector.shape_cast %36 : vector<1x1x8x8xbf16> to vector<8x8xbf16>
    %cst_46 = arith.constant dense<0.000000e+00> : vector<64x8xf32>
    %38 = tpu.matmul %35, %37, %cst_46 {dimension_numbers = #tpu.dot_dimension_numbers<[1], [0], [0], [1], [0, 0, 1, 1], [], []>} : vector<64x8xbf16>, vector<8x8xbf16>, vector<64x8xf32> -> vector<64x8xf32>
    %39 = arith.addf %33, %38 : vector<64x8xf32>
    %c12 = arith.constant 12 : index
    %c0_47 = arith.constant 0 : index
    %c0_48 = arith.constant 0 : index
    %c0_49 = arith.constant 0 : index
    %40 = vector.load %arg3[%c12, %c0_47, %c0_48, %c0_49] : memref<14x1x88x8xbf16, #tpu.memory_space<vmem>>, vector<1x1x64x8xbf16>
    %41 = vector.shape_cast %40 : vector<1x1x64x8xbf16> to vector<64x8xbf16>
    %c0_50 = arith.constant 0 : index
    %c6_51 = arith.constant 6 : index
    %c0_52 = arith.constant 0 : index
    %c0_53 = arith.constant 0 : index
    %42 = vector.load %arg4[%c0_50, %c6_51, %c0_52, %c0_53] : memref<1x49x8x8xbf16, #tpu.memory_space<vmem>>, vector<1x1x8x8xbf16>
    %43 = vector.shape_cast %42 : vector<1x1x8x8xbf16> to vector<8x8xbf16>
    %cst_54 = arith.constant dense<0.000000e+00> : vector<64x8xf32>
    %44 = tpu.matmul %41, %43, %cst_54 {dimension_numbers = #tpu.dot_dimension_numbers<[1], [0], [0], [1], [0, 0, 1, 1], [], []>} : vector<64x8xbf16>, vector<8x8xbf16>, vector<64x8xf32> -> vector<64x8xf32>
    %45 = arith.addf %39, %44 : vector<64x8xf32>
    %c1_55 = arith.constant 1 : index
    %c0_56 = arith.constant 0 : index
    %c0_57 = arith.constant 0 : index
    %c0_58 = arith.constant 0 : index
    %46 = vector.load %arg3[%c1_55, %c0_56, %c0_57, %c0_58] : memref<14x1x88x8xbf16, #tpu.memory_space<vmem>>, vector<1x1x64x8xbf16>
    %47 = vector.shape_cast %46 : vector<1x1x64x8xbf16> to vector<64x8xbf16>
    %c0_59 = arith.constant 0 : index
    %c7 = arith.constant 7 : index
    %c0_60 = arith.constant 0 : index
    %c0_61 = arith.constant 0 : index
    %48 = vector.load %arg4[%c0_59, %c7, %c0_60, %c0_61] : memref<1x49x8x8xbf16, #tpu.memory_space<vmem>>, vector<1x1x8x8xbf16>
    %49 = vector.shape_cast %48 : vector<1x1x8x8xbf16> to vector<8x8xbf16>
    %cst_62 = arith.constant dense<0.000000e+00> : vector<64x8xf32>
    %50 = tpu.matmul %47, %49, %cst_62 {dimension_numbers = #tpu.dot_dimension_numbers<[1], [0], [0], [1], [0, 0, 1, 1], [], []>} : vector<64x8xbf16>, vector<8x8xbf16>, vector<64x8xf32> -> vector<64x8xf32>
    %51 = arith.addf %45, %50 : vector<64x8xf32>
    %c3_63 = arith.constant 3 : index
    %c0_64 = arith.constant 0 : index
    %c0_65 = arith.constant 0 : index
    %c0_66 = arith.constant 0 : index
    %52 = vector.load %arg3[%c3_63, %c0_64, %c0_65, %c0_66] : memref<14x1x88x8xbf16, #tpu.memory_space<vmem>>, vector<1x1x64x8xbf16>
    %53 = vector.shape_cast %52 : vector<1x1x64x8xbf16> to vector<64x8xbf16>
    %c0_67 = arith.constant 0 : index
    %c8_68 = arith.constant 8 : index
    %c0_69 = arith.constant 0 : index
    %c0_70 = arith.constant 0 : index
    %54 = vector.load %arg4[%c0_67, %c8_68, %c0_69, %c0_70] : memref<1x49x8x8xbf16, #tpu.memory_space<vmem>>, vector<1x1x8x8xbf16>
    %55 = vector.shape_cast %54 : vector<1x1x8x8xbf16> to vector<8x8xbf16>
    %cst_71 = arith.constant dense<0.000000e+00> : vector<64x8xf32>
    %56 = tpu.matmul %53, %55, %cst_71 {dimension_numbers = #tpu.dot_dimension_numbers<[1], [0], [0], [1], [0, 0, 1, 1], [], []>} : vector<64x8xbf16>, vector<8x8xbf16>, vector<64x8xf32> -> vector<64x8xf32>
    %57 = arith.addf %51, %56 : vector<64x8xf32>
    %c5_72 = arith.constant 5 : index
    %c0_73 = arith.constant 0 : index
    %c0_74 = arith.constant 0 : index
    %c0_75 = arith.constant 0 : index
    %58 = vector.load %arg3[%c5_72, %c0_73, %c0_74, %c0_75] : memref<14x1x88x8xbf16, #tpu.memory_space<vmem>>, vector<1x1x64x8xbf16>
    %59 = vector.shape_cast %58 : vector<1x1x64x8xbf16> to vector<64x8xbf16>
    %c0_76 = arith.constant 0 : index
    %c9 = arith.constant 9 : index
    %c0_77 = arith.constant 0 : index
    %c0_78 = arith.constant 0 : index
    %60 = vector.load %arg4[%c0_76, %c9, %c0_77, %c0_78] : memref<1x49x8x8xbf16, #tpu.memory_space<vmem>>, vector<1x1x8x8xbf16>
    %61 = vector.shape_cast %60 : vector<1x1x8x8xbf16> to vector<8x8xbf16>
    %cst_79 = arith.constant dense<0.000000e+00> : vector<64x8xf32>
    %62 = tpu.matmul %59, %61, %cst_79 {dimension_numbers = #tpu.dot_dimension_numbers<[1], [0], [0], [1], [0, 0, 1, 1], [], []>} : vector<64x8xbf16>, vector<8x8xbf16>, vector<64x8xf32> -> vector<64x8xf32>
    %63 = arith.addf %57, %62 : vector<64x8xf32>
    %c7_80 = arith.constant 7 : index
    %c0_81 = arith.constant 0 : index
    %c0_82 = arith.constant 0 : index
    %c0_83 = arith.constant 0 : index
    %64 = vector.load %arg3[%c7_80, %c0_81, %c0_82, %c0_83] : memref<14x1x88x8xbf16, #tpu.memory_space<vmem>>, vector<1x1x64x8xbf16>
    %65 = vector.shape_cast %64 : vector<1x1x64x8xbf16> to vector<64x8xbf16>
    %c0_84 = arith.constant 0 : index
    %c10_85 = arith.constant 10 : index
    %c0_86 = arith.constant 0 : index
    %c0_87 = arith.constant 0 : index
    %66 = vector.load %arg4[%c0_84, %c10_85, %c0_86, %c0_87] : memref<1x49x8x8xbf16, #tpu.memory_space<vmem>>, vector<1x1x8x8xbf16>
    %67 = vector.shape_cast %66 : vector<1x1x8x8xbf16> to vector<8x8xbf16>
    %cst_88 = arith.constant dense<0.000000e+00> : vector<64x8xf32>
    %68 = tpu.matmul %65, %67, %cst_88 {dimension_numbers = #tpu.dot_dimension_numbers<[1], [0], [0], [1], [0, 0, 1, 1], [], []>} : vector<64x8xbf16>, vector<8x8xbf16>, vector<64x8xf32> -> vector<64x8xf32>
    %69 = arith.addf %63, %68 : vector<64x8xf32>
    %c9_89 = arith.constant 9 : index
    %c0_90 = arith.constant 0 : index
    %c0_91 = arith.constant 0 : index
    %c0_92 = arith.constant 0 : index
    %70 = vector.load %arg3[%c9_89, %c0_90, %c0_91, %c0_92] : memref<14x1x88x8xbf16, #tpu.memory_space<vmem>>, vector<1x1x64x8xbf16>
    %71 = vector.shape_cast %70 : vector<1x1x64x8xbf16> to vector<64x8xbf16>
    %c0_93 = arith.constant 0 : index
    %c11 = arith.constant 11 : index
    %c0_94 = arith.constant 0 : index
    %c0_95 = arith.constant 0 : index
    %72 = vector.load %arg4[%c0_93, %c11, %c0_94, %c0_95] : memref<1x49x8x8xbf16, #tpu.memory_space<vmem>>, vector<1x1x8x8xbf16>
    %73 = vector.shape_cast %72 : vector<1x1x8x8xbf16> to vector<8x8xbf16>
    %cst_96 = arith.constant dense<0.000000e+00> : vector<64x8xf32>
    %74 = tpu.matmul %71, %73, %cst_96 {dimension_numbers = #tpu.dot_dimension_numbers<[1], [0], [0], [1], [0, 0, 1, 1], [], []>} : vector<64x8xbf16>, vector<8x8xbf16>, vector<64x8xf32> -> vector<64x8xf32>
    %75 = arith.addf %69, %74 : vector<64x8xf32>
    %c11_97 = arith.constant 11 : index
    %c0_98 = arith.constant 0 : index
    %c0_99 = arith.constant 0 : index
    %c0_100 = arith.constant 0 : index
    %76 = vector.load %arg3[%c11_97, %c0_98, %c0_99, %c0_100] : memref<14x1x88x8xbf16, #tpu.memory_space<vmem>>, vector<1x1x64x8xbf16>
    %77 = vector.shape_cast %76 : vector<1x1x64x8xbf16> to vector<64x8xbf16>
    %c0_101 = arith.constant 0 : index
    %c12_102 = arith.constant 12 : index
    %c0_103 = arith.constant 0 : index
    %c0_104 = arith.constant 0 : index
    %78 = vector.load %arg4[%c0_101, %c12_102, %c0_103, %c0_104] : memref<1x49x8x8xbf16, #tpu.memory_space<vmem>>, vector<1x1x8x8xbf16>
    %79 = vector.shape_cast %78 : vector<1x1x8x8xbf16> to vector<8x8xbf16>
    %cst_105 = arith.constant dense<0.000000e+00> : vector<64x8xf32>
    %80 = tpu.matmul %77, %79, %cst_105 {dimension_numbers = #tpu.dot_dimension_numbers<[1], [0], [0], [1], [0, 0, 1, 1], [], []>} : vector<64x8xbf16>, vector<8x8xbf16>, vector<64x8xf32> -> vector<64x8xf32>
    %81 = arith.addf %75, %80 : vector<64x8xf32>
    %c13 = arith.constant 13 : index
    %c0_106 = arith.constant 0 : index
    %c0_107 = arith.constant 0 : index
    %c0_108 = arith.constant 0 : index
    %82 = vector.load %arg3[%c13, %c0_106, %c0_107, %c0_108] : memref<14x1x88x8xbf16, #tpu.memory_space<vmem>>, vector<1x1x64x8xbf16>
    %83 = vector.shape_cast %82 : vector<1x1x64x8xbf16> to vector<64x8xbf16>
    %c0_109 = arith.constant 0 : index
    %c13_110 = arith.constant 13 : index
    %c0_111 = arith.constant 0 : index
    %c0_112 = arith.constant 0 : index
    %84 = vector.load %arg4[%c0_109, %c13_110, %c0_111, %c0_112] : memref<1x49x8x8xbf16, #tpu.memory_space<vmem>>, vector<1x1x8x8xbf16>
    %85 = vector.shape_cast %84 : vector<1x1x8x8xbf16> to vector<8x8xbf16>
    %cst_113 = arith.constant dense<0.000000e+00> : vector<64x8xf32>
    %86 = tpu.matmul %83, %85, %cst_113 {dimension_numbers = #tpu.dot_dimension_numbers<[1], [0], [0], [1], [0, 0, 1, 1], [], []>} : vector<64x8xbf16>, vector<8x8xbf16>, vector<64x8xf32> -> vector<64x8xf32>
    %87 = arith.addf %81, %86 : vector<64x8xf32>
    %c0_114 = arith.constant 0 : index
    %c0_115 = arith.constant 0 : index
    %c8_116 = arith.constant 8 : index
    %c0_117 = arith.constant 0 : index
    %88 = vector.load %arg3[%c0_114, %c0_115, %c8_116, %c0_117] : memref<14x1x88x8xbf16, #tpu.memory_space<vmem>>, vector<1x1x64x8xbf16>
    %89 = vector.shape_cast %88 : vector<1x1x64x8xbf16> to vector<64x8xbf16>
    %c0_118 = arith.constant 0 : index
    %c14 = arith.constant 14 : index
    %c0_119 = arith.constant 0 : index
    %c0_120 = arith.constant 0 : index
    %90 = vector.load %arg4[%c0_118, %c14, %c0_119, %c0_120] : memref<1x49x8x8xbf16, #tpu.memory_space<vmem>>, vector<1x1x8x8xbf16>
    %91 = vector.shape_cast %90 : vector<1x1x8x8xbf16> to vector<8x8xbf16>
    %cst_121 = arith.constant dense<0.000000e+00> : vector<64x8xf32>
    %92 = tpu.matmul %89, %91, %cst_121 {dimension_numbers = #tpu.dot_dimension_numbers<[1], [0], [0], [1], [0, 0, 1, 1], [], []>} : vector<64x8xbf16>, vector<8x8xbf16>, vector<64x8xf32> -> vector<64x8xf32>
    %93 = arith.addf %87, %92 : vector<64x8xf32>
    %c2_122 = arith.constant 2 : index
    %c0_123 = arith.constant 0 : index
    %c8_124 = arith.constant 8 : index
    %c0_125 = arith.constant 0 : index
    %94 = vector.load %arg3[%c2_122, %c0_123, %c8_124, %c0_125] : memref<14x1x88x8xbf16, #tpu.memory_space<vmem>>, vector<1x1x64x8xbf16>
    %95 = vector.shape_cast %94 : vector<1x1x64x8xbf16> to vector<64x8xbf16>
    %c0_126 = arith.constant 0 : index
    %c15 = arith.constant 15 : index
    %c0_127 = arith.constant 0 : index
    %c0_128 = arith.constant 0 : index
    %96 = vector.load %arg4[%c0_126, %c15, %c0_127, %c0_128] : memref<1x49x8x8xbf16, #tpu.memory_space<vmem>>, vector<1x1x8x8xbf16>
    %97 = vector.shape_cast %96 : vector<1x1x8x8xbf16> to vector<8x8xbf16>
    %cst_129 = arith.constant dense<0.000000e+00> : vector<64x8xf32>
    %98 = tpu.matmul %95, %97, %cst_129 {dimension_numbers = #tpu.dot_dimension_numbers<[1], [0], [0], [1], [0, 0, 1, 1], [], []>} : vector<64x8xbf16>, vector<8x8xbf16>, vector<64x8xf32> -> vector<64x8xf32>
    %99 = arith.addf %93, %98 : vector<64x8xf32>
    %c4_130 = arith.constant 4 : index
    %c0_131 = arith.constant 0 : index
    %c8_132 = arith.constant 8 : index
    %c0_133 = arith.constant 0 : index
    %100 = vector.load %arg3[%c4_130, %c0_131, %c8_132, %c0_133] : memref<14x1x88x8xbf16, #tpu.memory_space<vmem>>, vector<1x1x64x8xbf16>
    %101 = vector.shape_cast %100 : vector<1x1x64x8xbf16> to vector<64x8xbf16>
    %c0_134 = arith.constant 0 : index
    %c16 = arith.constant 16 : index
    %c0_135 = arith.constant 0 : index
    %c0_136 = arith.constant 0 : index
    %102 = vector.load %arg4[%c0_134, %c16, %c0_135, %c0_136] : memref<1x49x8x8xbf16, #tpu.memory_space<vmem>>, vector<1x1x8x8xbf16>
    %103 = vector.shape_cast %102 : vector<1x1x8x8xbf16> to vector<8x8xbf16>
    %cst_137 = arith.constant dense<0.000000e+00> : vector<64x8xf32>
    %104 = tpu.matmul %101, %103, %cst_137 {dimension_numbers = #tpu.dot_dimension_numbers<[1], [0], [0], [1], [0, 0, 1, 1], [], []>} : vector<64x8xbf16>, vector<8x8xbf16>, vector<64x8xf32> -> vector<64x8xf32>
    %105 = arith.addf %99, %104 : vector<64x8xf32>
    %c6_138 = arith.constant 6 : index
    %c0_139 = arith.constant 0 : index
    %c8_140 = arith.constant 8 : index
    %c0_141 = arith.constant 0 : index
    %106 = vector.load %arg3[%c6_138, %c0_139, %c8_140, %c0_141] : memref<14x1x88x8xbf16, #tpu.memory_space<vmem>>, vector<1x1x64x8xbf16>
    %107 = vector.shape_cast %106 : vector<1x1x64x8xbf16> to vector<64x8xbf16>
    %c0_142 = arith.constant 0 : index
    %c17 = arith.constant 17 : index
    %c0_143 = arith.constant 0 : index
    %c0_144 = arith.constant 0 : index
    %108 = vector.load %arg4[%c0_142, %c17, %c0_143, %c0_144] : memref<1x49x8x8xbf16, #tpu.memory_space<vmem>>, vector<1x1x8x8xbf16>
    %109 = vector.shape_cast %108 : vector<1x1x8x8xbf16> to vector<8x8xbf16>
    %cst_145 = arith.constant dense<0.000000e+00> : vector<64x8xf32>
    %110 = tpu.matmul %107, %109, %cst_145 {dimension_numbers = #tpu.dot_dimension_numbers<[1], [0], [0], [1], [0, 0, 1, 1], [], []>} : vector<64x8xbf16>, vector<8x8xbf16>, vector<64x8xf32> -> vector<64x8xf32>
    %111 = arith.addf %105, %110 : vector<64x8xf32>
    %c8_146 = arith.constant 8 : index
    %c0_147 = arith.constant 0 : index
    %c8_148 = arith.constant 8 : index
    %c0_149 = arith.constant 0 : index
    %112 = vector.load %arg3[%c8_146, %c0_147, %c8_148, %c0_149] : memref<14x1x88x8xbf16, #tpu.memory_space<vmem>>, vector<1x1x64x8xbf16>
    %113 = vector.shape_cast %112 : vector<1x1x64x8xbf16> to vector<64x8xbf16>
    %c0_150 = arith.constant 0 : index
    %c18 = arith.constant 18 : index
    %c0_151 = arith.constant 0 : index
    %c0_152 = arith.constant 0 : index
    %114 = vector.load %arg4[%c0_150, %c18, %c0_151, %c0_152] : memref<1x49x8x8xbf16, #tpu.memory_space<vmem>>, vector<1x1x8x8xbf16>
    %115 = vector.shape_cast %114 : vector<1x1x8x8xbf16> to vector<8x8xbf16>
    %cst_153 = arith.constant dense<0.000000e+00> : vector<64x8xf32>
    %116 = tpu.matmul %113, %115, %cst_153 {dimension_numbers = #tpu.dot_dimension_numbers<[1], [0], [0], [1], [0, 0, 1, 1], [], []>} : vector<64x8xbf16>, vector<8x8xbf16>, vector<64x8xf32> -> vector<64x8xf32>
    %117 = arith.addf %111, %116 : vector<64x8xf32>
    %c10_154 = arith.constant 10 : index
    %c0_155 = arith.constant 0 : index
    %c8_156 = arith.constant 8 : index
    %c0_157 = arith.constant 0 : index
    %118 = vector.load %arg3[%c10_154, %c0_155, %c8_156, %c0_157] : memref<14x1x88x8xbf16, #tpu.memory_space<vmem>>, vector<1x1x64x8xbf16>
    %119 = vector.shape_cast %118 : vector<1x1x64x8xbf16> to vector<64x8xbf16>
    %c0_158 = arith.constant 0 : index
    %c19 = arith.constant 19 : index
    %c0_159 = arith.constant 0 : index
    %c0_160 = arith.constant 0 : index
    %120 = vector.load %arg4[%c0_158, %c19, %c0_159, %c0_160] : memref<1x49x8x8xbf16, #tpu.memory_space<vmem>>, vector<1x1x8x8xbf16>
    %121 = vector.shape_cast %120 : vector<1x1x8x8xbf16> to vector<8x8xbf16>
    %cst_161 = arith.constant dense<0.000000e+00> : vector<64x8xf32>
    %122 = tpu.matmul %119, %121, %cst_161 {dimension_numbers = #tpu.dot_dimension_numbers<[1], [0], [0], [1], [0, 0, 1, 1], [], []>} : vector<64x8xbf16>, vector<8x8xbf16>, vector<64x8xf32> -> vector<64x8xf32>
    %123 = arith.addf %117, %122 : vector<64x8xf32>
    %c12_162 = arith.constant 12 : index
    %c0_163 = arith.constant 0 : index
    %c8_164 = arith.constant 8 : index
    %c0_165 = arith.constant 0 : index
    %124 = vector.load %arg3[%c12_162, %c0_163, %c8_164, %c0_165] : memref<14x1x88x8xbf16, #tpu.memory_space<vmem>>, vector<1x1x64x8xbf16>
    %125 = vector.shape_cast %124 : vector<1x1x64x8xbf16> to vector<64x8xbf16>
    %c0_166 = arith.constant 0 : index
    %c20 = arith.constant 20 : index
    %c0_167 = arith.constant 0 : index
    %c0_168 = arith.constant 0 : index
    %126 = vector.load %arg4[%c0_166, %c20, %c0_167, %c0_168] : memref<1x49x8x8xbf16, #tpu.memory_space<vmem>>, vector<1x1x8x8xbf16>
    %127 = vector.shape_cast %126 : vector<1x1x8x8xbf16> to vector<8x8xbf16>
    %cst_169 = arith.constant dense<0.000000e+00> : vector<64x8xf32>
    %128 = tpu.matmul %125, %127, %cst_169 {dimension_numbers = #tpu.dot_dimension_numbers<[1], [0], [0], [1], [0, 0, 1, 1], [], []>} : vector<64x8xbf16>, vector<8x8xbf16>, vector<64x8xf32> -> vector<64x8xf32>
    %129 = arith.addf %123, %128 : vector<64x8xf32>
    %c1_170 = arith.constant 1 : index
    %c0_171 = arith.constant 0 : index
    %c8_172 = arith.constant 8 : index
    %c0_173 = arith.constant 0 : index
    %130 = vector.load %arg3[%c1_170, %c0_171, %c8_172, %c0_173] : memref<14x1x88x8xbf16, #tpu.memory_space<vmem>>, vector<1x1x64x8xbf16>
    %131 = vector.shape_cast %130 : vector<1x1x64x8xbf16> to vector<64x8xbf16>
    %c0_174 = arith.constant 0 : index
    %c21 = arith.constant 21 : index
    %c0_175 = arith.constant 0 : index
    %c0_176 = arith.constant 0 : index
    %132 = vector.load %arg4[%c0_174, %c21, %c0_175, %c0_176] : memref<1x49x8x8xbf16, #tpu.memory_space<vmem>>, vector<1x1x8x8xbf16>
    %133 = vector.shape_cast %132 : vector<1x1x8x8xbf16> to vector<8x8xbf16>
    %cst_177 = arith.constant dense<0.000000e+00> : vector<64x8xf32>
    %134 = tpu.matmul %131, %133, %cst_177 {dimension_numbers = #tpu.dot_dimension_numbers<[1], [0], [0], [1], [0, 0, 1, 1], [], []>} : vector<64x8xbf16>, vector<8x8xbf16>, vector<64x8xf32> -> vector<64x8xf32>
    %135 = arith.addf %129, %134 : vector<64x8xf32>
    %c3_178 = arith.constant 3 : index
    %c0_179 = arith.constant 0 : index
    %c8_180 = arith.constant 8 : index
    %c0_181 = arith.constant 0 : index
    %136 = vector.load %arg3[%c3_178, %c0_179, %c8_180, %c0_181] : memref<14x1x88x8xbf16, #tpu.memory_space<vmem>>, vector<1x1x64x8xbf16>
    %137 = vector.shape_cast %136 : vector<1x1x64x8xbf16> to vector<64x8xbf16>
    %c0_182 = arith.constant 0 : index
    %c22 = arith.constant 22 : index
    %c0_183 = arith.constant 0 : index
    %c0_184 = arith.constant 0 : index
    %138 = vector.load %arg4[%c0_182, %c22, %c0_183, %c0_184] : memref<1x49x8x8xbf16, #tpu.memory_space<vmem>>, vector<1x1x8x8xbf16>
    %139 = vector.shape_cast %138 : vector<1x1x8x8xbf16> to vector<8x8xbf16>
    %cst_185 = arith.constant dense<0.000000e+00> : vector<64x8xf32>
    %140 = tpu.matmul %137, %139, %cst_185 {dimension_numbers = #tpu.dot_dimension_numbers<[1], [0], [0], [1], [0, 0, 1, 1], [], []>} : vector<64x8xbf16>, vector<8x8xbf16>, vector<64x8xf32> -> vector<64x8xf32>
    %141 = arith.addf %135, %140 : vector<64x8xf32>
    %c5_186 = arith.constant 5 : index
    %c0_187 = arith.constant 0 : index
    %c8_188 = arith.constant 8 : index
    %c0_189 = arith.constant 0 : index
    %142 = vector.load %arg3[%c5_186, %c0_187, %c8_188, %c0_189] : memref<14x1x88x8xbf16, #tpu.memory_space<vmem>>, vector<1x1x64x8xbf16>
    %143 = vector.shape_cast %142 : vector<1x1x64x8xbf16> to vector<64x8xbf16>
    %c0_190 = arith.constant 0 : index
    %c23 = arith.constant 23 : index
    %c0_191 = arith.constant 0 : index
    %c0_192 = arith.constant 0 : index
    %144 = vector.load %arg4[%c0_190, %c23, %c0_191, %c0_192] : memref<1x49x8x8xbf16, #tpu.memory_space<vmem>>, vector<1x1x8x8xbf16>
    %145 = vector.shape_cast %144 : vector<1x1x8x8xbf16> to vector<8x8xbf16>
    %cst_193 = arith.constant dense<0.000000e+00> : vector<64x8xf32>
    %146 = tpu.matmul %143, %145, %cst_193 {dimension_numbers = #tpu.dot_dimension_numbers<[1], [0], [0], [1], [0, 0, 1, 1], [], []>} : vector<64x8xbf16>, vector<8x8xbf16>, vector<64x8xf32> -> vector<64x8xf32>
    %147 = arith.addf %141, %146 : vector<64x8xf32>
    %c7_194 = arith.constant 7 : index
    %c0_195 = arith.constant 0 : index
    %c8_196 = arith.constant 8 : index
    %c0_197 = arith.constant 0 : index
    %148 = vector.load %arg3[%c7_194, %c0_195, %c8_196, %c0_197] : memref<14x1x88x8xbf16, #tpu.memory_space<vmem>>, vector<1x1x64x8xbf16>
    %149 = vector.shape_cast %148 : vector<1x1x64x8xbf16> to vector<64x8xbf16>
    %c0_198 = arith.constant 0 : index
    %c24 = arith.constant 24 : index
    %c0_199 = arith.constant 0 : index
    %c0_200 = arith.constant 0 : index
    %150 = vector.load %arg4[%c0_198, %c24, %c0_199, %c0_200] : memref<1x49x8x8xbf16, #tpu.memory_space<vmem>>, vector<1x1x8x8xbf16>
    %151 = vector.shape_cast %150 : vector<1x1x8x8xbf16> to vector<8x8xbf16>
    %cst_201 = arith.constant dense<0.000000e+00> : vector<64x8xf32>
    %152 = tpu.matmul %149, %151, %cst_201 {dimension_numbers = #tpu.dot_dimension_numbers<[1], [0], [0], [1], [0, 0, 1, 1], [], []>} : vector<64x8xbf16>, vector<8x8xbf16>, vector<64x8xf32> -> vector<64x8xf32>
    %153 = arith.addf %147, %152 : vector<64x8xf32>
    %c9_202 = arith.constant 9 : index
    %c0_203 = arith.constant 0 : index
    %c8_204 = arith.constant 8 : index
    %c0_205 = arith.constant 0 : index
    %154 = vector.load %arg3[%c9_202, %c0_203, %c8_204, %c0_205] : memref<14x1x88x8xbf16, #tpu.memory_space<vmem>>, vector<1x1x64x8xbf16>
    %155 = vector.shape_cast %154 : vector<1x1x64x8xbf16> to vector<64x8xbf16>
    %c0_206 = arith.constant 0 : index
    %c25 = arith.constant 25 : index
    %c0_207 = arith.constant 0 : index
    %c0_208 = arith.constant 0 : index
    %156 = vector.load %arg4[%c0_206, %c25, %c0_207, %c0_208] : memref<1x49x8x8xbf16, #tpu.memory_space<vmem>>, vector<1x1x8x8xbf16>
    %157 = vector.shape_cast %156 : vector<1x1x8x8xbf16> to vector<8x8xbf16>
    %cst_209 = arith.constant dense<0.000000e+00> : vector<64x8xf32>
    %158 = tpu.matmul %155, %157, %cst_209 {dimension_numbers = #tpu.dot_dimension_numbers<[1], [0], [0], [1], [0, 0, 1, 1], [], []>} : vector<64x8xbf16>, vector<8x8xbf16>, vector<64x8xf32> -> vector<64x8xf32>
    %159 = arith.addf %153, %158 : vector<64x8xf32>
    %c11_210 = arith.constant 11 : index
    %c0_211 = arith.constant 0 : index
    %c8_212 = arith.constant 8 : index
    %c0_213 = arith.constant 0 : index
    %160 = vector.load %arg3[%c11_210, %c0_211, %c8_212, %c0_213] : memref<14x1x88x8xbf16, #tpu.memory_space<vmem>>, vector<1x1x64x8xbf16>
    %161 = vector.shape_cast %160 : vector<1x1x64x8xbf16> to vector<64x8xbf16>
    %c0_214 = arith.constant 0 : index
    %c26 = arith.constant 26 : index
    %c0_215 = arith.constant 0 : index
    %c0_216 = arith.constant 0 : index
    %162 = vector.load %arg4[%c0_214, %c26, %c0_215, %c0_216] : memref<1x49x8x8xbf16, #tpu.memory_space<vmem>>, vector<1x1x8x8xbf16>
    %163 = vector.shape_cast %162 : vector<1x1x8x8xbf16> to vector<8x8xbf16>
    %cst_217 = arith.constant dense<0.000000e+00> : vector<64x8xf32>
    %164 = tpu.matmul %161, %163, %cst_217 {dimension_numbers = #tpu.dot_dimension_numbers<[1], [0], [0], [1], [0, 0, 1, 1], [], []>} : vector<64x8xbf16>, vector<8x8xbf16>, vector<64x8xf32> -> vector<64x8xf32>
    %165 = arith.addf %159, %164 : vector<64x8xf32>
    %c13_218 = arith.constant 13 : index
    %c0_219 = arith.constant 0 : index
    %c8_220 = arith.constant 8 : index
    %c0_221 = arith.constant 0 : index
    %166 = vector.load %arg3[%c13_218, %c0_219, %c8_220, %c0_221] : memref<14x1x88x8xbf16, #tpu.memory_space<vmem>>, vector<1x1x64x8xbf16>
    %167 = vector.shape_cast %166 : vector<1x1x64x8xbf16> to vector<64x8xbf16>
    %c0_222 = arith.constant 0 : index
    %c27 = arith.constant 27 : index
    %c0_223 = arith.constant 0 : index
    %c0_224 = arith.constant 0 : index
    %168 = vector.load %arg4[%c0_222, %c27, %c0_223, %c0_224] : memref<1x49x8x8xbf16, #tpu.memory_space<vmem>>, vector<1x1x8x8xbf16>
    %169 = vector.shape_cast %168 : vector<1x1x8x8xbf16> to vector<8x8xbf16>
    %cst_225 = arith.constant dense<0.000000e+00> : vector<64x8xf32>
    %170 = tpu.matmul %167, %169, %cst_225 {dimension_numbers = #tpu.dot_dimension_numbers<[1], [0], [0], [1], [0, 0, 1, 1], [], []>} : vector<64x8xbf16>, vector<8x8xbf16>, vector<64x8xf32> -> vector<64x8xf32>
    %171 = arith.addf %165, %170 : vector<64x8xf32>
    %c0_226 = arith.constant 0 : index
    %c0_227 = arith.constant 0 : index
    %c16_228 = arith.constant 16 : index
    %c0_229 = arith.constant 0 : index
    %172 = vector.load %arg3[%c0_226, %c0_227, %c16_228, %c0_229] : memref<14x1x88x8xbf16, #tpu.memory_space<vmem>>, vector<1x1x64x8xbf16>
    %173 = vector.shape_cast %172 : vector<1x1x64x8xbf16> to vector<64x8xbf16>
    %c0_230 = arith.constant 0 : index
    %c28 = arith.constant 28 : index
    %c0_231 = arith.constant 0 : index
    %c0_232 = arith.constant 0 : index
    %174 = vector.load %arg4[%c0_230, %c28, %c0_231, %c0_232] : memref<1x49x8x8xbf16, #tpu.memory_space<vmem>>, vector<1x1x8x8xbf16>
    %175 = vector.shape_cast %174 : vector<1x1x8x8xbf16> to vector<8x8xbf16>
    %cst_233 = arith.constant dense<0.000000e+00> : vector<64x8xf32>
    %176 = tpu.matmul %173, %175, %cst_233 {dimension_numbers = #tpu.dot_dimension_numbers<[1], [0], [0], [1], [0, 0, 1, 1], [], []>} : vector<64x8xbf16>, vector<8x8xbf16>, vector<64x8xf32> -> vector<64x8xf32>
    %177 = arith.addf %171, %176 : vector<64x8xf32>
    %c2_234 = arith.constant 2 : index
    %c0_235 = arith.constant 0 : index
    %c16_236 = arith.constant 16 : index
    %c0_237 = arith.constant 0 : index
    %178 = vector.load %arg3[%c2_234, %c0_235, %c16_236, %c0_237] : memref<14x1x88x8xbf16, #tpu.memory_space<vmem>>, vector<1x1x64x8xbf16>
    %179 = vector.shape_cast %178 : vector<1x1x64x8xbf16> to vector<64x8xbf16>
    %c0_238 = arith.constant 0 : index
    %c29 = arith.constant 29 : index
    %c0_239 = arith.constant 0 : index
    %c0_240 = arith.constant 0 : index
    %180 = vector.load %arg4[%c0_238, %c29, %c0_239, %c0_240] : memref<1x49x8x8xbf16, #tpu.memory_space<vmem>>, vector<1x1x8x8xbf16>
    %181 = vector.shape_cast %180 : vector<1x1x8x8xbf16> to vector<8x8xbf16>
    %cst_241 = arith.constant dense<0.000000e+00> : vector<64x8xf32>
    %182 = tpu.matmul %179, %181, %cst_241 {dimension_numbers = #tpu.dot_dimension_numbers<[1], [0], [0], [1], [0, 0, 1, 1], [], []>} : vector<64x8xbf16>, vector<8x8xbf16>, vector<64x8xf32> -> vector<64x8xf32>
    %183 = arith.addf %177, %182 : vector<64x8xf32>
    %c4_242 = arith.constant 4 : index
    %c0_243 = arith.constant 0 : index
    %c16_244 = arith.constant 16 : index
    %c0_245 = arith.constant 0 : index
    %184 = vector.load %arg3[%c4_242, %c0_243, %c16_244, %c0_245] : memref<14x1x88x8xbf16, #tpu.memory_space<vmem>>, vector<1x1x64x8xbf16>
    %185 = vector.shape_cast %184 : vector<1x1x64x8xbf16> to vector<64x8xbf16>
    %c0_246 = arith.constant 0 : index
    %c30 = arith.constant 30 : index
    %c0_247 = arith.constant 0 : index
    %c0_248 = arith.constant 0 : index
    %186 = vector.load %arg4[%c0_246, %c30, %c0_247, %c0_248] : memref<1x49x8x8xbf16, #tpu.memory_space<vmem>>, vector<1x1x8x8xbf16>
    %187 = vector.shape_cast %186 : vector<1x1x8x8xbf16> to vector<8x8xbf16>
    %cst_249 = arith.constant dense<0.000000e+00> : vector<64x8xf32>
    %188 = tpu.matmul %185, %187, %cst_249 {dimension_numbers = #tpu.dot_dimension_numbers<[1], [0], [0], [1], [0, 0, 1, 1], [], []>} : vector<64x8xbf16>, vector<8x8xbf16>, vector<64x8xf32> -> vector<64x8xf32>
    %189 = arith.addf %183, %188 : vector<64x8xf32>
    %c6_250 = arith.constant 6 : index
    %c0_251 = arith.constant 0 : index
    %c16_252 = arith.constant 16 : index
    %c0_253 = arith.constant 0 : index
    %190 = vector.load %arg3[%c6_250, %c0_251, %c16_252, %c0_253] : memref<14x1x88x8xbf16, #tpu.memory_space<vmem>>, vector<1x1x64x8xbf16>
    %191 = vector.shape_cast %190 : vector<1x1x64x8xbf16> to vector<64x8xbf16>
    %c0_254 = arith.constant 0 : index
    %c31 = arith.constant 31 : index
    %c0_255 = arith.constant 0 : index
    %c0_256 = arith.constant 0 : index
    %192 = vector.load %arg4[%c0_254, %c31, %c0_255, %c0_256] : memref<1x49x8x8xbf16, #tpu.memory_space<vmem>>, vector<1x1x8x8xbf16>
    %193 = vector.shape_cast %192 : vector<1x1x8x8xbf16> to vector<8x8xbf16>
    %cst_257 = arith.constant dense<0.000000e+00> : vector<64x8xf32>
    %194 = tpu.matmul %191, %193, %cst_257 {dimension_numbers = #tpu.dot_dimension_numbers<[1], [0], [0], [1], [0, 0, 1, 1], [], []>} : vector<64x8xbf16>, vector<8x8xbf16>, vector<64x8xf32> -> vector<64x8xf32>
    %195 = arith.addf %189, %194 : vector<64x8xf32>
    %c8_258 = arith.constant 8 : index
    %c0_259 = arith.constant 0 : index
    %c16_260 = arith.constant 16 : index
    %c0_261 = arith.constant 0 : index
    %196 = vector.load %arg3[%c8_258, %c0_259, %c16_260, %c0_261] : memref<14x1x88x8xbf16, #tpu.memory_space<vmem>>, vector<1x1x64x8xbf16>
    %197 = vector.shape_cast %196 : vector<1x1x64x8xbf16> to vector<64x8xbf16>
    %c0_262 = arith.constant 0 : index
    %c32 = arith.constant 32 : index
    %c0_263 = arith.constant 0 : index
    %c0_264 = arith.constant 0 : index
    %198 = vector.load %arg4[%c0_262, %c32, %c0_263, %c0_264] : memref<1x49x8x8xbf16, #tpu.memory_space<vmem>>, vector<1x1x8x8xbf16>
    %199 = vector.shape_cast %198 : vector<1x1x8x8xbf16> to vector<8x8xbf16>
    %cst_265 = arith.constant dense<0.000000e+00> : vector<64x8xf32>
    %200 = tpu.matmul %197, %199, %cst_265 {dimension_numbers = #tpu.dot_dimension_numbers<[1], [0], [0], [1], [0, 0, 1, 1], [], []>} : vector<64x8xbf16>, vector<8x8xbf16>, vector<64x8xf32> -> vector<64x8xf32>
    %201 = arith.addf %195, %200 : vector<64x8xf32>
    %c10_266 = arith.constant 10 : index
    %c0_267 = arith.constant 0 : index
    %c16_268 = arith.constant 16 : index
    %c0_269 = arith.constant 0 : index
    %202 = vector.load %arg3[%c10_266, %c0_267, %c16_268, %c0_269] : memref<14x1x88x8xbf16, #tpu.memory_space<vmem>>, vector<1x1x64x8xbf16>
    %203 = vector.shape_cast %202 : vector<1x1x64x8xbf16> to vector<64x8xbf16>
    %c0_270 = arith.constant 0 : index
    %c33 = arith.constant 33 : index
    %c0_271 = arith.constant 0 : index
    %c0_272 = arith.constant 0 : index
    %204 = vector.load %arg4[%c0_270, %c33, %c0_271, %c0_272] : memref<1x49x8x8xbf16, #tpu.memory_space<vmem>>, vector<1x1x8x8xbf16>
    %205 = vector.shape_cast %204 : vector<1x1x8x8xbf16> to vector<8x8xbf16>
    %cst_273 = arith.constant dense<0.000000e+00> : vector<64x8xf32>
    %206 = tpu.matmul %203, %205, %cst_273 {dimension_numbers = #tpu.dot_dimension_numbers<[1], [0], [0], [1], [0, 0, 1, 1], [], []>} : vector<64x8xbf16>, vector<8x8xbf16>, vector<64x8xf32> -> vector<64x8xf32>
    %207 = arith.addf %201, %206 : vector<64x8xf32>
    %c12_274 = arith.constant 12 : index
    %c0_275 = arith.constant 0 : index
    %c16_276 = arith.constant 16 : index
    %c0_277 = arith.constant 0 : index
    %208 = vector.load %arg3[%c12_274, %c0_275, %c16_276, %c0_277] : memref<14x1x88x8xbf16, #tpu.memory_space<vmem>>, vector<1x1x64x8xbf16>
    %209 = vector.shape_cast %208 : vector<1x1x64x8xbf16> to vector<64x8xbf16>
    %c0_278 = arith.constant 0 : index
    %c34 = arith.constant 34 : index
    %c0_279 = arith.constant 0 : index
    %c0_280 = arith.constant 0 : index
    %210 = vector.load %arg4[%c0_278, %c34, %c0_279, %c0_280] : memref<1x49x8x8xbf16, #tpu.memory_space<vmem>>, vector<1x1x8x8xbf16>
    %211 = vector.shape_cast %210 : vector<1x1x8x8xbf16> to vector<8x8xbf16>
    %cst_281 = arith.constant dense<0.000000e+00> : vector<64x8xf32>
    %212 = tpu.matmul %209, %211, %cst_281 {dimension_numbers = #tpu.dot_dimension_numbers<[1], [0], [0], [1], [0, 0, 1, 1], [], []>} : vector<64x8xbf16>, vector<8x8xbf16>, vector<64x8xf32> -> vector<64x8xf32>
    %213 = arith.addf %207, %212 : vector<64x8xf32>
    %c1_282 = arith.constant 1 : index
    %c0_283 = arith.constant 0 : index
    %c16_284 = arith.constant 16 : index
    %c0_285 = arith.constant 0 : index
    %214 = vector.load %arg3[%c1_282, %c0_283, %c16_284, %c0_285] : memref<14x1x88x8xbf16, #tpu.memory_space<vmem>>, vector<1x1x64x8xbf16>
    %215 = vector.shape_cast %214 : vector<1x1x64x8xbf16> to vector<64x8xbf16>
    %c0_286 = arith.constant 0 : index
    %c35 = arith.constant 35 : index
    %c0_287 = arith.constant 0 : index
    %c0_288 = arith.constant 0 : index
    %216 = vector.load %arg4[%c0_286, %c35, %c0_287, %c0_288] : memref<1x49x8x8xbf16, #tpu.memory_space<vmem>>, vector<1x1x8x8xbf16>
    %217 = vector.shape_cast %216 : vector<1x1x8x8xbf16> to vector<8x8xbf16>
    %cst_289 = arith.constant dense<0.000000e+00> : vector<64x8xf32>
    %218 = tpu.matmul %215, %217, %cst_289 {dimension_numbers = #tpu.dot_dimension_numbers<[1], [0], [0], [1], [0, 0, 1, 1], [], []>} : vector<64x8xbf16>, vector<8x8xbf16>, vector<64x8xf32> -> vector<64x8xf32>
    %219 = arith.addf %213, %218 : vector<64x8xf32>
    %c3_290 = arith.constant 3 : index
    %c0_291 = arith.constant 0 : index
    %c16_292 = arith.constant 16 : index
    %c0_293 = arith.constant 0 : index
    %220 = vector.load %arg3[%c3_290, %c0_291, %c16_292, %c0_293] : memref<14x1x88x8xbf16, #tpu.memory_space<vmem>>, vector<1x1x64x8xbf16>
    %221 = vector.shape_cast %220 : vector<1x1x64x8xbf16> to vector<64x8xbf16>
    %c0_294 = arith.constant 0 : index
    %c36 = arith.constant 36 : index
    %c0_295 = arith.constant 0 : index
    %c0_296 = arith.constant 0 : index
    %222 = vector.load %arg4[%c0_294, %c36, %c0_295, %c0_296] : memref<1x49x8x8xbf16, #tpu.memory_space<vmem>>, vector<1x1x8x8xbf16>
    %223 = vector.shape_cast %222 : vector<1x1x8x8xbf16> to vector<8x8xbf16>
    %cst_297 = arith.constant dense<0.000000e+00> : vector<64x8xf32>
    %224 = tpu.matmul %221, %223, %cst_297 {dimension_numbers = #tpu.dot_dimension_numbers<[1], [0], [0], [1], [0, 0, 1, 1], [], []>} : vector<64x8xbf16>, vector<8x8xbf16>, vector<64x8xf32> -> vector<64x8xf32>
    %225 = arith.addf %219, %224 : vector<64x8xf32>
    %c5_298 = arith.constant 5 : index
    %c0_299 = arith.constant 0 : index
    %c16_300 = arith.constant 16 : index
    %c0_301 = arith.constant 0 : index
    %226 = vector.load %arg3[%c5_298, %c0_299, %c16_300, %c0_301] : memref<14x1x88x8xbf16, #tpu.memory_space<vmem>>, vector<1x1x64x8xbf16>
    %227 = vector.shape_cast %226 : vector<1x1x64x8xbf16> to vector<64x8xbf16>
    %c0_302 = arith.constant 0 : index
    %c37 = arith.constant 37 : index
    %c0_303 = arith.constant 0 : index
    %c0_304 = arith.constant 0 : index
    %228 = vector.load %arg4[%c0_302, %c37, %c0_303, %c0_304] : memref<1x49x8x8xbf16, #tpu.memory_space<vmem>>, vector<1x1x8x8xbf16>
    %229 = vector.shape_cast %228 : vector<1x1x8x8xbf16> to vector<8x8xbf16>
    %cst_305 = arith.constant dense<0.000000e+00> : vector<64x8xf32>
    %230 = tpu.matmul %227, %229, %cst_305 {dimension_numbers = #tpu.dot_dimension_numbers<[1], [0], [0], [1], [0, 0, 1, 1], [], []>} : vector<64x8xbf16>, vector<8x8xbf16>, vector<64x8xf32> -> vector<64x8xf32>
    %231 = arith.addf %225, %230 : vector<64x8xf32>
    %c7_306 = arith.constant 7 : index
    %c0_307 = arith.constant 0 : index
    %c16_308 = arith.constant 16 : index
    %c0_309 = arith.constant 0 : index
    %232 = vector.load %arg3[%c7_306, %c0_307, %c16_308, %c0_309] : memref<14x1x88x8xbf16, #tpu.memory_space<vmem>>, vector<1x1x64x8xbf16>
    %233 = vector.shape_cast %232 : vector<1x1x64x8xbf16> to vector<64x8xbf16>
    %c0_310 = arith.constant 0 : index
    %c38 = arith.constant 38 : index
    %c0_311 = arith.constant 0 : index
    %c0_312 = arith.constant 0 : index
    %234 = vector.load %arg4[%c0_310, %c38, %c0_311, %c0_312] : memref<1x49x8x8xbf16, #tpu.memory_space<vmem>>, vector<1x1x8x8xbf16>
    %235 = vector.shape_cast %234 : vector<1x1x8x8xbf16> to vector<8x8xbf16>
    %cst_313 = arith.constant dense<0.000000e+00> : vector<64x8xf32>
    %236 = tpu.matmul %233, %235, %cst_313 {dimension_numbers = #tpu.dot_dimension_numbers<[1], [0], [0], [1], [0, 0, 1, 1], [], []>} : vector<64x8xbf16>, vector<8x8xbf16>, vector<64x8xf32> -> vector<64x8xf32>
    %237 = arith.addf %231, %236 : vector<64x8xf32>
    %c9_314 = arith.constant 9 : index
    %c0_315 = arith.constant 0 : index
    %c16_316 = arith.constant 16 : index
    %c0_317 = arith.constant 0 : index
    %238 = vector.load %arg3[%c9_314, %c0_315, %c16_316, %c0_317] : memref<14x1x88x8xbf16, #tpu.memory_space<vmem>>, vector<1x1x64x8xbf16>
    %239 = vector.shape_cast %238 : vector<1x1x64x8xbf16> to vector<64x8xbf16>
    %c0_318 = arith.constant 0 : index
    %c39 = arith.constant 39 : index
    %c0_319 = arith.constant 0 : index
    %c0_320 = arith.constant 0 : index
    %240 = vector.load %arg4[%c0_318, %c39, %c0_319, %c0_320] : memref<1x49x8x8xbf16, #tpu.memory_space<vmem>>, vector<1x1x8x8xbf16>
    %241 = vector.shape_cast %240 : vector<1x1x8x8xbf16> to vector<8x8xbf16>
    %cst_321 = arith.constant dense<0.000000e+00> : vector<64x8xf32>
    %242 = tpu.matmul %239, %241, %cst_321 {dimension_numbers = #tpu.dot_dimension_numbers<[1], [0], [0], [1], [0, 0, 1, 1], [], []>} : vector<64x8xbf16>, vector<8x8xbf16>, vector<64x8xf32> -> vector<64x8xf32>
    %243 = arith.addf %237, %242 : vector<64x8xf32>
    %c11_322 = arith.constant 11 : index
    %c0_323 = arith.constant 0 : index
    %c16_324 = arith.constant 16 : index
    %c0_325 = arith.constant 0 : index
    %244 = vector.load %arg3[%c11_322, %c0_323, %c16_324, %c0_325] : memref<14x1x88x8xbf16, #tpu.memory_space<vmem>>, vector<1x1x64x8xbf16>
    %245 = vector.shape_cast %244 : vector<1x1x64x8xbf16> to vector<64x8xbf16>
    %c0_326 = arith.constant 0 : index
    %c40 = arith.constant 40 : index
    %c0_327 = arith.constant 0 : index
    %c0_328 = arith.constant 0 : index
    %246 = vector.load %arg4[%c0_326, %c40, %c0_327, %c0_328] : memref<1x49x8x8xbf16, #tpu.memory_space<vmem>>, vector<1x1x8x8xbf16>
    %247 = vector.shape_cast %246 : vector<1x1x8x8xbf16> to vector<8x8xbf16>
    %cst_329 = arith.constant dense<0.000000e+00> : vector<64x8xf32>
    %248 = tpu.matmul %245, %247, %cst_329 {dimension_numbers = #tpu.dot_dimension_numbers<[1], [0], [0], [1], [0, 0, 1, 1], [], []>} : vector<64x8xbf16>, vector<8x8xbf16>, vector<64x8xf32> -> vector<64x8xf32>
    %249 = arith.addf %243, %248 : vector<64x8xf32>
    %c13_330 = arith.constant 13 : index
    %c0_331 = arith.constant 0 : index
    %c16_332 = arith.constant 16 : index
    %c0_333 = arith.constant 0 : index
    %250 = vector.load %arg3[%c13_330, %c0_331, %c16_332, %c0_333] : memref<14x1x88x8xbf16, #tpu.memory_space<vmem>>, vector<1x1x64x8xbf16>
    %251 = vector.shape_cast %250 : vector<1x1x64x8xbf16> to vector<64x8xbf16>
    %c0_334 = arith.constant 0 : index
    %c41 = arith.constant 41 : index
    %c0_335 = arith.constant 0 : index
    %c0_336 = arith.constant 0 : index
    %252 = vector.load %arg4[%c0_334, %c41, %c0_335, %c0_336] : memref<1x49x8x8xbf16, #tpu.memory_space<vmem>>, vector<1x1x8x8xbf16>
    %253 = vector.shape_cast %252 : vector<1x1x8x8xbf16> to vector<8x8xbf16>
    %cst_337 = arith.constant dense<0.000000e+00> : vector<64x8xf32>
    %254 = tpu.matmul %251, %253, %cst_337 {dimension_numbers = #tpu.dot_dimension_numbers<[1], [0], [0], [1], [0, 0, 1, 1], [], []>} : vector<64x8xbf16>, vector<8x8xbf16>, vector<64x8xf32> -> vector<64x8xf32>
    %255 = arith.addf %249, %254 : vector<64x8xf32>
    %c0_338 = arith.constant 0 : index
    %c0_339 = arith.constant 0 : index
    %c24_340 = arith.constant 24 : index
    %c0_341 = arith.constant 0 : index
    %256 = vector.load %arg3[%c0_338, %c0_339, %c24_340, %c0_341] : memref<14x1x88x8xbf16, #tpu.memory_space<vmem>>, vector<1x1x64x8xbf16>
    %257 = vector.shape_cast %256 : vector<1x1x64x8xbf16> to vector<64x8xbf16>
    %c0_342 = arith.constant 0 : index
    %c42 = arith.constant 42 : index
    %c0_343 = arith.constant 0 : index
    %c0_344 = arith.constant 0 : index
    %258 = vector.load %arg4[%c0_342, %c42, %c0_343, %c0_344] : memref<1x49x8x8xbf16, #tpu.memory_space<vmem>>, vector<1x1x8x8xbf16>
    %259 = vector.shape_cast %258 : vector<1x1x8x8xbf16> to vector<8x8xbf16>
    %cst_345 = arith.constant dense<0.000000e+00> : vector<64x8xf32>
    %260 = tpu.matmul %257, %259, %cst_345 {dimension_numbers = #tpu.dot_dimension_numbers<[1], [0], [0], [1], [0, 0, 1, 1], [], []>} : vector<64x8xbf16>, vector<8x8xbf16>, vector<64x8xf32> -> vector<64x8xf32>
    %261 = arith.addf %255, %260 : vector<64x8xf32>
    %c2_346 = arith.constant 2 : index
    %c0_347 = arith.constant 0 : index
    %c24_348 = arith.constant 24 : index
    %c0_349 = arith.constant 0 : index
    %262 = vector.load %arg3[%c2_346, %c0_347, %c24_348, %c0_349] : memref<14x1x88x8xbf16, #tpu.memory_space<vmem>>, vector<1x1x64x8xbf16>
    %263 = vector.shape_cast %262 : vector<1x1x64x8xbf16> to vector<64x8xbf16>
    %c0_350 = arith.constant 0 : index
    %c43 = arith.constant 43 : index
    %c0_351 = arith.constant 0 : index
    %c0_352 = arith.constant 0 : index
    %264 = vector.load %arg4[%c0_350, %c43, %c0_351, %c0_352] : memref<1x49x8x8xbf16, #tpu.memory_space<vmem>>, vector<1x1x8x8xbf16>
    %265 = vector.shape_cast %264 : vector<1x1x8x8xbf16> to vector<8x8xbf16>
    %cst_353 = arith.constant dense<0.000000e+00> : vector<64x8xf32>
    %266 = tpu.matmul %263, %265, %cst_353 {dimension_numbers = #tpu.dot_dimension_numbers<[1], [0], [0], [1], [0, 0, 1, 1], [], []>} : vector<64x8xbf16>, vector<8x8xbf16>, vector<64x8xf32> -> vector<64x8xf32>
    %267 = arith.addf %261, %266 : vector<64x8xf32>
    %c4_354 = arith.constant 4 : index
    %c0_355 = arith.constant 0 : index
    %c24_356 = arith.constant 24 : index
    %c0_357 = arith.constant 0 : index
    %268 = vector.load %arg3[%c4_354, %c0_355, %c24_356, %c0_357] : memref<14x1x88x8xbf16, #tpu.memory_space<vmem>>, vector<1x1x64x8xbf16>
    %269 = vector.shape_cast %268 : vector<1x1x64x8xbf16> to vector<64x8xbf16>
    %c0_358 = arith.constant 0 : index
    %c44 = arith.constant 44 : index
    %c0_359 = arith.constant 0 : index
    %c0_360 = arith.constant 0 : index
    %270 = vector.load %arg4[%c0_358, %c44, %c0_359, %c0_360] : memref<1x49x8x8xbf16, #tpu.memory_space<vmem>>, vector<1x1x8x8xbf16>
    %271 = vector.shape_cast %270 : vector<1x1x8x8xbf16> to vector<8x8xbf16>
    %cst_361 = arith.constant dense<0.000000e+00> : vector<64x8xf32>
    %272 = tpu.matmul %269, %271, %cst_361 {dimension_numbers = #tpu.dot_dimension_numbers<[1], [0], [0], [1], [0, 0, 1, 1], [], []>} : vector<64x8xbf16>, vector<8x8xbf16>, vector<64x8xf32> -> vector<64x8xf32>
    %273 = arith.addf %267, %272 : vector<64x8xf32>
    %c6_362 = arith.constant 6 : index
    %c0_363 = arith.constant 0 : index
    %c24_364 = arith.constant 24 : index
    %c0_365 = arith.constant 0 : index
    %274 = vector.load %arg3[%c6_362, %c0_363, %c24_364, %c0_365] : memref<14x1x88x8xbf16, #tpu.memory_space<vmem>>, vector<1x1x64x8xbf16>
    %275 = vector.shape_cast %274 : vector<1x1x64x8xbf16> to vector<64x8xbf16>
    %c0_366 = arith.constant 0 : index
    %c45 = arith.constant 45 : index
    %c0_367 = arith.constant 0 : index
    %c0_368 = arith.constant 0 : index
    %276 = vector.load %arg4[%c0_366, %c45, %c0_367, %c0_368] : memref<1x49x8x8xbf16, #tpu.memory_space<vmem>>, vector<1x1x8x8xbf16>
    %277 = vector.shape_cast %276 : vector<1x1x8x8xbf16> to vector<8x8xbf16>
    %cst_369 = arith.constant dense<0.000000e+00> : vector<64x8xf32>
    %278 = tpu.matmul %275, %277, %cst_369 {dimension_numbers = #tpu.dot_dimension_numbers<[1], [0], [0], [1], [0, 0, 1, 1], [], []>} : vector<64x8xbf16>, vector<8x8xbf16>, vector<64x8xf32> -> vector<64x8xf32>
    %279 = arith.addf %273, %278 : vector<64x8xf32>
    %c8_370 = arith.constant 8 : index
    %c0_371 = arith.constant 0 : index
    %c24_372 = arith.constant 24 : index
    %c0_373 = arith.constant 0 : index
    %280 = vector.load %arg3[%c8_370, %c0_371, %c24_372, %c0_373] : memref<14x1x88x8xbf16, #tpu.memory_space<vmem>>, vector<1x1x64x8xbf16>
    %281 = vector.shape_cast %280 : vector<1x1x64x8xbf16> to vector<64x8xbf16>
    %c0_374 = arith.constant 0 : index
    %c46 = arith.constant 46 : index
    %c0_375 = arith.constant 0 : index
    %c0_376 = arith.constant 0 : index
    %282 = vector.load %arg4[%c0_374, %c46, %c0_375, %c0_376] : memref<1x49x8x8xbf16, #tpu.memory_space<vmem>>, vector<1x1x8x8xbf16>
    %283 = vector.shape_cast %282 : vector<1x1x8x8xbf16> to vector<8x8xbf16>
    %cst_377 = arith.constant dense<0.000000e+00> : vector<64x8xf32>
    %284 = tpu.matmul %281, %283, %cst_377 {dimension_numbers = #tpu.dot_dimension_numbers<[1], [0], [0], [1], [0, 0, 1, 1], [], []>} : vector<64x8xbf16>, vector<8x8xbf16>, vector<64x8xf32> -> vector<64x8xf32>
    %285 = arith.addf %279, %284 : vector<64x8xf32>
    %c10_378 = arith.constant 10 : index
    %c0_379 = arith.constant 0 : index
    %c24_380 = arith.constant 24 : index
    %c0_381 = arith.constant 0 : index
    %286 = vector.load %arg3[%c10_378, %c0_379, %c24_380, %c0_381] : memref<14x1x88x8xbf16, #tpu.memory_space<vmem>>, vector<1x1x64x8xbf16>
    %287 = vector.shape_cast %286 : vector<1x1x64x8xbf16> to vector<64x8xbf16>
    %c0_382 = arith.constant 0 : index
    %c47 = arith.constant 47 : index
    %c0_383 = arith.constant 0 : index
    %c0_384 = arith.constant 0 : index
    %288 = vector.load %arg4[%c0_382, %c47, %c0_383, %c0_384] : memref<1x49x8x8xbf16, #tpu.memory_space<vmem>>, vector<1x1x8x8xbf16>
    %289 = vector.shape_cast %288 : vector<1x1x8x8xbf16> to vector<8x8xbf16>
    %cst_385 = arith.constant dense<0.000000e+00> : vector<64x8xf32>
    %290 = tpu.matmul %287, %289, %cst_385 {dimension_numbers = #tpu.dot_dimension_numbers<[1], [0], [0], [1], [0, 0, 1, 1], [], []>} : vector<64x8xbf16>, vector<8x8xbf16>, vector<64x8xf32> -> vector<64x8xf32>
    %291 = arith.addf %285, %290 : vector<64x8xf32>
    %c12_386 = arith.constant 12 : index
    %c0_387 = arith.constant 0 : index
    %c24_388 = arith.constant 24 : index
    %c0_389 = arith.constant 0 : index
    %292 = vector.load %arg3[%c12_386, %c0_387, %c24_388, %c0_389] : memref<14x1x88x8xbf16, #tpu.memory_space<vmem>>, vector<1x1x64x8xbf16>
    %293 = vector.shape_cast %292 : vector<1x1x64x8xbf16> to vector<64x8xbf16>
    %c0_390 = arith.constant 0 : index
    %c48 = arith.constant 48 : index
    %c0_391 = arith.constant 0 : index
    %c0_392 = arith.constant 0 : index
    %294 = vector.load %arg4[%c0_390, %c48, %c0_391, %c0_392] : memref<1x49x8x8xbf16, #tpu.memory_space<vmem>>, vector<1x1x8x8xbf16>
    %295 = vector.shape_cast %294 : vector<1x1x8x8xbf16> to vector<8x8xbf16>
    %cst_393 = arith.constant dense<0.000000e+00> : vector<64x8xf32>
    %296 = tpu.matmul %293, %295, %cst_393 {dimension_numbers = #tpu.dot_dimension_numbers<[1], [0], [0], [1], [0, 0, 1, 1], [], []>} : vector<64x8xbf16>, vector<8x8xbf16>, vector<64x8xf32> -> vector<64x8xf32>
    %297 = arith.addf %291, %296 : vector<64x8xf32>
    %c0_394 = arith.constant 0 : index
    %c0_395 = arith.constant 0 : index
    %298 = vector.load %arg7[%c0_394, %c0_395] : memref<64x8xf32, #tpu.memory_space<vmem>>, vector<64x8xf32>
    tpu.vector_store %arg7[%c0_394, %c0_395], %297 {strides = array<i32>} : memref<64x8xf32, #tpu.memory_space<vmem>>, vector<64x8xf32>,
    %c6_i32 = arith.constant 6 : i32
    %299 = arith.cmpi eq, %arg2, %c6_i32 : i32
    %300 = arith.extui %299 : i1 to i32
    %c0_i32_396 = arith.constant 0 : i32
    %301 = arith.cmpi ne, %300, %c0_i32_396 : i32
    scf.if %301 {
      %c0_397 = arith.constant 0 : index
      %c0_398 = arith.constant 0 : index
      %302 = vector.load %arg7[%c0_397, %c0_398] : memref<64x8xf32, #tpu.memory_space<vmem>>, vector<64x8xf32>
      %c0_399 = arith.constant 0 : index
      %c0_400 = arith.constant 0 : index
      %303 = vector.load %arg5[%c0_399, %c0_400] : memref<1x8xf32, #tpu.memory_space<vmem>>, vector<1x8xf32>
      %304 = vector.broadcast %303 : vector<1x8xf32> to vector<64x8xf32>
      %305 = arith.addf %302, %304 : vector<64x8xf32>
      %cst_401 = arith.constant 0.000000e+00 : f32
      %306 = vector.broadcast %cst_401 : f32 to vector<64x8xf32>
      %307 = arith.maximumf %305, %306 : vector<64x8xf32>
      %308 = arith.truncf %307 : vector<64x8xf32> to vector<64x8xbf16>
      %c0_402 = arith.constant 0 : index
      %c0_403 = arith.constant 0 : index
      %c0_404 = arith.constant 0 : index
      %309 = vector.load %arg6[%c0_402, %c0_403, %c0_404] : memref<1x64x8xbf16, #tpu.memory_space<vmem>>, vector<1x64x8xbf16>
      %310 = vector.shape_cast %309 : vector<1x64x8xbf16> to vector<64x8xbf16>
      %311 = vector.shape_cast %308 : vector<64x8xbf16> to vector<1x64x8xbf16>
      tpu.vector_store %arg6[%c0_402, %c0_403, %c0_404], %311 {strides = array<i32>} : memref<1x64x8xbf16, #tpu.memory_space<vmem>>, vector<1x64x8xbf16>,
    } else {
    }
    return
  }
  func.func @transform_0(%arg0: i32, %arg1: i32, %arg2: i32) -> (i32, i32, i32, i32) {
    %c22_i32 = arith.constant 22 : i32
    %0 = arith.muli %arg0, %c22_i32 : i32
    %c2_i32 = arith.constant 2 : i32
    %1 = arith.muli %arg1, %c2_i32 : i32
    %2 = arith.addi %0, %1 : i32
    %3 = arith.addi %2, %arg2 : i32
    %c0_i32 = arith.constant 0 : i32
    %c0_i32_0 = arith.constant 0 : i32
    %c0_i32_1 = arith.constant 0 : i32
    %c0_i32_2 = arith.constant 0 : i32
    return %c0_i32, %3, %c0_i32_0, %c0_i32_1 : i32, i32, i32, i32
  }
  func.func @transform_1(%arg0: i32, %arg1: i32, %arg2: i32) -> (i32, i32, i32, i32) {
    %c0_i32 = arith.constant 0 : i32
    %c0_i32_0 = arith.constant 0 : i32
    %c0_i32_1 = arith.constant 0 : i32
    %c0_i32_2 = arith.constant 0 : i32
    return %arg2, %c0_i32, %c0_i32_0, %c0_i32_1 : i32, i32, i32, i32
  }
  func.func @transform_2(%arg0: i32, %arg1: i32, %arg2: i32) -> (i32, i32) {
    %c0_i32 = arith.constant 0 : i32
    %c0_i32_0 = arith.constant 0 : i32
    %c0_i32_1 = arith.constant 0 : i32
    return %c0_i32, %c0_i32_0 : i32, i32
  }
  func.func @transform_3(%arg0: i32, %arg1: i32, %arg2: i32) -> (i32, i32, i32) {
    %c8_i32 = arith.constant 8 : i32
    %0 = arith.muli %arg0, %c8_i32 : i32
    %1 = arith.addi %0, %arg1 : i32
    %c0_i32 = arith.constant 0 : i32
    %c0_i32_0 = arith.constant 0 : i32
    %c0_i32_1 = arith.constant 0 : i32
    return %1, %c0_i32, %c0_i32_0 : i32, i32, i32
  }
}

</mosaic_0001>

<bundles_post_ra>
// kernel: tpu_custom_call.1
= control target key start
LH: loop header
LB: loop body
LE: loop exit
PB: predicated region body
PF: predicated region fallthrough
CT: control target
= control target key end

     0   :  { %s8885_s12 = smov 0   ;;  %s8887_s13 = smov 0   ;;  %s9915_s0 = inlined_call_operand.vmem [shape: bf16[14,44,88,8], index: 0, kind: input, shape index: {}]   ;;  %s9916_s1 = inlined_call_operand.vmem [shape: bf16[7,49,8,8], index: 1, kind: input, shape index: {}]   ;;  %s9917_s2 = inlined_call_operand.vmem [shape: f32[1,8], index: 2, kind: input, shape index: {}]   ;;  %s9918_s3 = inlined_call_operand.vmem [shape: bf16[16,64,8], index: 3, kind: output, shape index: {}]  }
   0x1   :  { %s8889_s14 = smov 0   ;;  %s8891_s15 = smov 0  }
   0x2   :  { %s8893_s16 = smov 0   ;;  %s8895_s17 = smov 0  }
   0x3   :  { %s8897_s18 = smov 0   ;;  %s8899_s19 = smov 0  }
   0x4   :  { %s8901_s20 = smov 0  }
   0x5 LB: > { %s25_s21 = sadd.s32 1, %s8850_s17  ;;  %s28_s22 = sadd.s32 1, %s8854_s18  ;;  %s8862_s20 = sphi %s8901_s20, %s13_s20   ;;  %s8858_s19 = sphi %s8899_s19, %s9947_s19   ;;  %s8854_s18 = sphi %s8897_s18, %s9946_s18   ;;  %s8850_s17 = sphi %s8895_s17, %s9945_s17   ;;  %s8846_s16 = sphi %s8893_s16, %s9944_s16   ;;  %s8842_s15 = sphi %s8891_s15, %s9943_s15   ;;  %s8838_s14 = sphi %s8889_s14, %s9942_s14   ;;  %s8834_s13 = sphi %s8887_s13, %s9941_s13   ;;  %s8830_s12 = sphi %s8885_s12, %s9940_s12  }
   0x6   : > { %p26_p0 = scmp.ge.s32.totalorder %s25_s21, 7  ;;  %s32_s23 = sadd.s32 1, %s8858_s19 }
   0x7   : > { %s36_s24 = smul.u32 22, %s8858_s19  ;;  %s6897_s25 = sshll.u32 %s8854_s18, 1 }
   0x8   : > { %s9949_s22 = smov (!%p26_p0, %s28_s22), %s8854_s18  ;;  %s9951_s21 = smov (%p26_p0, %s25_s21), 0 }
   0x9   : > { %p30_p1 = scmp.ge.s32.totalorder %s9949_s22, 8  ;;  %p54_p2 = scmp.ne.s32.totalorder %s8834_s13, %s8830_s12 }
   0xa   : > { %p55_p3 = scmp.eq.s32.totalorder %s8862_s20, 0  ;;  %s38_s27 = sadd.s32 %s6897_s25, %s36_s24 }
   0xb   : > { %s9953_s22 = smov (%p30_p1, %s9949_s22), 0  ;;  %s9955_s23 = smov (!%p30_p1, %s32_s23), %s8858_s19 }
   0xc   : > { %p8944_p4 = por %p55_p3, %p54_p2  ;;  %p34_p5 = scmp.ge.s32.totalorder %s9955_s23, 2 }
   0xd   : > { %s6898_s28 = sshll.u32 %s9953_s22, 1  ;;  %s39_s30 = sadd.s32 %s8850_s17, %s38_s27 }
   0xe   : > { %s9957_s23 = smov (%p34_p5, %s9955_s23), 0  ;;  %s47_s7 = sadd.s32 1, %s8834_s13 }
   0xf   : > { %s40_s29 = smul.u32 22, %s9957_s23  ;;  %p6902_p7 = scmp.ge.s32.totalorder %s8862_s20, 112 }
  0x11   : > { %s42_s4 = sadd.s32 %s6898_s28, %s40_s29 }
  0x12   : > { %s43_s5 = sadd.s32 %s42_s4, %s9951_s21  ;;  %160 = sbr.rel (%p6902_p7) target bundleno = 70 (0x46), region = 20 }
  0x13   : > { %s44_s6 = ssub.s32 %s39_s30, %s43_s5 }
  0x14   : > { %p45_p6 = scmp.eq.s32.totalorder %s44_s6, 0 }
  0x16   : > { %s8956_s8 = scalar_select %p45_p6, %s8834_s13, %s47_s7  }
  0x17   : > { %163 = sbr.rel (!%p8944_p4) target bundleno = 70 (0x46), region = 24  ;;  %s165_s9 = sand.u32 (%p8944_p4), 1, %s8834_s13  }
  0x18   : > { %s8520_s10 = smul.u32 (%p8944_p4), 44, %s39_s30 }
  0x19   : > { %s8519_s11 = smul.u32 (%p8944_p4), 616, %s165_s9 }
  0x1a   : > { %s8965_s27 = scalar_lea.vmem (%p8944_p4), %s9915_s0, %s8520_s10 }
  0x1b   : > { %v191_v0 = vld [vmem:[%s8965_s27] sm:$0xff] (%p8944_p4)   ;;  %v195_v1 = vld [vmem:[%s8965_s27 + $0x8] sm:$0xff] (%p8944_p4)   ;;  %v199_v2 = vld [vmem:[%s8965_s27 + $0x10] sm:$0xff] (%p8944_p4)   ;;  %s8970_s26 = scalar_lea.vmem (%p8944_p4), [#allocation3], %s8519_s11 }
  0x1c   : > { %192 = vst [vmem:[%s8970_s26] sm:$0xff] %v191_v0   ;;  %196 = vst [vmem:[%s8970_s26 + $0x8] sm:$0xff] %v195_v1   ;;  %v203_v3 = vld [vmem:[%s8965_s27 + $0x18] sm:$0xff]   ;;  %v207_v4 = vld [vmem:[%s8965_s27 + $0x20] sm:$0xff]  }
  0x1d   : > { %200 = vst [vmem:[%s8970_s26 + $0x10] sm:$0xff] %v199_v2   ;;  %v211_v5 = vld [vmem:[%s8965_s27 + $0x28] sm:$0xf]  ;;  %204 = vst [vmem:[%s8970_s26 + $0x18] sm:$0xff] %v203_v3   ;;  %v213_v6 = vld [vmem:[%s8965_s27 + $0x790] sm:$0xff]  }
  0x1e   : > { %208 = vst [vmem:[%s8970_s26 + $0x20] sm:$0xff] %v207_v4   ;;  %212 = vst [vmem:[%s8970_s26 + $0x28] sm:$0xf] %v211_v5  ;;  %v217_v7 = vld [vmem:[%s8965_s27 + $0x798] sm:$0xff]   ;;  %v221_v8 = vld [vmem:[%s8965_s27 + $0x7a0] sm:$0xff]  }
  0x1f   : > { %214 = vst [vmem:[%s8970_s26 + $0x2c] sm:$0xff] %v213_v6   ;;  %218 = vst [vmem:[%s8970_s26 + $0x34] sm:$0xff] %v217_v7   ;;  %v225_v9 = vld [vmem:[%s8965_s27 + $0x7a8] sm:$0xff]   ;;  %v229_v10 = vld [vmem:[%s8965_s27 + $0x7b0] sm:$0xff]  }
  0x20   : > { %222 = vst [vmem:[%s8970_s26 + $0x3c] sm:$0xff] %v221_v8   ;;  %v233_v11 = vld [vmem:[%s8965_s27 + $0x7b8] sm:$0xf]  ;;  %226 = vst [vmem:[%s8970_s26 + $0x44] sm:$0xff] %v225_v9   ;;  %v235_v12 = vld [vmem:[%s8965_s27 + $0xf20] sm:$0xff]  }
  0x21   : > { %230 = vst [vmem:[%s8970_s26 + $0x4c] sm:$0xff] %v229_v10   ;;  %234 = vst [vmem:[%s8970_s26 + $0x54] sm:$0xf] %v233_v11  ;;  %v239_v13 = vld [vmem:[%s8965_s27 + $0xf28] sm:$0xff]   ;;  %v243_v14 = vld [vmem:[%s8965_s27 + $0xf30] sm:$0xff]  }
  0x22   : > { %236 = vst [vmem:[%s8970_s26 + $0x58] sm:$0xff] %v235_v12   ;;  %240 = vst [vmem:[%s8970_s26 + $0x60] sm:$0xff] %v239_v13   ;;  %v247_v15 = vld [vmem:[%s8965_s27 + $0xf38] sm:$0xff]   ;;  %v251_v16 = vld [vmem:[%s8965_s27 + $0xf40] sm:$0xff]  }
  0x23   : > { %244 = vst [vmem:[%s8970_s26 + $0x68] sm:$0xff] %v243_v14   ;;  %v255_v17 = vld [vmem:[%s8965_s27 + $0xf48] sm:$0xf]  ;;  %248 = vst [vmem:[%s8970_s26 + $0x70] sm:$0xff] %v247_v15   ;;  %v257_v18 = vld [vmem:[%s8965_s27 + $0x16b0] sm:$0xff]  }
  0x24   : > { %252 = vst [vmem:[%s8970_s26 + $0x78] sm:$0xff] %v251_v16   ;;  %256 = vst [vmem:[%s8970_s26 + $0x80] sm:$0xf] %v255_v17  ;;  %v261_v19 = vld [vmem:[%s8965_s27 + $0x16b8] sm:$0xff]   ;;  %v265_v20 = vld [vmem:[%s8965_s27 + $0x16c0] sm:$0xff]  }
  0x25   : > { %258 = vst [vmem:[%s8970_s26 + $0x84] sm:$0xff] %v257_v18   ;;  %262 = vst [vmem:[%s8970_s26 + $0x8c] sm:$0xff] %v261_v19   ;;  %v269_v21 = vld [vmem:[%s8965_s27 + $0x16c8] sm:$0xff]   ;;  %v273_v22 = vld [vmem:[%s8965_s27 + $0x16d0] sm:$0xff]  }
  0x26   : > { %266 = vst [vmem:[%s8970_s26 + $0x94] sm:$0xff] %v265_v20   ;;  %v277_v23 = vld [vmem:[%s8965_s27 + $0x16d8] sm:$0xf]  ;;  %270 = vst [vmem:[%s8970_s26 + $0x9c] sm:$0xff] %v269_v21   ;;  %v279_v24 = vld [vmem:[%s8965_s27 + $0x1e40] sm:$0xff]  }
  0x27   : > { %274 = vst [vmem:[%s8970_s26 + $0xa4] sm:$0xff] %v273_v22   ;;  %278 = vst [vmem:[%s8970_s26 + $0xac] sm:$0xf] %v277_v23  ;;  %v283_v25 = vld [vmem:[%s8965_s27 + $0x1e48] sm:$0xff]   ;;  %v287_v26 = vld [vmem:[%s8965_s27 + $0x1e50] sm:$0xff]  }
  0x28   : > { %280 = vst [vmem:[%s8970_s26 + $0xb0] sm:$0xff] %v279_v24   ;;  %284 = vst [vmem:[%s8970_s26 + $0xb8] sm:$0xff] %v283_v25   ;;  %v291_v27 = vld [vmem:[%s8965_s27 + $0x1e58] sm:$0xff]   ;;  %v295_v28 = vld [vmem:[%s8965_s27 + $0x1e60] sm:$0xff]  }
  0x29   : > { %288 = vst [vmem:[%s8970_s26 + $0xc0] sm:$0xff] %v287_v26   ;;  %v299_v29 = vld [vmem:[%s8965_s27 + $0x1e68] sm:$0xf]  ;;  %292 = vst [vmem:[%s8970_s26 + $0xc8] sm:$0xff] %v291_v27   ;;  %v301_v30 = vld [vmem:[%s8965_s27 + $0x25d0] sm:$0xff]  }
  0x2a   : > { %296 = vst [vmem:[%s8970_s26 + $0xd0] sm:$0xff] %v295_v28   ;;  %300 = vst [vmem:[%s8970_s26 + $0xd8] sm:$0xf] %v299_v29  ;;  %v305_v31 = vld [vmem:[%s8965_s27 + $0x25d8] sm:$0xff]   ;;  %v309_v32 = vld [vmem:[%s8965_s27 + $0x25e0] sm:$0xff]  }
  0x2b   : > { %302 = vst [vmem:[%s8970_s26 + $0xdc] sm:$0xff] %v301_v30   ;;  %306 = vst [vmem:[%s8970_s26 + $0xe4] sm:$0xff] %v305_v31   ;;  %v313_v33 = vld [vmem:[%s8965_s27 + $0x25e8] sm:$0xff]   ;;  %v317_v34 = vld [vmem:[%s8965_s27 + $0x25f0] sm:$0xff]  }
  0x2c   : > { %310 = vst [vmem:[%s8970_s26 + $0xec] sm:$0xff] %v309_v32   ;;  %v321_v35 = vld [vmem:[%s8965_s27 + $0x25f8] sm:$0xf]  ;;  %314 = vst [vmem:[%s8970_s26 + $0xf4] sm:$0xff] %v313_v33   ;;  %v323_v36 = vld [vmem:[%s8965_s27 + $0x2d60] sm:$0xff]  }
  0x2d   : > { %318 = vst [vmem:[%s8970_s26 + $0xfc] sm:$0xff] %v317_v34   ;;  %322 = vst [vmem:[%s8970_s26 + $0x104] sm:$0xf] %v321_v35  ;;  %v327_v37 = vld [vmem:[%s8965_s27 + $0x2d68] sm:$0xff]   ;;  %v331_v38 = vld [vmem:[%s8965_s27 + $0x2d70] sm:$0xff]  }
  0x2e   : > { %324 = vst [vmem:[%s8970_s26 + $0x108] sm:$0xff] %v323_v36   ;;  %328 = vst [vmem:[%s8970_s26 + $0x110] sm:$0xff] %v327_v37   ;;  %v335_v39 = vld [vmem:[%s8965_s27 + $0x2d78] sm:$0xff]   ;;  %v339_v40 = vld [vmem:[%s8965_s27 + $0x2d80] sm:$0xff]  }
  0x2f   : > { %332 = vst [vmem:[%s8970_s26 + $0x118] sm:$0xff] %v331_v38   ;;  %v343_v41 = vld [vmem:[%s8965_s27 + $0x2d88] sm:$0xf]  ;;  %336 = vst [vmem:[%s8970_s26 + $0x120] sm:$0xff] %v335_v39   ;;  %v345_v42 = vld [vmem:[%s8965_s27 + $0x34f0] sm:$0xff]  }
  0x30   : > { %340 = vst [vmem:[%s8970_s26 + $0x128] sm:$0xff] %v339_v40   ;;  %344 = vst [vmem:[%s8970_s26 + $0x130] sm:$0xf] %v343_v41  ;;  %v349_v43 = vld [vmem:[%s8965_s27 + $0x34f8] sm:$0xff]   ;;  %v353_v44 = vld [vmem:[%s8965_s27 + $0x3500] sm:$0xff]  }
  0x31   : > { %346 = vst [vmem:[%s8970_s26 + $0x134] sm:$0xff] %v345_v42   ;;  %350 = vst [vmem:[%s8970_s26 + $0x13c] sm:$0xff] %v349_v43   ;;  %v357_v45 = vld [vmem:[%s8965_s27 + $0x3508] sm:$0xff]   ;;  %v361_v46 = vld [vmem:[%s8965_s27 + $0x3510] sm:$0xff]  }
  0x32   : > { %354 = vst [vmem:[%s8970_s26 + $0x144] sm:$0xff] %v353_v44   ;;  %v365_v47 = vld [vmem:[%s8965_s27 + $0x3518] sm:$0xf]  ;;  %358 = vst [vmem:[%s8970_s26 + $0x14c] sm:$0xff] %v357_v45   ;;  %v367_v48 = vld [vmem:[%s8965_s27 + $0x3c80] sm:$0xff]  }
  0x33   : > { %362 = vst [vmem:[%s8970_s26 + $0x154] sm:$0xff] %v361_v46   ;;  %366 = vst [vmem:[%s8970_s26 + $0x15c] sm:$0xf] %v365_v47  ;;  %v371_v49 = vld [vmem:[%s8965_s27 + $0x3c88] sm:$0xff]   ;;  %v375_v50 = vld [vmem:[%s8965_s27 + $0x3c90] sm:$0xff]  }
  0x34   : > { %368 = vst [vmem:[%s8970_s26 + $0x160] sm:$0xff] %v367_v48   ;;  %372 = vst [vmem:[%s8970_s26 + $0x168] sm:$0xff] %v371_v49   ;;  %v379_v51 = vld [vmem:[%s8965_s27 + $0x3c98] sm:$0xff]   ;;  %v383_v52 = vld [vmem:[%s8965_s27 + $0x3ca0] sm:$0xff]  }
  0x35   : > { %376 = vst [vmem:[%s8970_s26 + $0x170] sm:$0xff] %v375_v50   ;;  %v387_v53 = vld [vmem:[%s8965_s27 + $0x3ca8] sm:$0xf]  ;;  %380 = vst [vmem:[%s8970_s26 + $0x178] sm:$0xff] %v379_v51   ;;  %v389_v54 = vld [vmem:[%s8965_s27 + $0x4410] sm:$0xff]  }
  0x36   : > { %384 = vst [vmem:[%s8970_s26 + $0x180] sm:$0xff] %v383_v52   ;;  %388 = vst [vmem:[%s8970_s26 + $0x188] sm:$0xf] %v387_v53  ;;  %v393_v55 = vld [vmem:[%s8965_s27 + $0x4418] sm:$0xff]   ;;  %v397_v56 = vld [vmem:[%s8965_s27 + $0x4420] sm:$0xff]  }
  0x37   : > { %390 = vst [vmem:[%s8970_s26 + $0x18c] sm:$0xff] %v389_v54   ;;  %394 = vst [vmem:[%s8970_s26 + $0x194] sm:$0xff] %v393_v55   ;;  %v401_v57 = vld [vmem:[%s8965_s27 + $0x4428] sm:$0xff]   ;;  %v405_v58 = vld [vmem:[%s8965_s27 + $0x4430] sm:$0xff]  }
  0x38   : > { %398 = vst [vmem:[%s8970_s26 + $0x19c] sm:$0xff] %v397_v56   ;;  %v409_v59 = vld [vmem:[%s8965_s27 + $0x4438] sm:$0xf]  ;;  %402 = vst [vmem:[%s8970_s26 + $0x1a4] sm:$0xff] %v401_v57   ;;  %v411_v60 = vld [vmem:[%s8965_s27 + $0x4ba0] sm:$0xff]  }
  0x39   : > { %406 = vst [vmem:[%s8970_s26 + $0x1ac] sm:$0xff] %v405_v58   ;;  %410 = vst [vmem:[%s8970_s26 + $0x1b4] sm:$0xf] %v409_v59  ;;  %v415_v61 = vld [vmem:[%s8965_s27 + $0x4ba8] sm:$0xff]   ;;  %v419_v62 = vld [vmem:[%s8965_s27 + $0x4bb0] sm:$0xff]  }
  0x3a   : > { %412 = vst [vmem:[%s8970_s26 + $0x1b8] sm:$0xff] %v411_v60   ;;  %416 = vst [vmem:[%s8970_s26 + $0x1c0] sm:$0xff] %v415_v61   ;;  %v423_v63 = vld [vmem:[%s8965_s27 + $0x4bb8] sm:$0xff]   ;;  %v427_v0 = vld [vmem:[%s8965_s27 + $0x4bc0] sm:$0xff]  }
  0x3b   : > { %420 = vst [vmem:[%s8970_s26 + $0x1c8] sm:$0xff] %v419_v62   ;;  %v431_v1 = vld [vmem:[%s8965_s27 + $0x4bc8] sm:$0xf]  ;;  %424 = vst [vmem:[%s8970_s26 + $0x1d0] sm:$0xff] %v423_v63   ;;  %v433_v2 = vld [vmem:[%s8965_s27 + $0x5330] sm:$0xff]  }
  0x3c   : > { %428 = vst [vmem:[%s8970_s26 + $0x1d8] sm:$0xff] %v427_v0   ;;  %432 = vst [vmem:[%s8970_s26 + $0x1e0] sm:$0xf] %v431_v1  ;;  %v437_v3 = vld [vmem:[%s8965_s27 + $0x5338] sm:$0xff]   ;;  %v441_v4 = vld [vmem:[%s8965_s27 + $0x5340] sm:$0xff]  }
  0x3d   : > { %434 = vst [vmem:[%s8970_s26 + $0x1e4] sm:$0xff] %v433_v2   ;;  %438 = vst [vmem:[%s8970_s26 + $0x1ec] sm:$0xff] %v437_v3   ;;  %v445_v5 = vld [vmem:[%s8965_s27 + $0x5348] sm:$0xff]   ;;  %v449_v6 = vld [vmem:[%s8965_s27 + $0x5350] sm:$0xff]  }
  0x3e   : > { %442 = vst [vmem:[%s8970_s26 + $0x1f4] sm:$0xff] %v441_v4   ;;  %v453_v7 = vld [vmem:[%s8965_s27 + $0x5358] sm:$0xf]  ;;  %446 = vst [vmem:[%s8970_s26 + $0x1fc] sm:$0xff] %v445_v5   ;;  %v455_v8 = vld [vmem:[%s8965_s27 + $0x5ac0] sm:$0xff]  }
  0x3f   : > { %450 = vst [vmem:[%s8970_s26 + $0x204] sm:$0xff] %v449_v6   ;;  %454 = vst [vmem:[%s8970_s26 + $0x20c] sm:$0xf] %v453_v7  ;;  %v459_v9 = vld [vmem:[%s8965_s27 + $0x5ac8] sm:$0xff]   ;;  %v463_v10 = vld [vmem:[%s8965_s27 + $0x5ad0] sm:$0xff]  }
  0x40   : > { %456 = vst [vmem:[%s8970_s26 + $0x210] sm:$0xff] %v455_v8   ;;  %460 = vst [vmem:[%s8970_s26 + $0x218] sm:$0xff] %v459_v9   ;;  %v467_v11 = vld [vmem:[%s8965_s27 + $0x5ad8] sm:$0xff]   ;;  %v471_v12 = vld [vmem:[%s8965_s27 + $0x5ae0] sm:$0xff]  }
  0x41   : > { %464 = vst [vmem:[%s8970_s26 + $0x220] sm:$0xff] %v463_v10   ;;  %v475_v13 = vld [vmem:[%s8965_s27 + $0x5ae8] sm:$0xf]  ;;  %468 = vst [vmem:[%s8970_s26 + $0x228] sm:$0xff] %v467_v11   ;;  %v477_v14 = vld [vmem:[%s8965_s27 + $0x6250] sm:$0xff]  }
  0x42   : > { %472 = vst [vmem:[%s8970_s26 + $0x230] sm:$0xff] %v471_v12   ;;  %476 = vst [vmem:[%s8970_s26 + $0x238] sm:$0xf] %v475_v13  ;;  %v481_v15 = vld [vmem:[%s8965_s27 + $0x6258] sm:$0xff]   ;;  %v485_v16 = vld [vmem:[%s8965_s27 + $0x6260] sm:$0xff]  }
  0x43   : > { %478 = vst [vmem:[%s8970_s26 + $0x23c] sm:$0xff] %v477_v14   ;;  %482 = vst [vmem:[%s8970_s26 + $0x244] sm:$0xff] %v481_v15   ;;  %v489_v17 = vld [vmem:[%s8965_s27 + $0x6268] sm:$0xff]   ;;  %v493_v18 = vld [vmem:[%s8965_s27 + $0x6270] sm:$0xff]  }
  0x44   : > { %486 = vst [vmem:[%s8970_s26 + $0x24c] sm:$0xff] %v485_v16   ;;  %v497_v19 = vld [vmem:[%s8965_s27 + $0x6278] sm:$0xf]  ;;  %490 = vst [vmem:[%s8970_s26 + $0x254] sm:$0xff] %v489_v17  }
  0x45   : > { %494 = vst [vmem:[%s8970_s26 + $0x25c] sm:$0xff] %v493_v18   ;;  %498 = vst [vmem:[%s8970_s26 + $0x264] sm:$0xf] %v497_v19 }
  0x46 PF: > { %p6905_p8 = scmp.ge.s32.totalorder %s8862_s20, 1  ;;  %p837_p9 = scmp.lt.s32.totalorder %s8862_s20, 113 }
  0x48   : > { %p838_p10 = pnand %p6905_p8, %p837_p9 }
  0x4a   : > { %841 = sbr.rel (%p838_p10) target bundleno = 703 (0x2bf), region = 69 }
  0x4f   : > { %s844_s28 = sand.u32 1, %s8830_s12   ;;  %p878_p11 = scmp.lt.s32.totalorder %s8838_s14, 6 }
  0x50   : > { %s8521_s29 = smul.u32 616, %s844_s28  ;;  %s6907_s30 = sshll.u32 %s8846_s16, 3 }
  0x51   : > { %s879_s4 = scalar_select %p878_p11, %s8838_s14, 6 }
  0x52   : > { %s884_s5 = sadd.s32 %s8842_s15, %s6907_s30  ;;  %s9154_s12 = scalar_lea.vmem [#allocation3], %s8521_s29 }
  0x53   : > { %s8522_s6 = smul.u32 196, %s879_s4  ;;  %p885_p12 = scmp.lt.s32.totalorder %s884_s5, 15 }
  0x54   : > { %p6910_p13 = scmp.ne.s32.totalorder %s8838_s14, 0 }
  0x55   : > { %s9147_s10 = scalar_lea.vmem %s9916_s1, %s8522_s6  ;;  %s9959_s5 = smov (!%p885_p12, %s884_s5), 15 }
  0x56   : > { %s7723_s11 = sshll.u32 %s9959_s5, 5  ;;  %896 = sbr.rel (%p6910_p13) target bundleno = 96 (0x60), region = 77 }
  0x57   : > { %s9152_s27 = scalar_lea.vmem %s9918_s3, %s7723_s11 }
  0x5b   : > { %vm897_vm0 = vcmask 64512   ;;  %v8864_v20 = vmov 0.0  }
  0x5c   : > { %898 = vst.msk [vmem:[#allocation2] sm:$0xff] %vm897_vm0, %v8864_v20  ;;  %899 = vst.msk [vmem:[#allocation2 + $0x8] sm:$0xff] %vm897_vm0, %v8864_v20 }
  0x5d   : > { %900 = vst.msk [vmem:[#allocation2 + $0x10] sm:$0xff] %vm897_vm0, %v8864_v20  ;;  %901 = vst.msk [vmem:[#allocation2 + $0x18] sm:$0xff] %vm897_vm0, %v8864_v20 }
  0x5e   : > { %902 = vst.msk [vmem:[#allocation2 + $0x20] sm:$0xff] %vm897_vm0, %v8864_v20  ;;  %903 = vst.msk [vmem:[#allocation2 + $0x28] sm:$0xff] %vm897_vm0, %v8864_v20 }
  0x5f   : > { %904 = vst.msk [vmem:[#allocation2 + $0x30] sm:$0xff] %vm897_vm0, %v8864_v20  ;;  %905 = vst.msk [vmem:[#allocation2 + $0x38] sm:$0xff] %vm897_vm0, %v8864_v20 }
  0x60 PF: > { %v922_v21 = vld [vmem:[%s9147_s10] sm:$0xf]  ;;  %vm956_vm1 = vcmask 1043456   ;;  %vm943_vm2 = vcmask 64512   ;;  %v8597_v24 = vld [vmem:[%s9154_s12 + $0x10] sm:$0xff]   ;;  %v8598_v25 = vld [vmem:[%s9154_s12 + $0x8] sm:$0xff]  }
  0x61   : > { %v8596_v22 = vld [vmem:[%s9154_s12] sm:$0xff]   ;;  %8469 = vmatprep.subr.msk.bf16.mxu0 %vm956_vm1, %v922_v21  ;;  %8470 = vmatprep.subr.msk.bf16.mxu1 %vm956_vm1, %v922_v21  ;;  %v958_v23 = vsel %vm956_vm1, %v922_v21, 0  ;;  %v8599_v26 = vld [vmem:[%s9154_s12 + $0x18] sm:$0xff]   ;;  %v8601_v32 = vld [vmem:[%s9154_s12 + $0xb0] sm:$0xff]   ;;  %p7711_p0 = scmp.ne.s32.totalorder %s8838_s14, 6 }
  0x62   : > { %7978 = vmatpush3.bf16.msra.mxu0 %v958_v23  ;;  %8468 = vmatpush3.bf16.msra.mxu1 %v958_v23  ;;  %v6927_v27 = vld [vmem:[%s9147_s10 + $0x4] sm:$0xf]  ;;  %v6944_v29 = vld [vmem:[%s9147_s10 + $0x8] sm:$0xf]  ;;  %v6961_v34 = vld [vmem:[%s9147_s10 + $0xc] sm:$0xf] }
  0x63   : > { %7979 = vmatprep.mubr.msk.bf16.mxu0 %vm943_vm2, %v8596_v22  ;;  %7983 = vmatprep.mubr.msk.bf16.mxu1 %vm943_vm2, %v8597_v24  ;;  %v1077_v28 = vsel %vm956_vm1, %v6927_v27, 0  ;;  %v8600_v30 = vld [vmem:[%s9154_s12 + $0x58] sm:$0xff]   ;;  %v1196_v31 = vsel %vm956_vm1, %v6944_v29, 0  ;;  %v6978_v35 = vld [vmem:[%s9147_s10 + $0x10] sm:$0xf]  ;;  %v8602_v36 = vld [vmem:[%s9154_s12 + $0x60] sm:$0xff]  }
  0x64   : > { %8471 = vmatprep.subr.msk.bf16.mxu1 %vm956_vm1, %v6927_v27  ;;  %8472 = vmatprep.subr.msk.bf16.mxu0 %vm956_vm1, %v6944_v29  ;;  %v8603_v33 = vld [vmem:[%s9154_s12 + $0xb8] sm:$0xff]   ;;  %v1434_v37 = vsel %vm956_vm1, %v6978_v35, 0  ;;  %v8604_v38 = vld [vmem:[%s9154_s12 + $0x68] sm:$0xff]   ;;  %v1315_v39 = vsel %vm956_vm1, %v6961_v34, 0  ;;  %v8605_v40 = vld [vmem:[%s9154_s12 + $0xc0] sm:$0xff]  }
  0x65   : > { %7980 = vmatmul.mubr.msk.bf16.vlgmr.msra.gmra.mxu0 %vm943_vm2, %v8598_v25  ;;  %7984 = vmatmul.mubr.msk.bf16.vlgmr.msra.gmra.mxu1 %vm943_vm2, %v8599_v26  ;;  %v8606_v41 = vld [vmem:[%s9154_s12 + $0x70] sm:$0xff]   ;;  %v8607_v42 = vld [vmem:[%s9154_s12 + $0xc8] sm:$0xff]   ;;  %v8609_v43 = vld [vmem:[%s9154_s12 + $0x160] sm:$0xff]  }
  0x66   : > { %7988 = vmatpush3.bf16.msra.mxu1 %v1077_v28  ;;  %7998 = vmatpush3.bf16.msra.mxu0 %v1196_v31  ;;  %v6995_v44 = vld [vmem:[%s9147_s10 + $0x14] sm:$0xf]  ;;  %v7012_v45 = vld [vmem:[%s9147_s10 + $0x18] sm:$0xf]  ;;  %v7029_v53 = vld [vmem:[%s9147_s10 + $0x1c] sm:$0xf] }
  0x67   : > { %7989 = vmatprep.mubr.msk.bf16.mxu1 %vm943_vm2, %v8600_v30  ;;  %7999 = vmatprep.mubr.msk.bf16.mxu0 %vm943_vm2, %v8601_v32  ;;  %v8608_v46 = vld [vmem:[%s9154_s12 + $0x108] sm:$0xff]   ;;  %v8610_v48 = vld [vmem:[%s9154_s12 + $0x110] sm:$0xff]   ;;  %v1672_v49 = vsel %vm956_vm1, %v7012_v45, 0  ;;  %v8612_v50 = vld [vmem:[%s9154_s12 + $0x118] sm:$0xff]   ;;  %v1553_v51 = vsel %vm956_vm1, %v6995_v44, 0  ;;  %v1791_v63 = vsel %vm956_vm1, %v7029_v53, 0 }
  0x68   : > { %8473 = vmatprep.subr.msk.bf16.mxu1 %vm956_vm1, %v6961_v34  ;;  %8474 = vmatprep.subr.msk.bf16.mxu0 %vm956_vm1, %v6978_v35  ;;  %v8611_v47 = vld [vmem:[%s9154_s12 + $0x168] sm:$0xff]   ;;  %v8613_v52 = vld [vmem:[%s9154_s12 + $0x170] sm:$0xff]   ;;  %v7046_v54 = vld [vmem:[%s9147_s10 + $0x20] sm:$0xf] }
  0x69   : > { %v8614_v55 = vld [vmem:[%s9154_s12 + $0x120] sm:$0xff]   ;;  %v8615_v56 = vld [vmem:[%s9154_s12 + $0x178] sm:$0xff]   ;;  %v8617_v57 = vld [vmem:[%s9154_s12 + $0x210] sm:$0xff]   ;;  %v1910_v61 = vsel %vm956_vm1, %v7046_v54, 0 }
  0x6a   : > { %v8616_v58 = vld [vmem:[%s9154_s12 + $0x1b8] sm:$0xff]   ;;  %v8618_v60 = vld [vmem:[%s9154_s12 + $0x1c0] sm:$0xff]   ;;  %v8620_v62 = vld [vmem:[%s9154_s12 + $0x1c8] sm:$0xff]  }
  0x6b   : > { %v8619_v59 = vld [vmem:[%s9154_s12 + $0x218] sm:$0xff]   ;;  %v8621_v0 = vld [vmem:[%s9154_s12 + $0x220] sm:$0xff]   ;;  %v8622_v3 = vld [vmem:[%s9154_s12 + $0x1d0] sm:$0xff]  }
  0x6c   : > { %v7063_v1 = vld [vmem:[%s9147_s10 + $0x24] sm:$0xf]  ;;  %v7080_v2 = vld [vmem:[%s9147_s10 + $0x28] sm:$0xf]  ;;  %v8624_v6 = vld [vmem:[%s9154_s12 + $0x2c] sm:$0xff]  }
  0x6d   : > { %8000 = vmatmul.mubr.msk.bf16.vlgmr.msra.gmra.mxu0 %vm943_vm2, %v8603_v33  ;;  %7990 = vmatmul.mubr.msk.bf16.vlgmr.msra.gmra.mxu1 %vm943_vm2, %v8602_v36  ;;  %v8623_v4 = vld [vmem:[%s9154_s12 + $0x228] sm:$0xff]   ;;  %v8626_v8 = vld [vmem:[%s9154_s12 + $0x34] sm:$0xff]   ;;  %v2148_v9 = vsel %vm956_vm1, %v7080_v2, 0  ;;  %v8628_v10 = vld [vmem:[%s9154_s12 + $0x3c] sm:$0xff]   ;;  %v2029_v11 = vsel %vm956_vm1, %v7063_v1, 0 }
  0x6e   : > { %8018 = vmatpush3.bf16.msra.mxu0 %v1434_v37  ;;  %8008 = vmatpush3.bf16.msra.mxu1 %v1315_v39  ;;  %v8625_v5 = vld [vmem:[%s9154_s12 + $0x84] sm:$0xff]   ;;  %v8627_v7 = vld [vmem:[%s9154_s12 + $0x8c] sm:$0xff]   ;;  %v8629_v12 = vld [vmem:[%s9154_s12 + $0x94] sm:$0xff]  }
  0x6f   : > { %7993 = vmatprep.mubr.msk.bf16.mxu1 %vm943_vm2, %v8604_v38  ;;  %8003 = vmatprep.mubr.msk.bf16.mxu0 %vm943_vm2, %v8605_v40  ;;  %v7097_v13 = vld [vmem:[%s9147_s10 + $0x2c] sm:$0xf]  ;;  %v7114_v14 = vld [vmem:[%s9147_s10 + $0x30] sm:$0xf]  ;;  %v8631_v16 = vld [vmem:[%s9154_s12 + $0x9c] sm:$0xff]  }
  0x70   : > { %8475 = vmatprep.subr.msk.bf16.mxu1 %vm956_vm1, %v6995_v44  ;;  %8476 = vmatprep.subr.msk.bf16.mxu0 %vm956_vm1, %v7012_v45  ;;  %v8630_v15 = vld [vmem:[%s9154_s12 + $0x44] sm:$0xff]   ;;  %v8633_v17 = vld [vmem:[%s9154_s12 + $0x134] sm:$0xff]   ;;  %v8632_v18 = vld [vmem:[%s9154_s12 + $0xdc] sm:$0xff]   ;;  %v2386_v21 = vsel %vm956_vm1, %v7114_v14, 0  ;;  %v2267_v23 = vsel %vm956_vm1, %v7097_v13, 0 }
  0x71   : > { %v8635_v19 = vld [vmem:[%s9154_s12 + $0x13c] sm:$0xff]   ;;  %v8634_v20 = vld [vmem:[%s9154_s12 + $0xe4] sm:$0xff]   ;;  %v8636_v22 = vld [vmem:[%s9154_s12 + $0xec] sm:$0xff]  }
  0x72   : > { %v8637_v24 = vld [vmem:[%s9154_s12 + $0x144] sm:$0xff]   ;;  %v7131_v25 = vld [vmem:[%s9147_s10 + $0x34] sm:$0xf]  ;;  %v7140_v26 = vld [vmem:[%s9147_s10 + $0x38] sm:$0xf] }
  0x73   : > { %v8638_v27 = vld [vmem:[%s9154_s12 + $0xf4] sm:$0xff]   ;;  %v8639_v28 = vld [vmem:[%s9154_s12 + $0x14c] sm:$0xff]   ;;  %v8641_v29 = vld [vmem:[%s9154_s12 + $0x1e4] sm:$0xff]   ;;  %v2623_v33 = vsel %vm956_vm1, %v7140_v26, 0  ;;  %v2505_v35 = vsel %vm956_vm1, %v7131_v25, 0 }
  0x74   : > { %v8640_v30 = vld [vmem:[%s9154_s12 + $0x18c] sm:$0xff]   ;;  %v8642_v32 = vld [vmem:[%s9154_s12 + $0x194] sm:$0xff]   ;;  %v8644_v34 = vld [vmem:[%s9154_s12 + $0x19c] sm:$0xff]  }
  0x75   : > { %8004 = vmatmul.mubr.msk.bf16.gmra.mxu0 %vm943_vm2, %v8607_v42  ;;  %7994 = vmatmul.mubr.msk.bf16.gmra.mxu1 %vm943_vm2, %v8606_v41  ;;  %v8643_v31 = vld [vmem:[%s9154_s12 + $0x1ec] sm:$0xff]   ;;  %v8645_v36 = vld [vmem:[%s9154_s12 + $0x1f4] sm:$0xff]   ;;  %v8646_v39 = vld [vmem:[%s9154_s12 + $0x1a4] sm:$0xff]  }
  0x76   : > { %8019 = vmatprep.mubr.msk.bf16.mxu0 %vm943_vm2, %v8609_v43  ;;  %8009 = vmatprep.mubr.msk.bf16.mxu1 %vm943_vm2, %v8608_v46  ;;  %v7157_v37 = vld [vmem:[%s9147_s10 + $0x3c] sm:$0xf]  ;;  %v7174_v38 = vld [vmem:[%s9147_s10 + $0x40] sm:$0xf]  ;;  %v8649_v41 = vld [vmem:[%s9154_s12 + $0x4] sm:$0xff]  }
  0x77   : > { %v8647_v40 = vld [vmem:[%s9154_s12 + $0x1fc] sm:$0xff]   ;;  %v8651_v43 = vld [vmem:[%s9154_s12 + $0xc] sm:$0xff]   ;;  %v8650_v44 = vld [vmem:[%s9154_s12 + $0x244] sm:$0xff]   ;;  %v2859_v45 = vsel %vm956_vm1, %v7174_v38, 0 }
  0x78   : > { %v8648_v42 = vld [vmem:[%s9154_s12 + $0x23c] sm:$0xff]   ;;  %v8652_v46 = vld [vmem:[%s9154_s12 + $0x24c] sm:$0xff]  }
  0x7d   : > { %8020 = vmatmul.mubr.msk.bf16.vlgmr.msra.gmra.mxu0 %vm943_vm2, %v8611_v47  ;;  %8010 = vmatmul.mubr.msk.bf16.vlgmr.msra.gmra.mxu1 %vm943_vm2, %v8610_v48  ;;  %v2741_v47 = vsel %vm956_vm1, %v7157_v37, 0  ;;  %v8653_v48 = vld [vmem:[%s9154_s12 + $0x14] sm:$0xff]  }
  0x7e   : > { %8038 = vmatpush3.bf16.msra.mxu0 %v1672_v49  ;;  %8028 = vmatpush3.bf16.msra.mxu1 %v1553_v51  ;;  %v7191_v49 = vld [vmem:[%s9147_s10 + $0x44] sm:$0xf] }
  0x7f   : > { %8013 = vmatprep.mubr.msk.bf16.mxu1 %vm943_vm2, %v8612_v50  ;;  %8023 = vmatprep.mubr.msk.bf16.mxu0 %vm943_vm2, %v8613_v52  ;;  %v7208_v50 = vld [vmem:[%s9147_s10 + $0x48] sm:$0xf]  ;;  %v8654_v52 = vld [vmem:[%s9154_s12 + $0x254] sm:$0xff]  }
  0x80   : > { %8477 = vmatprep.subr.msk.bf16.mxu1 %vm956_vm1, %v7029_v53  ;;  %8478 = vmatprep.subr.msk.bf16.mxu0 %vm956_vm1, %v7046_v54  ;;  %v8655_v51 = vld [vmem:[%s9154_s12 + $0x1c] sm:$0xff]   ;;  %v8657_v53 = vld [vmem:[%s9154_s12 + $0xb4] sm:$0xff]  }
  0x81   : > { %v8656_v54 = vld [vmem:[%s9154_s12 + $0x5c] sm:$0xff]  }
  0x85   : > { %8024 = vmatmul.mubr.msk.bf16.gmra.mxu0 %vm943_vm2, %v8615_v56  ;;  %8014 = vmatmul.mubr.msk.bf16.gmra.mxu1 %vm943_vm2, %v8614_v55  ;;  %v8658_v55 = vld [vmem:[%s9154_s12 + $0x64] sm:$0xff]   ;;  %v8659_v56 = vld [vmem:[%s9154_s12 + $0xbc] sm:$0xff]  }
  0x86   : > { %8039 = vmatprep.mubr.msk.bf16.mxu0 %vm943_vm2, %v8617_v57  ;;  %8029 = vmatprep.mubr.msk.bf16.mxu1 %vm943_vm2, %v8616_v58  ;;  %v3095_v57 = vsel %vm956_vm1, %v7208_v50, 0  ;;  %v8660_v58 = vld [vmem:[%s9154_s12 + $0x6c] sm:$0xff]  }
  0x8d   : > { %8040 = vmatmul.mubr.msk.bf16.vlgmr.msra.gmra.mxu0 %vm943_vm2, %v8619_v59  ;;  %8030 = vmatmul.mubr.msk.bf16.vlgmr.msra.gmra.mxu1 %vm943_vm2, %v8618_v60  ;;  %v2977_v59 = vsel %vm956_vm1, %v7191_v49, 0  ;;  %v8661_v60 = vld [vmem:[%s9154_s12 + $0xc4] sm:$0xff]  }
  0x8e   : > { %8058 = vmatpush3.bf16.msra.mxu0 %v1910_v61  ;;  %8048 = vmatpush3.bf16.msra.mxu1 %v1791_v63  ;;  %v7225_v61 = vld [vmem:[%s9147_s10 + $0x4c] sm:$0xf]  ;;  %v8662_v63 = vld [vmem:[%s9154_s12 + $0x74] sm:$0xff]  }
  0x8f   : > { %8033 = vmatprep.mubr.msk.bf16.mxu1 %vm943_vm2, %v8620_v62  ;;  %8043 = vmatprep.mubr.msk.bf16.mxu0 %vm943_vm2, %v8621_v0  ;;  %v7242_v62 = vld [vmem:[%s9147_s10 + $0x50] sm:$0xf] }
  0x90   : > { %8479 = vmatprep.subr.msk.bf16.mxu1 %vm956_vm1, %v7063_v1  ;;  %8480 = vmatprep.subr.msk.bf16.mxu0 %vm956_vm1, %v7080_v2  ;;  %v8663_v0 = vld [vmem:[%s9154_s12 + $0xcc] sm:$0xff]   ;;  %v8665_v2 = vld [vmem:[%s9154_s12 + $0x164] sm:$0xff]  }
  0x91   : > { %v8664_v1 = vld [vmem:[%s9154_s12 + $0x10c] sm:$0xff]  }
  0x95   : > { %8044 = vmatmul.mubr.msk.bf16.gmra.mxu0 %vm943_vm2, %v8623_v4  ;;  %8034 = vmatmul.mubr.msk.bf16.gmra.mxu1 %vm943_vm2, %v8622_v3  ;;  %v8667_v3 = vld [vmem:[%s9154_s12 + $0x16c] sm:$0xff]   ;;  %v8666_v4 = vld [vmem:[%s9154_s12 + $0x114] sm:$0xff]  }
  0x96   : > { %8059 = vmatprep.mubr.msk.bf16.mxu0 %vm943_vm2, %v8625_v5  ;;  %8049 = vmatprep.mubr.msk.bf16.mxu1 %vm943_vm2, %v8624_v6  ;;  %v3331_v5 = vsel %vm956_vm1, %v7242_v62, 0  ;;  %v8668_v6 = vld [vmem:[%s9154_s12 + $0x11c] sm:$0xff]  }
  0x9d   : > { %8060 = vmatmul.mubr.msk.bf16.vlgmr.msra.gmra.mxu0 %vm943_vm2, %v8627_v7  ;;  %8050 = vmatmul.mubr.msk.bf16.vlgmr.msra.gmra.mxu1 %vm943_vm2, %v8626_v8  ;;  %v3213_v7 = vsel %vm956_vm1, %v7225_v61, 0  ;;  %v8669_v8 = vld [vmem:[%s9154_s12 + $0x174] sm:$0xff]  }
  0x9e   : > { %8078 = vmatpush3.bf16.msra.mxu0 %v2148_v9  ;;  %8068 = vmatpush3.bf16.msra.mxu1 %v2029_v11  ;;  %v7259_v9 = vld [vmem:[%s9147_s10 + $0x54] sm:$0xf]  ;;  %v8671_v11 = vld [vmem:[%s9154_s12 + $0x17c] sm:$0xff]  }
  0x9f   : > { %8053 = vmatprep.mubr.msk.bf16.mxu1 %vm943_vm2, %v8628_v10  ;;  %8063 = vmatprep.mubr.msk.bf16.mxu0 %vm943_vm2, %v8629_v12  ;;  %v7276_v10 = vld [vmem:[%s9147_s10 + $0x58] sm:$0xf]  ;;  %v8670_v12 = vld [vmem:[%s9154_s12 + $0x124] sm:$0xff]  }
  0xa0   : > { %8481 = vmatprep.subr.msk.bf16.mxu1 %vm956_vm1, %v7097_v13  ;;  %8482 = vmatprep.subr.msk.bf16.mxu0 %vm956_vm1, %v7114_v14  ;;  %v8673_v13 = vld [vmem:[%s9154_s12 + $0x214] sm:$0xff]   ;;  %v8672_v14 = vld [vmem:[%s9154_s12 + $0x1bc] sm:$0xff]  }
  0xa5   : > { %8064 = vmatmul.mubr.msk.bf16.gmra.mxu0 %vm943_vm2, %v8631_v16  ;;  %8054 = vmatmul.mubr.msk.bf16.gmra.mxu1 %vm943_vm2, %v8630_v15  ;;  %v8675_v15 = vld [vmem:[%s9154_s12 + $0x21c] sm:$0xff]   ;;  %v8674_v16 = vld [vmem:[%s9154_s12 + $0x1c4] sm:$0xff]  }
  0xa6   : > { %8079 = vmatprep.mubr.msk.bf16.mxu0 %vm943_vm2, %v8633_v17  ;;  %8069 = vmatprep.mubr.msk.bf16.mxu1 %vm943_vm2, %v8632_v18  ;;  %v3567_v17 = vsel %vm956_vm1, %v7276_v10, 0  ;;  %v8676_v18 = vld [vmem:[%s9154_s12 + $0x1cc] sm:$0xff]  }
  0xad   : > { %8080 = vmatmul.mubr.msk.bf16.vlgmr.msra.gmra.mxu0 %vm943_vm2, %v8635_v19  ;;  %8070 = vmatmul.mubr.msk.bf16.vlgmr.msra.gmra.mxu1 %vm943_vm2, %v8634_v20  ;;  %v3449_v19 = vsel %vm956_vm1, %v7259_v9, 0  ;;  %v8677_v20 = vld [vmem:[%s9154_s12 + $0x224] sm:$0xff]  }
  0xae   : > { %8098 = vmatpush3.bf16.msra.mxu0 %v2386_v21  ;;  %8088 = vmatpush3.bf16.msra.mxu1 %v2267_v23  ;;  %v7293_v21 = vld [vmem:[%s9147_s10 + $0x5c] sm:$0xf] }
  0xaf   : > { %8073 = vmatprep.mubr.msk.bf16.mxu1 %vm943_vm2, %v8636_v22  ;;  %8083 = vmatprep.mubr.msk.bf16.mxu0 %vm943_vm2, %v8637_v24  ;;  %v7310_v22 = vld [vmem:[%s9147_s10 + $0x60] sm:$0xf]  ;;  %v8679_v24 = vld [vmem:[%s9154_s12 + $0x22c] sm:$0xff]  }
  0xb0   : > { %8483 = vmatprep.subr.msk.bf16.mxu1 %vm956_vm1, %v7131_v25  ;;  %8484 = vmatprep.subr.msk.bf16.mxu0 %vm956_vm1, %v7140_v26  ;;  %v8678_v23 = vld [vmem:[%s9154_s12 + $0x1d4] sm:$0xff]   ;;  %v8681_v25 = vld [vmem:[%s9154_s12 + $0x88] sm:$0xff]  }
  0xb1   : > { %v8680_v26 = vld [vmem:[%s9154_s12 + $0x30] sm:$0xff]  }
  0xb5   : > { %8084 = vmatmul.mubr.msk.bf16.gmra.mxu0 %vm943_vm2, %v8639_v28  ;;  %8074 = vmatmul.mubr.msk.bf16.gmra.mxu1 %vm943_vm2, %v8638_v27  ;;  %v8682_v27 = vld [vmem:[%s9154_s12 + $0x38] sm:$0xff]   ;;  %v8683_v28 = vld [vmem:[%s9154_s12 + $0x90] sm:$0xff]  }
  0xb6   : > { %8099 = vmatprep.mubr.msk.bf16.mxu0 %vm943_vm2, %v8641_v29  ;;  %8089 = vmatprep.mubr.msk.bf16.mxu1 %vm943_vm2, %v8640_v30  ;;  %v3685_v29 = vsel %vm956_vm1, %v7293_v21, 0  ;;  %v3803_v30 = vsel %vm956_vm1, %v7310_v22, 0 }
  0xbd   : > { %8100 = vmatmul.mubr.msk.bf16.vlgmr.msra.gmra.mxu0 %vm943_vm2, %v8643_v31  ;;  %8090 = vmatmul.mubr.msk.bf16.vlgmr.msra.gmra.mxu1 %vm943_vm2, %v8642_v32  ;;  %v8684_v31 = vld [vmem:[%s9154_s12 + $0x40] sm:$0xff]   ;;  %v8685_v32 = vld [vmem:[%s9154_s12 + $0x98] sm:$0xff]  }
  0xbe   : > { %8118 = vmatpush3.bf16.msra.mxu0 %v2623_v33  ;;  %8108 = vmatpush3.bf16.msra.mxu1 %v2505_v35  ;;  %v7327_v33 = vld [vmem:[%s9147_s10 + $0x64] sm:$0xf]  ;;  %v8686_v35 = vld [vmem:[%s9154_s12 + $0x48] sm:$0xff]  }
  0xbf   : > { %8093 = vmatprep.mubr.msk.bf16.mxu1 %vm943_vm2, %v8644_v34  ;;  %8103 = vmatprep.mubr.msk.bf16.mxu0 %vm943_vm2, %v8645_v36  ;;  %v7344_v34 = vld [vmem:[%s9147_s10 + $0x68] sm:$0xf] }
  0xc0   : > { %8485 = vmatprep.subr.msk.bf16.mxu1 %vm956_vm1, %v7157_v37  ;;  %8486 = vmatprep.subr.msk.bf16.mxu0 %vm956_vm1, %v7174_v38  ;;  %v8687_v36 = vld [vmem:[%s9154_s12 + $0xa0] sm:$0xff]   ;;  %v8689_v37 = vld [vmem:[%s9154_s12 + $0x138] sm:$0xff]  }
  0xc1   : > { %v8688_v38 = vld [vmem:[%s9154_s12 + $0xe0] sm:$0xff]  }
  0xc5   : > { %8104 = vmatmul.mubr.msk.bf16.gmra.mxu0 %vm943_vm2, %v8647_v40  ;;  %8094 = vmatmul.mubr.msk.bf16.gmra.mxu1 %vm943_vm2, %v8646_v39  ;;  %v8691_v39 = vld [vmem:[%s9154_s12 + $0x140] sm:$0xff]   ;;  %v8690_v40 = vld [vmem:[%s9154_s12 + $0xe8] sm:$0xff]  }
  0xc6   : > { %8119 = vmatprep.mubr.msk.bf16.mxu0 %vm943_vm2, %v8649_v41  ;;  %8109 = vmatprep.mubr.msk.bf16.mxu1 %vm943_vm2, %v8648_v42  ;;  %v3921_v41 = vsel %vm956_vm1, %v7327_v33, 0  ;;  %v4039_v42 = vsel %vm956_vm1, %v7344_v34, 0 }
  0xcd   : > { %8120 = vmatmul.mubr.msk.bf16.vlgmr.msra.gmra.mxu0 %vm943_vm2, %v8651_v43  ;;  %8110 = vmatmul.mubr.msk.bf16.vlgmr.msra.gmra.mxu1 %vm943_vm2, %v8650_v44  ;;  %v8692_v43 = vld [vmem:[%s9154_s12 + $0xf0] sm:$0xff]   ;;  %v8693_v44 = vld [vmem:[%s9154_s12 + $0x148] sm:$0xff]  }
  0xce   : > { %8138 = vmatpush3.bf16.msra.mxu0 %v2859_v45  ;;  %8128 = vmatpush3.bf16.msra.mxu1 %v2741_v47  ;;  %v7361_v45 = vld [vmem:[%s9147_s10 + $0x6c] sm:$0xf]  ;;  %v8694_v47 = vld [vmem:[%s9154_s12 + $0xf8] sm:$0xff]  }
  0xcf   : > { %8113 = vmatprep.mubr.msk.bf16.mxu1 %vm943_vm2, %v8652_v46  ;;  %8123 = vmatprep.mubr.msk.bf16.mxu0 %vm943_vm2, %v8653_v48  ;;  %v7370_v46 = vld [vmem:[%s9147_s10 + $0x70] sm:$0xf] }
  0xd0   : > { %8487 = vmatprep.subr.msk.bf16.mxu1 %vm956_vm1, %v7191_v49  ;;  %8488 = vmatprep.subr.msk.bf16.mxu0 %vm956_vm1, %v7208_v50  ;;  %v8695_v48 = vld [vmem:[%s9154_s12 + $0x150] sm:$0xff]   ;;  %v8697_v49 = vld [vmem:[%s9154_s12 + $0x1e8] sm:$0xff]  }
  0xd1   : > { %v8696_v50 = vld [vmem:[%s9154_s12 + $0x190] sm:$0xff]  }
  0xd5   : > { %8124 = vmatmul.mubr.msk.bf16.gmra.mxu0 %vm943_vm2, %v8655_v51  ;;  %8114 = vmatmul.mubr.msk.bf16.gmra.mxu1 %vm943_vm2, %v8654_v52 }
  0xd6   : > { %8139 = vmatprep.mubr.msk.bf16.mxu0 %vm943_vm2, %v8657_v53  ;;  %8129 = vmatprep.mubr.msk.bf16.mxu1 %vm943_vm2, %v8656_v54  ;;  %v8699_v54 = vld [vmem:[%s9154_s12 + $0x1f0] sm:$0xff]  }
  0xdd   : > { %8140 = vmatmul.mubr.msk.bf16.vlgmr.msra.gmra.mxu0 %vm943_vm2, %v8659_v56  ;;  %8130 = vmatmul.mubr.msk.bf16.vlgmr.msra.gmra.mxu1 %vm943_vm2, %v8658_v55  ;;  %v908_v55 = vld [vmem:[#allocation2 + $0x10] sm:$0xff] }
  0xde   : > { %8158 = vmatpush3.bf16.msra.mxu0 %v3095_v57  ;;  %8148 = vmatpush3.bf16.msra.mxu1 %v2977_v59  ;;  %v8698_v57 = vld [vmem:[%s9154_s12 + $0x198] sm:$0xff]  }
  0xdf   : > { %8133 = vmatprep.mubr.msk.bf16.mxu1 %vm943_vm2, %v8660_v58  ;;  %8143 = vmatprep.mubr.msk.bf16.mxu0 %vm943_vm2, %v8661_v60  ;;  %v906_v59 = vld [vmem:[#allocation2] sm:$0xff] }
  0xe0   : > { %8489 = vmatprep.subr.msk.bf16.mxu1 %vm956_vm1, %v7225_v61  ;;  %8490 = vmatprep.subr.msk.bf16.mxu0 %vm956_vm1, %v7242_v62  ;;  %v4157_v62 = vsel %vm956_vm1, %v7361_v45, 0 }
  0xe5   : > { %8144 = vmatmul.mubr.msk.bf16.gmra.mxu0 %vm943_vm2, %v8663_v0  ;;  %8134 = vmatmul.mubr.msk.bf16.gmra.mxu1 %vm943_vm2, %v8662_v63  ;;  %v4275_v63 = vsel %vm956_vm1, %v7370_v46, 0  ;;  %v8700_v0 = vld [vmem:[%s9154_s12 + $0x1a0] sm:$0xff]  }
  0xe6   : > { %8159 = vmatprep.mubr.msk.bf16.mxu0 %vm943_vm2, %v8665_v2  ;;  %8149 = vmatprep.mubr.msk.bf16.mxu1 %vm943_vm2, %v8664_v1  ;;  %v8701_v1 = vld [vmem:[%s9154_s12 + $0x1f8] sm:$0xff]  }
  0xe7   : > { %v909_v2 = vld [vmem:[#allocation2 + $0x18] sm:$0xff] }
  0xed   : > { %8160 = vmatmul.mubr.msk.bf16.vlgmr.msra.gmra.mxu0 %vm943_vm2, %v8667_v3  ;;  %8150 = vmatmul.mubr.msk.bf16.vlgmr.msra.gmra.mxu1 %vm943_vm2, %v8666_v4  ;;  %v9454_v4 = vld [vmem:[%s9147_s10 + $0x74] sm:$0xf] }
  0xee   : > { %8178 = vmatpush3.bf16.msra.mxu0 %v3331_v5  ;;  %8168 = vmatpush3.bf16.msra.mxu1 %v3213_v7  ;;  %v7404_v5 = vld [vmem:[%s9147_s10 + $0x78] sm:$0xf] }
  0xef   : > { %8153 = vmatprep.mubr.msk.bf16.mxu1 %vm943_vm2, %v8668_v6  ;;  %8163 = vmatprep.mubr.msk.bf16.mxu0 %vm943_vm2, %v8669_v8  ;;  %v907_v8 = vld [vmem:[#allocation2 + $0x8] sm:$0xff] }
  0xf0   : > { %8491 = vmatprep.subr.msk.bf16.mxu1 %vm956_vm1, %v7259_v9  ;;  %8492 = vmatprep.subr.msk.bf16.mxu0 %vm956_vm1, %v7276_v10 }
  0xf5   : > { %8164 = vmatmul.mubr.msk.bf16.gmra.mxu0 %vm943_vm2, %v8671_v11  ;;  %8154 = vmatmul.mubr.msk.bf16.gmra.mxu1 %vm943_vm2, %v8670_v12 }
  0xf6   : > { %8179 = vmatprep.mubr.msk.bf16.mxu0 %vm943_vm2, %v8673_v13  ;;  %8169 = vmatprep.mubr.msk.bf16.mxu1 %vm943_vm2, %v8672_v14  ;;  %v912_v13 = vld [vmem:[#allocation2 + $0x30] sm:$0xff] }
  0xfd   : > { %8180 = vmatmul.mubr.msk.bf16.vlgmr.msra.gmra.mxu0 %vm943_vm2, %v8675_v15  ;;  %8170 = vmatmul.mubr.msk.bf16.vlgmr.msra.gmra.mxu1 %vm943_vm2, %v8674_v16 }
  0xfe   : > { %8198 = vmatpush3.bf16.msra.mxu0 %v3567_v17  ;;  %8188 = vmatpush3.bf16.msra.mxu1 %v3449_v19  ;;  %v8703_v19 = vld [vmem:[%s9154_s12 + $0x200] sm:$0xff]  }
  0xff   : > { %8173 = vmatprep.mubr.msk.bf16.mxu1 %vm943_vm2, %v8676_v18  ;;  %8183 = vmatprep.mubr.msk.bf16.mxu0 %vm943_vm2, %v8677_v20 }
 0x100   : > { %8493 = vmatprep.subr.msk.bf16.mxu1 %vm956_vm1, %v7293_v21  ;;  %8494 = vmatprep.subr.msk.bf16.mxu0 %vm956_vm1, %v7310_v22  ;;  %v8702_v21 = vld [vmem:[%s9154_s12 + $0x1a8] sm:$0xff]  }
 0x101   : > { %v8705_v22 = vld [vmem:[%s9154_s12 + $0x8] sm:$0xff]  }
 0x105   : > { %8184 = vmatmul.mubr.msk.bf16.gmra.mxu0 %vm943_vm2, %v8679_v24  ;;  %8174 = vmatmul.mubr.msk.bf16.gmra.mxu1 %vm943_vm2, %v8678_v23 }
 0x106   : > { %8199 = vmatprep.mubr.msk.bf16.mxu0 %vm943_vm2, %v8681_v25  ;;  %8189 = vmatprep.mubr.msk.bf16.mxu1 %vm943_vm2, %v8680_v26 }
 0x10d   : > { %8200 = vmatmul.mubr.msk.bf16.vlgmr.msra.gmra.mxu0 %vm943_vm2, %v8683_v28  ;;  %8190 = vmatmul.mubr.msk.bf16.vlgmr.msra.gmra.mxu1 %vm943_vm2, %v8682_v27  ;;  %v8704_v27 = vld [vmem:[%s9154_s12 + $0x240] sm:$0xff]  }
 0x10e   : > { %8218 = vmatpush3.bf16.msra.mxu0 %v3803_v30  ;;  %8208 = vmatpush3.bf16.msra.mxu1 %v3685_v29  ;;  %v910_v28 = vld [vmem:[#allocation2 + $0x20] sm:$0xff] }
 0x10f   : > { %8193 = vmatprep.mubr.msk.bf16.mxu1 %vm943_vm2, %v8684_v31  ;;  %8203 = vmatprep.mubr.msk.bf16.mxu0 %vm943_vm2, %v8685_v32 }
 0x110   : > { %8495 = vmatprep.subr.msk.bf16.mxu1 %vm956_vm1, %v7327_v33  ;;  %8496 = vmatprep.subr.msk.bf16.mxu0 %vm956_vm1, %v7344_v34  ;;  %v913_v34 = vld [vmem:[#allocation2 + $0x38] sm:$0xff] }
 0x115   : > { %8204 = vmatmul.mubr.msk.bf16.gmra.mxu0 %vm943_vm2, %v8687_v36  ;;  %8194 = vmatmul.mubr.msk.bf16.gmra.mxu1 %vm943_vm2, %v8686_v35 }
 0x116   : > { %8219 = vmatprep.mubr.msk.bf16.mxu0 %vm943_vm2, %v8689_v37  ;;  %8209 = vmatprep.mubr.msk.bf16.mxu1 %vm943_vm2, %v8688_v38 }
 0x11d   : > { %8220 = vmatmul.mubr.msk.bf16.vlgmr.msra.gmra.mxu0 %vm943_vm2, %v8691_v39  ;;  %8210 = vmatmul.mubr.msk.bf16.vlgmr.msra.gmra.mxu1 %vm943_vm2, %v8690_v40  ;;  %v911_v40 = vld [vmem:[#allocation2 + $0x28] sm:$0xff] }
 0x11e   : > { %8238 = vmatpush3.bf16.msra.mxu0 %v4039_v42  ;;  %8228 = vmatpush3.bf16.msra.mxu1 %v3921_v41 }
 0x11f   : > { %8213 = vmatprep.mubr.msk.bf16.mxu1 %vm943_vm2, %v8692_v43  ;;  %8223 = vmatprep.mubr.msk.bf16.mxu0 %vm943_vm2, %v8693_v44 }
 0x120   : > { %8497 = vmatprep.subr.msk.bf16.mxu1 %vm956_vm1, %v7361_v45  ;;  %8498 = vmatprep.subr.msk.bf16.mxu0 %vm956_vm1, %v7370_v46  ;;  %v8707_v46 = vld [vmem:[%s9154_s12 + $0x10] sm:$0xff]  }
 0x125   : > { %v7981_v51 = vpop.f32.mrf.mxu0  ;;  %8224 = vmatmul.mubr.msk.bf16.gmra.mxu0 %vm943_vm2, %v8695_v48  ;;  %v7985_v52 = vpop.f32.mrf.mxu1  ;;  %8214 = vmatmul.mubr.msk.bf16.gmra.mxu1 %vm943_vm2, %v8694_v47  ;;  %v8706_v48 = vld [vmem:[%s9154_s12 + $0x248] sm:$0xff]  }
 0x126   : > { %8239 = vmatprep.mubr.msk.bf16.mxu0 %vm943_vm2, %v8697_v49  ;;  %8229 = vmatprep.mubr.msk.bf16.mxu1 %vm943_vm2, %v8696_v50  ;;  %v1027_v6 = vadd.f32 %v7981_v51, %v908_v55  ;;  %v1031_v30 = vadd.f32 %v7985_v52, %v912_v13 }
 0x127   : > { %v994_v53 = vpop.f32.mrf.mxu0  ;;  %v1010_v56 = vpop.f32.mrf.mxu1 }
 0x128   : > { %v1025_v10 = vadd.f32 %v994_v53, %v906_v59  ;;  %v1029_v36 = vadd.f32 %v1010_v56, %v910_v28  ;;  %v4511_v53 = vsel %vm956_vm1, %v7404_v5, 0  ;;  %v4393_v56 = vsel %vm956_vm1, %v9454_v4, 0 }
 0x129   : > { %v7982_v58 = vpop.f32.mrf.mxu0  ;;  %v7986_v60 = vpop.f32.mrf.mxu1 }
 0x12a   : > { %v1028_v15 = vadd.f32 %v7982_v58, %v909_v2  ;;  %v1032_v42 = vadd.f32 %v7986_v60, %v913_v34  ;;  %v8716_v34 = vld [vmem:[%s9154_s12 + $0x70] sm:$0xff]  }
 0x12b   : > { %v997_v61 = vpop.f32.mrf.mxu0  ;;  %v1013_v3 = vpop.f32.mrf.mxu1 }
 0x12c   : > { %v1026_v23 = vadd.f32 %v997_v61, %v907_v8  ;;  %v1030_v49 = vadd.f32 %v1013_v3, %v911_v40  ;;  %v7421_v61 = vld [vmem:[%s9147_s10 + $0x7c] sm:$0xf] }
 0x12d   : > { %v8001_v7 = vpop.f32.mrf.mxu0  ;;  %8240 = vmatmul.mubr.msk.bf16.vlgmr.msra.gmra.mxu0 %vm943_vm2, %v8699_v54  ;;  %v7991_v9 = vpop.f32.mrf.mxu1  ;;  %8230 = vmatmul.mubr.msk.bf16.vlgmr.msra.gmra.mxu1 %vm943_vm2, %v8698_v57  ;;  %v8708_v54 = vld [vmem:[%s9154_s12 + $0x250] sm:$0xff]   ;;  %v8709_v57 = vld [vmem:[%s9154_s12 + $0x18] sm:$0xff]  }
 0x12e   : > { %8258 = vmatpush3.bf16.msra.mxu0 %v4275_v63  ;;  %v1146_v11 = vadd.f32 %v7991_v9, %v1027_v6  ;;  %8248 = vmatpush3.bf16.msra.mxu1 %v4157_v62  ;;  %v7438_v63 = vld [vmem:[%s9147_s10 + $0x80] sm:$0xf] }
 0x12f   : > { %v1232_v12 = vpop.f32.mrf.mxu0  ;;  %8233 = vmatprep.mubr.msk.bf16.mxu1 %vm943_vm2, %v8700_v0  ;;  %v1113_v14 = vpop.f32.mrf.mxu1  ;;  %8243 = vmatprep.mubr.msk.bf16.mxu0 %vm943_vm2, %v8701_v1  ;;  %v8710_v9 = vld [vmem:[%s9154_s12 + $0x258] sm:$0xff]  }
 0x130   : > { %8499 = vmatprep.subr.msk.bf16.mxu1 %vm956_vm1, %v9454_v4  ;;  %v1265_v16 = vadd.f32 %v8001_v7, %v1146_v11  ;;  %v1144_v17 = vadd.f32 %v1113_v14, %v1025_v10  ;;  %8500 = vmatprep.subr.msk.bf16.mxu0 %vm956_vm1, %v7404_v5  ;;  %v8711_v7 = vld [vmem:[%s9154_s12 + $0x20] sm:$0xff]   ;;  %v8713_v10 = vld [vmem:[%s9154_s12 + $0xb8] sm:$0xff]  }
 0x131   : > { %v8002_v18 = vpop.f32.mrf.mxu0  ;;  %v7992_v20 = vpop.f32.mrf.mxu1  ;;  %v8712_v14 = vld [vmem:[%s9154_s12 + $0x60] sm:$0xff]  }
 0x132   : > { %v1263_v24 = vadd.f32 %v1232_v12, %v1144_v17  ;;  %v1147_v25 = vadd.f32 %v7992_v20, %v1028_v15 }
 0x133   : > { %v1235_v26 = vpop.f32.mrf.mxu0  ;;  %v1116_v29 = vpop.f32.mrf.mxu1 }
 0x134   : > { %v1266_v31 = vadd.f32 %v8002_v18, %v1147_v25  ;;  %v1145_v32 = vadd.f32 %v1116_v29, %v1026_v23  ;;  %v8714_v29 = vld [vmem:[%s9154_s12 + $0x68] sm:$0xff]  }
 0x135   : > { %v8005_v33 = vpop.f32.mrf.mxu0  ;;  %8244 = vmatmul.mubr.msk.bf16.gmra.mxu0 %vm943_vm2, %v8703_v19  ;;  %v7995_v35 = vpop.f32.mrf.mxu1  ;;  %8234 = vmatmul.mubr.msk.bf16.gmra.mxu1 %vm943_vm2, %v8702_v21 }
 0x136   : > { %8259 = vmatprep.mubr.msk.bf16.mxu0 %vm943_vm2, %v8705_v22  ;;  %v1264_v37 = vadd.f32 %v1235_v26, %v1145_v32  ;;  %v1150_v38 = vadd.f32 %v7995_v35, %v1031_v30  ;;  %8249 = vmatprep.mubr.msk.bf16.mxu1 %vm943_vm2, %v8704_v27  ;;  %v8715_v27 = vld [vmem:[%s9154_s12 + $0xc0] sm:$0xff]  }
 0x137   : > { %v1248_v39 = vpop.f32.mrf.mxu0  ;;  %v1129_v41 = vpop.f32.mrf.mxu1 }
 0x138   : > { %v1269_v43 = vadd.f32 %v8005_v33, %v1150_v38  ;;  %v1148_v44 = vadd.f32 %v1129_v41, %v1029_v36  ;;  %v4747_v33 = vsel %vm956_vm1, %v7438_v63, 0  ;;  %v4629_v36 = vsel %vm956_vm1, %v7421_v61, 0  ;;  %v7455_v41 = vld [vmem:[%s9147_s10 + $0x84] sm:$0xf] }
 0x139   : > { %v8006_v45 = vpop.f32.mrf.mxu0  ;;  %v7996_v47 = vpop.f32.mrf.mxu1 }
 0x13a   : > { %v1267_v50 = vadd.f32 %v1248_v39, %v1148_v44  ;;  %v1151_v51 = vadd.f32 %v7996_v47, %v1032_v42 }
 0x13b   : > { %v1251_v52 = vpop.f32.mrf.mxu0  ;;  %v1132_v55 = vpop.f32.mrf.mxu1 }
 0x13c   : > { %v1270_v58 = vadd.f32 %v8006_v45, %v1151_v51  ;;  %v1149_v59 = vadd.f32 %v1132_v55, %v1030_v49  ;;  %v8719_v51 = vld [vmem:[%s9154_s12 + $0xd0] sm:$0xff]  }
 0x13d   : > { %v8021_v60 = vpop.f32.mrf.mxu0  ;;  %8260 = vmatmul.mubr.msk.bf16.vlgmr.msra.gmra.mxu0 %vm943_vm2, %v8707_v46  ;;  %v8011_v62 = vpop.f32.mrf.mxu1  ;;  %8250 = vmatmul.mubr.msk.bf16.vlgmr.msra.gmra.mxu1 %vm943_vm2, %v8706_v48 }
 0x13e   : > { %8278 = vmatpush3.bf16.msra.mxu0 %v4511_v53  ;;  %v1268_v0 = vadd.f32 %v1251_v52, %v1149_v59  ;;  %v1384_v1 = vadd.f32 %v8011_v62, %v1265_v16  ;;  %8268 = vmatpush3.bf16.msra.mxu1 %v4393_v56  ;;  %v8718_v53 = vld [vmem:[%s9154_s12 + $0x78] sm:$0xff]  }
 0x13f   : > { %v1470_v2 = vpop.f32.mrf.mxu0  ;;  %8253 = vmatprep.mubr.msk.bf16.mxu1 %vm943_vm2, %v8708_v54  ;;  %v1351_v3 = vpop.f32.mrf.mxu1  ;;  %8263 = vmatprep.mubr.msk.bf16.mxu0 %vm943_vm2, %v8709_v57  ;;  %v8721_v54 = vld [vmem:[%s9154_s12 + $0x168] sm:$0xff]  }
 0x140   : > { %8501 = vmatprep.subr.msk.bf16.mxu1 %vm956_vm1, %v7421_v61  ;;  %v1503_v4 = vadd.f32 %v8021_v60, %v1384_v1  ;;  %v1382_v5 = vadd.f32 %v1351_v3, %v1263_v24  ;;  %8502 = vmatprep.subr.msk.bf16.mxu0 %vm956_vm1, %v7438_v63 }
 0x141   : > { %v8022_v6 = vpop.f32.mrf.mxu0  ;;  %v8012_v8 = vpop.f32.mrf.mxu1 }
 0x142   : > { %v1501_v11 = vadd.f32 %v1470_v2, %v1382_v5  ;;  %v1385_v12 = vadd.f32 %v8012_v8, %v1266_v31 }
 0x143   : > { %v1473_v13 = vpop.f32.mrf.mxu0  ;;  %v1354_v15 = vpop.f32.mrf.mxu1 }
 0x144   : > { %v1504_v16 = vadd.f32 %v8022_v6, %v1385_v12  ;;  %v1383_v17 = vadd.f32 %v1354_v15, %v1264_v37  ;;  %v8717_v37 = vld [vmem:[%s9154_s12 + $0xc8] sm:$0xff]  }
 0x145   : > { %v8025_v18 = vpop.f32.mrf.mxu0  ;;  %8264 = vmatmul.mubr.msk.bf16.gmra.mxu0 %vm943_vm2, %v8711_v7  ;;  %v8015_v19 = vpop.f32.mrf.mxu1  ;;  %8254 = vmatmul.mubr.msk.bf16.gmra.mxu1 %vm943_vm2, %v8710_v9  ;;  %v8723_v7 = vld [vmem:[%s9154_s12 + $0x170] sm:$0xff]   ;;  %v8722_v9 = vld [vmem:[%s9154_s12 + $0x118] sm:$0xff]  }
 0x146   : > { %8279 = vmatprep.mubr.msk.bf16.mxu0 %vm943_vm2, %v8713_v10  ;;  %v1502_v20 = vadd.f32 %v1473_v13, %v1383_v17  ;;  %v1388_v21 = vadd.f32 %v8015_v19, %v1269_v43  ;;  %8269 = vmatprep.mubr.msk.bf16.mxu1 %vm943_vm2, %v8712_v14  ;;  %v7472_v43 = vld [vmem:[%s9147_s10 + $0x88] sm:$0xf]  ;;  %v8725_v17 = vld [vmem:[%s9154_s12 + $0x178] sm:$0xff]  }
 0x147   : > { %v1486_v22 = vpop.f32.mrf.mxu0  ;;  %v1367_v23 = vpop.f32.mrf.mxu1  ;;  %v4983_v13 = vsel %vm956_vm1, %v7472_v43, 0  ;;  %v8724_v14 = vld [vmem:[%s9154_s12 + $0x120] sm:$0xff]  }
 0x148   : > { %v1507_v24 = vadd.f32 %v8025_v18, %v1388_v21  ;;  %v1386_v25 = vadd.f32 %v1367_v23, %v1267_v50  ;;  %v7489_v21 = vld [vmem:[%s9147_s10 + $0x8c] sm:$0xf]  ;;  %v7506_v23 = vld [vmem:[%s9147_s10 + $0x90] sm:$0xf] }
 0x149   : > { %v8026_v26 = vpop.f32.mrf.mxu0  ;;  %v8016_v28 = vpop.f32.mrf.mxu1 }
 0x14a   : > { %v1505_v30 = vadd.f32 %v1486_v22, %v1386_v25  ;;  %v1389_v31 = vadd.f32 %v8016_v28, %v1270_v58  ;;  %v8720_v58 = vld [vmem:[%s9154_s12 + $0x110] sm:$0xff]  }
 0x14b   : > { %v1489_v32 = vpop.f32.mrf.mxu0  ;;  %v1370_v35 = vpop.f32.mrf.mxu1 }
 0x14c   : > { %v1508_v38 = vadd.f32 %v8026_v26, %v1389_v31  ;;  %v1387_v39 = vadd.f32 %v1370_v35, %v1268_v0  ;;  %v8727_v31 = vld [vmem:[%s9154_s12 + $0x180] sm:$0xff]  }
 0x14d   : > { %v8041_v40 = vpop.f32.mrf.mxu0  ;;  %8280 = vmatmul.mubr.msk.bf16.vlgmr.msra.gmra.mxu0 %vm943_vm2, %v8715_v27  ;;  %v8031_v42 = vpop.f32.mrf.mxu1  ;;  %8270 = vmatmul.mubr.msk.bf16.vlgmr.msra.gmra.mxu1 %vm943_vm2, %v8714_v29 }
 0x14e   : > { %8298 = vmatpush3.bf16.msra.mxu0 %v4747_v33  ;;  %v1506_v44 = vadd.f32 %v1489_v32, %v1387_v39  ;;  %v1622_v45 = vadd.f32 %v8031_v42, %v1503_v4  ;;  %8288 = vmatpush3.bf16.msra.mxu1 %v4629_v36  ;;  %v8726_v33 = vld [vmem:[%s9154_s12 + $0x128] sm:$0xff]  }
 0x14f   : > { %v1708_v46 = vpop.f32.mrf.mxu0  ;;  %8273 = vmatprep.mubr.msk.bf16.mxu1 %vm943_vm2, %v8716_v34  ;;  %v1589_v47 = vpop.f32.mrf.mxu1  ;;  %8283 = vmatprep.mubr.msk.bf16.mxu0 %vm943_vm2, %v8717_v37  ;;  %v8729_v34 = vld [vmem:[%s9154_s12 + $0x218] sm:$0xff]  }
 0x150   : > { %8503 = vmatprep.subr.msk.bf16.mxu1 %vm956_vm1, %v7455_v41  ;;  %v1741_v48 = vadd.f32 %v8041_v40, %v1622_v45  ;;  %v1620_v49 = vadd.f32 %v1589_v47, %v1501_v11  ;;  %8504 = vmatprep.subr.msk.bf16.mxu0 %vm956_vm1, %v7472_v43 }
 0x151   : > { %v8042_v50 = vpop.f32.mrf.mxu0  ;;  %v8032_v52 = vpop.f32.mrf.mxu1 }
 0x152   : > { %v1739_v55 = vadd.f32 %v1708_v46, %v1620_v49  ;;  %v1623_v56 = vadd.f32 %v8032_v52, %v1504_v16  ;;  %v4865_v16 = vsel %vm956_vm1, %v7455_v41, 0 }
 0x153   : > { %v1711_v57 = vpop.f32.mrf.mxu0  ;;  %v1592_v59 = vpop.f32.mrf.mxu1 }
 0x154   : > { %v1742_v60 = vadd.f32 %v8042_v50, %v1623_v56  ;;  %v1621_v61 = vadd.f32 %v1592_v59, %v1502_v20 }
 0x155   : > { %v8045_v62 = vpop.f32.mrf.mxu0  ;;  %8284 = vmatmul.mubr.msk.bf16.gmra.mxu0 %vm943_vm2, %v8719_v51  ;;  %v8035_v63 = vpop.f32.mrf.mxu1  ;;  %8274 = vmatmul.mubr.msk.bf16.gmra.mxu1 %vm943_vm2, %v8718_v53  ;;  %v8731_v51 = vld [vmem:[%s9154_s12 + $0x220] sm:$0xff]   ;;  %v8730_v53 = vld [vmem:[%s9154_s12 + $0x1c8] sm:$0xff]  }
 0x156   : > { %8299 = vmatprep.mubr.msk.bf16.mxu0 %vm943_vm2, %v8721_v54  ;;  %v1740_v0 = vadd.f32 %v1711_v57, %v1621_v61  ;;  %v1626_v1 = vadd.f32 %v8035_v63, %v1507_v24  ;;  %8289 = vmatprep.mubr.msk.bf16.mxu1 %vm943_vm2, %v8720_v58  ;;  %v5219_v57 = vsel %vm956_vm1, %v7506_v23, 0  ;;  %v8732_v58 = vld [vmem:[%s9154_s12 + $0x1d0] sm:$0xff]   ;;  %v8733_v61 = vld [vmem:[%s9154_s12 + $0x228] sm:$0xff]  }
 0x157   : > { %v1724_v2 = vpop.f32.mrf.mxu0  ;;  %v1605_v3 = vpop.f32.mrf.mxu1 }
 0x158   : > { %v1745_v4 = vadd.f32 %v8045_v62, %v1626_v1  ;;  %v1624_v5 = vadd.f32 %v1605_v3, %v1505_v30  ;;  %v7523_v1 = vld [vmem:[%s9147_s10 + $0x94] sm:$0xf]  ;;  %v7540_v3 = vld [vmem:[%s9147_s10 + $0x98] sm:$0xf] }
 0x159   : > { %v8046_v6 = vpop.f32.mrf.mxu0  ;;  %v8036_v8 = vpop.f32.mrf.mxu1 }
 0x15a   : > { %v1743_v10 = vadd.f32 %v1724_v2, %v1624_v5  ;;  %v1627_v11 = vadd.f32 %v8036_v8, %v1508_v38  ;;  %v8728_v38 = vld [vmem:[%s9154_s12 + $0x1c0] sm:$0xff]  }
 0x15b   : > { %v1727_v12 = vpop.f32.mrf.mxu0  ;;  %v1608_v15 = vpop.f32.mrf.mxu1 }
 0x15c   : > { %v1746_v18 = vadd.f32 %v8046_v6, %v1627_v11  ;;  %v1625_v19 = vadd.f32 %v1608_v15, %v1506_v44  ;;  %v8735_v11 = vld [vmem:[%s9154_s12 + $0x230] sm:$0xff]  }
 0x15d   : > { %v8061_v20 = vpop.f32.mrf.mxu0  ;;  %8300 = vmatmul.mubr.msk.bf16.vlgmr.msra.gmra.mxu0 %vm943_vm2, %v8723_v7  ;;  %v8051_v22 = vpop.f32.mrf.mxu1  ;;  %8290 = vmatmul.mubr.msk.bf16.vlgmr.msra.gmra.mxu1 %vm943_vm2, %v8722_v9 }
 0x15e   : > { %8318 = vmatpush3.bf16.msra.mxu0 %v4983_v13  ;;  %v1744_v24 = vadd.f32 %v1727_v12, %v1625_v19  ;;  %v1860_v25 = vadd.f32 %v8051_v22, %v1741_v48  ;;  %8308 = vmatpush3.bf16.msra.mxu1 %v4865_v16  ;;  %v8734_v13 = vld [vmem:[%s9154_s12 + $0x1d8] sm:$0xff]  }
 0x15f   : > { %v1946_v26 = vpop.f32.mrf.mxu0  ;;  %8293 = vmatprep.mubr.msk.bf16.mxu1 %vm943_vm2, %v8724_v14  ;;  %v1827_v27 = vpop.f32.mrf.mxu1  ;;  %8303 = vmatprep.mubr.msk.bf16.mxu0 %vm943_vm2, %v8725_v17  ;;  %v8737_v14 = vld [vmem:[%s9154_s12 + $0x8c] sm:$0xff]  }
 0x160   : > { %8505 = vmatprep.subr.msk.bf16.mxu1 %vm956_vm1, %v7489_v21  ;;  %v1979_v28 = vadd.f32 %v8061_v20, %v1860_v25  ;;  %v1858_v29 = vadd.f32 %v1827_v27, %v1739_v55  ;;  %8506 = vmatprep.subr.msk.bf16.mxu0 %vm956_vm1, %v7506_v23 }
 0x161   : > { %v8062_v30 = vpop.f32.mrf.mxu0  ;;  %v8052_v32 = vpop.f32.mrf.mxu1 }
 0x162   : > { %v1977_v35 = vadd.f32 %v1946_v26, %v1858_v29  ;;  %v1861_v36 = vadd.f32 %v8052_v32, %v1742_v60  ;;  %v5101_v60 = vsel %vm956_vm1, %v7489_v21, 0 }
 0x163   : > { %v1949_v37 = vpop.f32.mrf.mxu0  ;;  %v1830_v39 = vpop.f32.mrf.mxu1 }
 0x164   : > { %v1980_v40 = vadd.f32 %v8062_v30, %v1861_v36  ;;  %v1859_v41 = vadd.f32 %v1830_v39, %v1740_v0 }
 0x165   : > { %v8065_v42 = vpop.f32.mrf.mxu0  ;;  %8304 = vmatmul.mubr.msk.bf16.gmra.mxu0 %vm943_vm2, %v8727_v31  ;;  %v8055_v43 = vpop.f32.mrf.mxu1  ;;  %8294 = vmatmul.mubr.msk.bf16.gmra.mxu1 %vm943_vm2, %v8726_v33  ;;  %v8739_v31 = vld [vmem:[%s9154_s12 + $0x94] sm:$0xff]   ;;  %v8738_v33 = vld [vmem:[%s9154_s12 + $0x3c] sm:$0xff]  }
 0x166   : > { %8319 = vmatprep.mubr.msk.bf16.mxu0 %vm943_vm2, %v8729_v34  ;;  %v1978_v44 = vadd.f32 %v1949_v37, %v1859_v41  ;;  %v1864_v45 = vadd.f32 %v8055_v43, %v1745_v4  ;;  %8309 = vmatprep.mubr.msk.bf16.mxu1 %vm943_vm2, %v8728_v38  ;;  %v5455_v37 = vsel %vm956_vm1, %v7540_v3, 0  ;;  %v8740_v38 = vld [vmem:[%s9154_s12 + $0x44] sm:$0xff]   ;;  %v8741_v41 = vld [vmem:[%s9154_s12 + $0x9c] sm:$0xff]  }
 0x167   : > { %v1962_v46 = vpop.f32.mrf.mxu0  ;;  %v1843_v47 = vpop.f32.mrf.mxu1 }
 0x168   : > { %v1983_v48 = vadd.f32 %v8065_v42, %v1864_v45  ;;  %v1862_v49 = vadd.f32 %v1843_v47, %v1743_v10  ;;  %v7557_v45 = vld [vmem:[%s9147_s10 + $0x9c] sm:$0xf]  ;;  %v7574_v47 = vld [vmem:[%s9147_s10 + $0xa0] sm:$0xf] }
 0x169   : > { %v8066_v50 = vpop.f32.mrf.mxu0  ;;  %v8056_v52 = vpop.f32.mrf.mxu1 }
 0x16a   : > { %v1981_v54 = vadd.f32 %v1962_v46, %v1862_v49  ;;  %v1865_v55 = vadd.f32 %v8056_v52, %v1746_v18  ;;  %v8736_v18 = vld [vmem:[%s9154_s12 + $0x34] sm:$0xff]  }
 0x16b   : > { %v1965_v56 = vpop.f32.mrf.mxu0  ;;  %v1846_v59 = vpop.f32.mrf.mxu1 }
 0x16c   : > { %v1984_v62 = vadd.f32 %v8066_v50, %v1865_v55  ;;  %v1863_v63 = vadd.f32 %v1846_v59, %v1744_v24  ;;  %v8743_v55 = vld [vmem:[%s9154_s12 + $0xa4] sm:$0xff]  }
 0x16d   : > { %v8081_v0 = vpop.f32.mrf.mxu0  ;;  %8320 = vmatmul.mubr.msk.bf16.vlgmr.msra.gmra.mxu0 %vm943_vm2, %v8731_v51  ;;  %v8071_v2 = vpop.f32.mrf.mxu1  ;;  %8310 = vmatmul.mubr.msk.bf16.vlgmr.msra.gmra.mxu1 %vm943_vm2, %v8730_v53 }
 0x16e   : > { %8338 = vmatpush3.bf16.msra.mxu0 %v5219_v57  ;;  %v1982_v4 = vadd.f32 %v1965_v56, %v1863_v63  ;;  %v2098_v5 = vadd.f32 %v8071_v2, %v1979_v28  ;;  %8328 = vmatpush3.bf16.msra.mxu1 %v5101_v60  ;;  %v8742_v57 = vld [vmem:[%s9154_s12 + $0x4c] sm:$0xff]  }
 0x16f   : > { %v2184_v6 = vpop.f32.mrf.mxu0  ;;  %8313 = vmatprep.mubr.msk.bf16.mxu1 %vm943_vm2, %v8732_v58  ;;  %v2065_v7 = vpop.f32.mrf.mxu1  ;;  %8323 = vmatprep.mubr.msk.bf16.mxu0 %vm943_vm2, %v8733_v61  ;;  %v8745_v58 = vld [vmem:[%s9154_s12 + $0x13c] sm:$0xff]  }
 0x170   : > { %8507 = vmatprep.subr.msk.bf16.mxu1 %vm956_vm1, %v7523_v1  ;;  %v2217_v8 = vadd.f32 %v8081_v0, %v2098_v5  ;;  %v2096_v9 = vadd.f32 %v2065_v7, %v1977_v35  ;;  %8508 = vmatprep.subr.msk.bf16.mxu0 %vm956_vm1, %v7540_v3 }
 0x171   : > { %v8082_v10 = vpop.f32.mrf.mxu0  ;;  %v8072_v12 = vpop.f32.mrf.mxu1 }
 0x172   : > { %v2215_v15 = vadd.f32 %v2184_v6, %v2096_v9  ;;  %v2099_v16 = vadd.f32 %v8072_v12, %v1980_v40  ;;  %v5337_v40 = vsel %vm956_vm1, %v7523_v1, 0 }
 0x173   : > { %v2187_v17 = vpop.f32.mrf.mxu0  ;;  %v2068_v19 = vpop.f32.mrf.mxu1 }
 0x174   : > { %v2218_v20 = vadd.f32 %v8082_v10, %v2099_v16  ;;  %v2097_v21 = vadd.f32 %v2068_v19, %v1978_v44 }
 0x175   : > { %v8085_v22 = vpop.f32.mrf.mxu0  ;;  %8324 = vmatmul.mubr.msk.bf16.gmra.mxu0 %vm943_vm2, %v8735_v11  ;;  %v8075_v23 = vpop.f32.mrf.mxu1  ;;  %8314 = vmatmul.mubr.msk.bf16.gmra.mxu1 %vm943_vm2, %v8734_v13  ;;  %v8747_v11 = vld [vmem:[%s9154_s12 + $0x144] sm:$0xff]   ;;  %v8746_v13 = vld [vmem:[%s9154_s12 + $0xec] sm:$0xff]  }
 0x176   : > { %8339 = vmatprep.mubr.msk.bf16.mxu0 %vm943_vm2, %v8737_v14  ;;  %v2216_v24 = vadd.f32 %v2187_v17, %v2097_v21  ;;  %v2102_v25 = vadd.f32 %v8075_v23, %v1983_v48  ;;  %8329 = vmatprep.mubr.msk.bf16.mxu1 %vm943_vm2, %v8736_v18  ;;  %v5691_v17 = vsel %vm956_vm1, %v7574_v47, 0  ;;  %v8748_v18 = vld [vmem:[%s9154_s12 + $0xf4] sm:$0xff]   ;;  %v8749_v21 = vld [vmem:[%s9154_s12 + $0x14c] sm:$0xff]  }
 0x177   : > { %v2200_v26 = vpop.f32.mrf.mxu0  ;;  %v2081_v27 = vpop.f32.mrf.mxu1 }
 0x178   : > { %v2221_v28 = vadd.f32 %v8085_v22, %v2102_v25  ;;  %v2100_v29 = vadd.f32 %v2081_v27, %v1981_v54  ;;  %v7591_v25 = vld [vmem:[%s9147_s10 + $0xa4] sm:$0xf]  ;;  %v7600_v27 = vld [vmem:[%s9147_s10 + $0xa8] sm:$0xf] }
 0x179   : > { %v8086_v30 = vpop.f32.mrf.mxu0  ;;  %v8076_v32 = vpop.f32.mrf.mxu1 }
 0x17a   : > { %v2219_v34 = vadd.f32 %v2200_v26, %v2100_v29  ;;  %v2103_v35 = vadd.f32 %v8076_v32, %v1984_v62  ;;  %v8744_v62 = vld [vmem:[%s9154_s12 + $0xe4] sm:$0xff]  }
 0x17b   : > { %v2203_v36 = vpop.f32.mrf.mxu0  ;;  %v2084_v39 = vpop.f32.mrf.mxu1 }
 0x17c   : > { %v2222_v42 = vadd.f32 %v8086_v30, %v2103_v35  ;;  %v2101_v43 = vadd.f32 %v2084_v39, %v1982_v4  ;;  %v8751_v35 = vld [vmem:[%s9154_s12 + $0x154] sm:$0xff]  }
 0x17d   : > { %v8101_v44 = vpop.f32.mrf.mxu0  ;;  %8340 = vmatmul.mubr.msk.bf16.vlgmr.msra.gmra.mxu0 %vm943_vm2, %v8739_v31  ;;  %v8091_v46 = vpop.f32.mrf.mxu1  ;;  %8330 = vmatmul.mubr.msk.bf16.vlgmr.msra.gmra.mxu1 %vm943_vm2, %v8738_v33 }
 0x17e   : > { %8358 = vmatpush3.bf16.msra.mxu0 %v5455_v37  ;;  %v2220_v48 = vadd.f32 %v2203_v36, %v2101_v43  ;;  %v2336_v49 = vadd.f32 %v8091_v46, %v2217_v8  ;;  %8348 = vmatpush3.bf16.msra.mxu1 %v5337_v40  ;;  %v8750_v37 = vld [vmem:[%s9154_s12 + $0xfc] sm:$0xff]  }
 0x17f   : > { %v2422_v50 = vpop.f32.mrf.mxu0  ;;  %8333 = vmatprep.mubr.msk.bf16.mxu1 %vm943_vm2, %v8740_v38  ;;  %v2303_v51 = vpop.f32.mrf.mxu1  ;;  %8343 = vmatprep.mubr.msk.bf16.mxu0 %vm943_vm2, %v8741_v41  ;;  %v8753_v38 = vld [vmem:[%s9154_s12 + $0x1ec] sm:$0xff]  }
 0x180   : > { %8509 = vmatprep.subr.msk.bf16.mxu1 %vm956_vm1, %v7557_v45  ;;  %v2455_v52 = vadd.f32 %v8101_v44, %v2336_v49  ;;  %v2334_v53 = vadd.f32 %v2303_v51, %v2215_v15  ;;  %8510 = vmatprep.subr.msk.bf16.mxu0 %vm956_vm1, %v7574_v47 }
 0x181   : > { %v8102_v54 = vpop.f32.mrf.mxu0  ;;  %v8092_v56 = vpop.f32.mrf.mxu1 }
 0x182   : > { %v2453_v59 = vadd.f32 %v2422_v50, %v2334_v53  ;;  %v2337_v60 = vadd.f32 %v8092_v56, %v2218_v20  ;;  %v5573_v20 = vsel %vm956_vm1, %v7557_v45, 0 }
 0x183   : > { %v2425_v61 = vpop.f32.mrf.mxu0  ;;  %v2306_v63 = vpop.f32.mrf.mxu1 }
 0x184   : > { %v2456_v0 = vadd.f32 %v8102_v54, %v2337_v60  ;;  %v2335_v1 = vadd.f32 %v2306_v63, %v2216_v24 }
 0x185   : > { %v8105_v2 = vpop.f32.mrf.mxu0  ;;  %8344 = vmatmul.mubr.msk.bf16.gmra.mxu0 %vm943_vm2, %v8743_v55  ;;  %v8095_v3 = vpop.f32.mrf.mxu1  ;;  %8334 = vmatmul.mubr.msk.bf16.gmra.mxu1 %vm943_vm2, %v8742_v57  ;;  %v8755_v55 = vld [vmem:[%s9154_s12 + $0x1f4] sm:$0xff]   ;;  %v8754_v57 = vld [vmem:[%s9154_s12 + $0x19c] sm:$0xff]  }
 0x186   : > { %8359 = vmatprep.mubr.msk.bf16.mxu0 %vm943_vm2, %v8745_v58  ;;  %v2454_v4 = vadd.f32 %v2425_v61, %v2335_v1  ;;  %v2340_v5 = vadd.f32 %v8095_v3, %v2221_v28  ;;  %8349 = vmatprep.mubr.msk.bf16.mxu1 %vm943_vm2, %v8744_v62  ;;  %v5927_v61 = vsel %vm956_vm1, %v7600_v27, 0  ;;  %v8756_v62 = vld [vmem:[%s9154_s12 + $0x1a4] sm:$0xff]   ;;  %v8757_v1 = vld [vmem:[%s9154_s12 + $0x1fc] sm:$0xff]  }
 0x187   : > { %v2438_v6 = vpop.f32.mrf.mxu0  ;;  %v2319_v7 = vpop.f32.mrf.mxu1 }
 0x188   : > { %v2459_v8 = vadd.f32 %v8105_v2, %v2340_v5  ;;  %v2338_v9 = vadd.f32 %v2319_v7, %v2219_v34  ;;  %v7617_v5 = vld [vmem:[%s9147_s10 + $0xac] sm:$0xf]  ;;  %v7634_v7 = vld [vmem:[%s9147_s10 + $0xb0] sm:$0xf] }
 0x189   : > { %v8106_v10 = vpop.f32.mrf.mxu0  ;;  %v8096_v12 = vpop.f32.mrf.mxu1 }
 0x18a   : > { %v2457_v14 = vadd.f32 %v2438_v6, %v2338_v9  ;;  %v2341_v15 = vadd.f32 %v8096_v12, %v2222_v42  ;;  %v8752_v42 = vld [vmem:[%s9154_s12 + $0x194] sm:$0xff]  }
 0x18b   : > { %v2441_v16 = vpop.f32.mrf.mxu0  ;;  %v2322_v19 = vpop.f32.mrf.mxu1 }
 0x18c   : > { %v2460_v22 = vadd.f32 %v8106_v10, %v2341_v15  ;;  %v2339_v23 = vadd.f32 %v2322_v19, %v2220_v48  ;;  %v8759_v15 = vld [vmem:[%s9154_s12 + $0x204] sm:$0xff]  }
 0x18d   : > { %v8121_v24 = vpop.f32.mrf.mxu0  ;;  %8360 = vmatmul.mubr.msk.bf16.vlgmr.msra.gmra.mxu0 %vm943_vm2, %v8747_v11  ;;  %v8111_v26 = vpop.f32.mrf.mxu1  ;;  %8350 = vmatmul.mubr.msk.bf16.vlgmr.msra.gmra.mxu1 %vm943_vm2, %v8746_v13 }
 0x18e   : > { %8378 = vmatpush3.bf16.msra.mxu0 %v5691_v17  ;;  %v2458_v28 = vadd.f32 %v2441_v16, %v2339_v23  ;;  %v2574_v29 = vadd.f32 %v8111_v26, %v2455_v52  ;;  %8368 = vmatpush3.bf16.msra.mxu1 %v5573_v20  ;;  %v8758_v17 = vld [vmem:[%s9154_s12 + $0x1ac] sm:$0xff]  }
 0x18f   : > { %v2659_v30 = vpop.f32.mrf.mxu0  ;;  %8353 = vmatprep.mubr.msk.bf16.mxu1 %vm943_vm2, %v8748_v18  ;;  %v2541_v31 = vpop.f32.mrf.mxu1  ;;  %8363 = vmatprep.mubr.msk.bf16.mxu0 %vm943_vm2, %v8749_v21  ;;  %v8761_v18 = vld [vmem:[%s9154_s12 + $0xc] sm:$0xff]  }
 0x190   : > { %8511 = vmatprep.subr.msk.bf16.mxu1 %vm956_vm1, %v7591_v25  ;;  %v2692_v32 = vadd.f32 %v8121_v24, %v2574_v29  ;;  %v2572_v33 = vadd.f32 %v2541_v31, %v2453_v59  ;;  %8512 = vmatprep.subr.msk.bf16.mxu0 %vm956_vm1, %v7600_v27 }
 0x191   : > { %v8122_v34 = vpop.f32.mrf.mxu0  ;;  %v8112_v36 = vpop.f32.mrf.mxu1 }
 0x192   : > { %v2690_v39 = vadd.f32 %v2659_v30, %v2572_v33  ;;  %v2575_v40 = vadd.f32 %v8112_v36, %v2456_v0  ;;  %v5809_v0 = vsel %vm956_vm1, %v7591_v25, 0 }
 0x193   : > { %v2662_v41 = vpop.f32.mrf.mxu0  ;;  %v2544_v43 = vpop.f32.mrf.mxu1 }
 0x194   : > { %v2693_v44 = vadd.f32 %v8122_v34, %v2575_v40  ;;  %v2573_v45 = vadd.f32 %v2544_v43, %v2454_v4 }
 0x195   : > { %v8125_v46 = vpop.f32.mrf.mxu0  ;;  %8364 = vmatmul.mubr.msk.bf16.gmra.mxu0 %vm943_vm2, %v8751_v35  ;;  %v8115_v47 = vpop.f32.mrf.mxu1  ;;  %8354 = vmatmul.mubr.msk.bf16.gmra.mxu1 %vm943_vm2, %v8750_v37  ;;  %v8763_v35 = vld [vmem:[%s9154_s12 + $0x14] sm:$0xff]   ;;  %v8762_v37 = vld [vmem:[%s9154_s12 + $0x24c] sm:$0xff]  }
 0x196   : > { %8379 = vmatprep.mubr.msk.bf16.mxu0 %vm943_vm2, %v8753_v38  ;;  %v2691_v48 = vadd.f32 %v2662_v41, %v2573_v45  ;;  %v2578_v49 = vadd.f32 %v8115_v47, %v2459_v8  ;;  %8369 = vmatprep.mubr.msk.bf16.mxu1 %vm943_vm2, %v8752_v42  ;;  %v6163_v41 = vsel %vm956_vm1, %v7634_v7, 0  ;;  %v8764_v42 = vld [vmem:[%s9154_s12 + $0x254] sm:$0xff]   ;;  %v8765_v45 = vld [vmem:[%s9154_s12 + $0x1c] sm:$0xff]  }
 0x197   : > { %v2675_v50 = vpop.f32.mrf.mxu0  ;;  %v2557_v51 = vpop.f32.mrf.mxu1 }
 0x198   : > { %v2696_v52 = vadd.f32 %v8125_v46, %v2578_v49  ;;  %v2576_v53 = vadd.f32 %v2557_v51, %v2457_v14  ;;  %v7651_v49 = vld [vmem:[%s9147_s10 + $0xb4] sm:$0xf]  ;;  %v7668_v51 = vld [vmem:[%s9147_s10 + $0xb8] sm:$0xf] }
 0x199   : > { %v8126_v54 = vpop.f32.mrf.mxu0  ;;  %v8116_v56 = vpop.f32.mrf.mxu1 }
 0x19a   : > { %v2694_v58 = vadd.f32 %v2675_v50, %v2576_v53  ;;  %v2579_v59 = vadd.f32 %v8116_v56, %v2460_v22  ;;  %v8760_v22 = vld [vmem:[%s9154_s12 + $0x244] sm:$0xff]  }
 0x19b   : > { %v2678_v60 = vpop.f32.mrf.mxu0  ;;  %v2560_v63 = vpop.f32.mrf.mxu1 }
 0x19c   : > { %v2697_v2 = vadd.f32 %v8126_v54, %v2579_v59  ;;  %v2577_v3 = vadd.f32 %v2560_v63, %v2458_v28  ;;  %v8767_v59 = vld [vmem:[%s9154_s12 + $0x24] sm:$0xff]  }
 0x19d   : > { %v8141_v4 = vpop.f32.mrf.mxu0  ;;  %8380 = vmatmul.mubr.msk.bf16.vlgmr.msra.gmra.mxu0 %vm943_vm2, %v8755_v55  ;;  %v8131_v6 = vpop.f32.mrf.mxu1  ;;  %8370 = vmatmul.mubr.msk.bf16.vlgmr.msra.gmra.mxu1 %vm943_vm2, %v8754_v57 }
 0x19e   : > { %8398 = vmatpush3.bf16.msra.mxu0 %v5927_v61  ;;  %v2695_v8 = vadd.f32 %v2678_v60, %v2577_v3  ;;  %v2810_v9 = vadd.f32 %v8131_v6, %v2692_v32  ;;  %8388 = vmatpush3.bf16.msra.mxu1 %v5809_v0  ;;  %v8766_v61 = vld [vmem:[%s9154_s12 + $0x25c] sm:$0xff]  }
 0x19f   : > { %v2895_v10 = vpop.f32.mrf.mxu0  ;;  %8373 = vmatprep.mubr.msk.bf16.mxu1 %vm943_vm2, %v8756_v62  ;;  %v2777_v11 = vpop.f32.mrf.mxu1  ;;  %8383 = vmatprep.mubr.msk.bf16.mxu0 %vm943_vm2, %v8757_v1  ;;  %v8769_v62 = vld [vmem:[%s9154_s12 + $0xbc] sm:$0xff]  }
 0x1a0   : > { %8513 = vmatprep.subr.msk.bf16.mxu1 %vm956_vm1, %v7617_v5  ;;  %v2928_v12 = vadd.f32 %v8141_v4, %v2810_v9  ;;  %v2808_v13 = vadd.f32 %v2777_v11, %v2690_v39  ;;  %8514 = vmatprep.subr.msk.bf16.mxu0 %vm956_vm1, %v7634_v7 }
 0x1a1   : > { %v8142_v14 = vpop.f32.mrf.mxu0  ;;  %v8132_v16 = vpop.f32.mrf.mxu1 }
 0x1a2   : > { %v2926_v19 = vadd.f32 %v2895_v10, %v2808_v13  ;;  %v2811_v20 = vadd.f32 %v8132_v16, %v2693_v44  ;;  %v6045_v44 = vsel %vm956_vm1, %v7617_v5, 0 }
 0x1a3   : > { %v2898_v21 = vpop.f32.mrf.mxu0  ;;  %v2780_v23 = vpop.f32.mrf.mxu1 }
 0x1a4   : > { %v2929_v24 = vadd.f32 %v8142_v14, %v2811_v20  ;;  %v2809_v25 = vadd.f32 %v2780_v23, %v2691_v48 }
 0x1a5   : > { %v8145_v26 = vpop.f32.mrf.mxu0  ;;  %8384 = vmatmul.mubr.msk.bf16.gmra.mxu0 %vm943_vm2, %v8759_v15  ;;  %v8135_v27 = vpop.f32.mrf.mxu1  ;;  %8374 = vmatmul.mubr.msk.bf16.gmra.mxu1 %vm943_vm2, %v8758_v17  ;;  %v8771_v15 = vld [vmem:[%s9154_s12 + $0xc4] sm:$0xff]   ;;  %v8770_v17 = vld [vmem:[%s9154_s12 + $0x6c] sm:$0xff]  }
 0x1a6   : > { %8399 = vmatprep.mubr.msk.bf16.mxu0 %vm943_vm2, %v8761_v18  ;;  %v2927_v28 = vadd.f32 %v2898_v21, %v2809_v25  ;;  %v2814_v29 = vadd.f32 %v8135_v27, %v2696_v52  ;;  %8389 = vmatprep.mubr.msk.bf16.mxu1 %vm943_vm2, %v8760_v22  ;;  %v6399_v21 = vsel %vm956_vm1, %v7668_v51, 0  ;;  %v8772_v22 = vld [vmem:[%s9154_s12 + $0x74] sm:$0xff]   ;;  %v8773_v25 = vld [vmem:[%s9154_s12 + $0xcc] sm:$0xff]  }
 0x1a7   : > { %v2911_v30 = vpop.f32.mrf.mxu0  ;;  %v2793_v31 = vpop.f32.mrf.mxu1 }
 0x1a8   : > { %v2932_v32 = vadd.f32 %v8145_v26, %v2814_v29  ;;  %v2812_v33 = vadd.f32 %v2793_v31, %v2694_v58  ;;  %v7685_v29 = vld [vmem:[%s9147_s10 + $0xbc] sm:$0xf]  ;;  %v7702_v31 = vld [vmem:[%s9147_s10 + $0xc0] sm:$0xf] }
 0x1a9   : > { %v8146_v34 = vpop.f32.mrf.mxu0  ;;  %v8136_v36 = vpop.f32.mrf.mxu1 }
 0x1aa   : > { %v2930_v38 = vadd.f32 %v2911_v30, %v2812_v33  ;;  %v2815_v39 = vadd.f32 %v8136_v36, %v2697_v2  ;;  %v8768_v2 = vld [vmem:[%s9154_s12 + $0x64] sm:$0xff]  }
 0x1ab   : > { %v2914_v40 = vpop.f32.mrf.mxu0  ;;  %v2796_v43 = vpop.f32.mrf.mxu1 }
 0x1ac   : > { %v2933_v46 = vadd.f32 %v8146_v34, %v2815_v39  ;;  %v2813_v47 = vadd.f32 %v2796_v43, %v2695_v8  ;;  %v8775_v39 = vld [vmem:[%s9154_s12 + $0xd4] sm:$0xff]  }
 0x1ad   : > { %v8161_v48 = vpop.f32.mrf.mxu0  ;;  %8400 = vmatmul.mubr.msk.bf16.vlgmr.msra.gmra.mxu0 %vm943_vm2, %v8763_v35  ;;  %v8151_v50 = vpop.f32.mrf.mxu1  ;;  %8390 = vmatmul.mubr.msk.bf16.vlgmr.msra.gmra.mxu1 %vm943_vm2, %v8762_v37 }
 0x1ae   : > { %8418 = vmatpush3.bf16.msra.mxu0 %v6163_v41  ;;  %v2931_v52 = vadd.f32 %v2914_v40, %v2813_v47  ;;  %v3046_v53 = vadd.f32 %v8151_v50, %v2928_v12  ;;  %8408 = vmatpush3.bf16.msra.mxu1 %v6045_v44  ;;  %v8774_v41 = vld [vmem:[%s9154_s12 + $0x7c] sm:$0xff]  }
 0x1af   : > { %v3131_v54 = vpop.f32.mrf.mxu0  ;;  %8393 = vmatprep.mubr.msk.bf16.mxu1 %vm943_vm2, %v8764_v42  ;;  %v3013_v55 = vpop.f32.mrf.mxu1  ;;  %8403 = vmatprep.mubr.msk.bf16.mxu0 %vm943_vm2, %v8765_v45  ;;  %v8777_v42 = vld [vmem:[%s9154_s12 + $0x16c] sm:$0xff]  }
 0x1b0   : > { %8515 = vmatprep.subr.msk.bf16.mxu1 %vm956_vm1, %v7651_v49  ;;  %v3164_v56 = vadd.f32 %v8161_v48, %v3046_v53  ;;  %v3044_v57 = vadd.f32 %v3013_v55, %v2926_v19  ;;  %8516 = vmatprep.subr.msk.bf16.mxu0 %vm956_vm1, %v7668_v51 }
 0x1b1   : > { %v8162_v58 = vpop.f32.mrf.mxu0  ;;  %v8152_v60 = vpop.f32.mrf.mxu1 }
 0x1b2   : > { %v3162_v63 = vadd.f32 %v3131_v54, %v3044_v57  ;;  %v3047_v0 = vadd.f32 %v8152_v60, %v2929_v24  ;;  %v6281_v24 = vsel %vm956_vm1, %v7651_v49, 0 }
 0x1b3   : > { %v3134_v1 = vpop.f32.mrf.mxu0  ;;  %v3016_v3 = vpop.f32.mrf.mxu1 }
 0x1b4   : > { %v3165_v4 = vadd.f32 %v8162_v58, %v3047_v0  ;;  %v3045_v5 = vadd.f32 %v3016_v3, %v2927_v28 }
 0x1b5   : > { %v8165_v6 = vpop.f32.mrf.mxu0  ;;  %8404 = vmatmul.mubr.msk.bf16.gmra.mxu0 %vm943_vm2, %v8767_v59  ;;  %v8155_v7 = vpop.f32.mrf.mxu1  ;;  %8394 = vmatmul.mubr.msk.bf16.gmra.mxu1 %vm943_vm2, %v8766_v61  ;;  %v8779_v59 = vld [vmem:[%s9154_s12 + $0x174] sm:$0xff]   ;;  %v8778_v61 = vld [vmem:[%s9154_s12 + $0x11c] sm:$0xff]  }
 0x1b6   : > { %8419 = vmatprep.mubr.msk.bf16.mxu0 %vm943_vm2, %v8769_v62  ;;  %v3163_v8 = vadd.f32 %v3134_v1, %v3045_v5  ;;  %v3050_v9 = vadd.f32 %v8155_v7, %v2932_v32  ;;  %8409 = vmatprep.mubr.msk.bf16.mxu1 %vm943_vm2, %v8768_v2  ;;  %v6635_v1 = vsel %vm956_vm1, %v7702_v31, 0  ;;  %v8780_v2 = vld [vmem:[%s9154_s12 + $0x124] sm:$0xff]   ;;  %v8781_v5 = vld [vmem:[%s9154_s12 + $0x17c] sm:$0xff]  }
 0x1b7   : > { %v3147_v10 = vpop.f32.mrf.mxu0  ;;  %v3029_v11 = vpop.f32.mrf.mxu1 }
 0x1b8   : > { %v3168_v12 = vadd.f32 %v8165_v6, %v3050_v9  ;;  %v3048_v13 = vadd.f32 %v3029_v11, %v2930_v38 }
 0x1b9   : > { %v8166_v14 = vpop.f32.mrf.mxu0  ;;  %v8156_v16 = vpop.f32.mrf.mxu1 }
 0x1ba   : > { %v3166_v18 = vadd.f32 %v3147_v10, %v3048_v13  ;;  %v3051_v19 = vadd.f32 %v8156_v16, %v2933_v46  ;;  %v8776_v46 = vld [vmem:[%s9154_s12 + $0x114] sm:$0xff]  }
 0x1bb   : > { %v3150_v20 = vpop.f32.mrf.mxu0  ;;  %v3032_v23 = vpop.f32.mrf.mxu1 }
 0x1bc   : > { %v3169_v26 = vadd.f32 %v8166_v14, %v3051_v19  ;;  %v3049_v27 = vadd.f32 %v3032_v23, %v2931_v52  ;;  %v8782_v19 = vld [vmem:[%s9154_s12 + $0x12c] sm:$0xff]  }
 0x1bd   : > { %v8181_v28 = vpop.f32.mrf.mxu0  ;;  %8420 = vmatmul.mubr.msk.bf16.vlgmr.msra.gmra.mxu0 %vm943_vm2, %v8771_v15  ;;  %v8171_v30 = vpop.f32.mrf.mxu1  ;;  %8410 = vmatmul.mubr.msk.bf16.vlgmr.msra.gmra.mxu1 %vm943_vm2, %v8770_v17  ;;  %v8783_v17 = vld [vmem:[%s9154_s12 + $0x184] sm:$0xff]  }
 0x1be   : > { %8438 = vmatpush3.bf16.msra.mxu0 %v6399_v21  ;;  %v3167_v32 = vadd.f32 %v3150_v20, %v3049_v27  ;;  %v3282_v33 = vadd.f32 %v8171_v30, %v3164_v56  ;;  %8428 = vmatpush3.bf16.msra.mxu1 %v6281_v24  ;;  %v8785_v20 = vld [vmem:[%s9154_s12 + $0x21c] sm:$0xff]   ;;  %v8784_v24 = vld [vmem:[%s9154_s12 + $0x1c4] sm:$0xff]  }
 0x1bf   : > { %v3367_v34 = vpop.f32.mrf.mxu0  ;;  %8413 = vmatprep.mubr.msk.bf16.mxu1 %vm943_vm2, %v8772_v22  ;;  %v3249_v35 = vpop.f32.mrf.mxu1  ;;  %8423 = vmatprep.mubr.msk.bf16.mxu0 %vm943_vm2, %v8773_v25 }
 0x1c0   : > { %8517 = vmatprep.subr.msk.bf16.mxu1 %vm956_vm1, %v7685_v29  ;;  %v3400_v36 = vadd.f32 %v8181_v28, %v3282_v33  ;;  %v3280_v37 = vadd.f32 %v3249_v35, %v3162_v63  ;;  %8518 = vmatprep.subr.msk.bf16.mxu0 %vm956_vm1, %v7702_v31 }
 0x1c1   : > { %v8182_v38 = vpop.f32.mrf.mxu0  ;;  %v8172_v40 = vpop.f32.mrf.mxu1 }
 0x1c2   : > { %v3398_v43 = vadd.f32 %v3367_v34, %v3280_v37  ;;  %v3283_v44 = vadd.f32 %v8172_v40, %v3165_v4  ;;  %v6517_v4 = vsel %vm956_vm1, %v7685_v29, 0  ;;  %v8787_v37 = vld [vmem:[%s9154_s12 + $0x224] sm:$0xff]   ;;  %v8789_v40 = vld [vmem:[%s9154_s12 + $0x22c] sm:$0xff]  }
 0x1c3   : > { %v3370_v45 = vpop.f32.mrf.mxu0  ;;  %v3252_v47 = vpop.f32.mrf.mxu1 }
 0x1c4   : > { %v3401_v48 = vadd.f32 %v8182_v38, %v3283_v44  ;;  %v3281_v49 = vadd.f32 %v3252_v47, %v3163_v8  ;;  %v8788_v44 = vld [vmem:[%s9154_s12 + $0x1d4] sm:$0xff]  }
 0x1c5   : > { %v8185_v50 = vpop.f32.mrf.mxu0  ;;  %8424 = vmatmul.mubr.msk.bf16.gmra.mxu0 %vm943_vm2, %v8775_v39  ;;  %v8175_v51 = vpop.f32.mrf.mxu1  ;;  %8414 = vmatmul.mubr.msk.bf16.gmra.mxu1 %vm943_vm2, %v8774_v41  ;;  %v8786_v39 = vld [vmem:[%s9154_s12 + $0x1cc] sm:$0xff]  }
 0x1c6   : > { %8439 = vmatprep.mubr.msk.bf16.mxu0 %vm943_vm2, %v8777_v42  ;;  %v3399_v52 = vadd.f32 %v3370_v45, %v3281_v49  ;;  %v3286_v53 = vadd.f32 %v8175_v51, %v3168_v12  ;;  %8429 = vmatprep.mubr.msk.bf16.mxu1 %vm943_vm2, %v8776_v46 }
 0x1c7   : > { %v3383_v54 = vpop.f32.mrf.mxu0  ;;  %v3265_v55 = vpop.f32.mrf.mxu1 }
 0x1c8   : > { %v3404_v56 = vadd.f32 %v8185_v50, %v3286_v53  ;;  %v3284_v57 = vadd.f32 %v3265_v55, %v3166_v18 }
 0x1c9   : > { %v8186_v58 = vpop.f32.mrf.mxu0  ;;  %v8176_v60 = vpop.f32.mrf.mxu1 }
 0x1ca   : > { %v3402_v62 = vadd.f32 %v3383_v54, %v3284_v57  ;;  %v3287_v63 = vadd.f32 %v8176_v60, %v3169_v26  ;;  %v8791_v57 = vld [vmem:[%s9154_s12 + $0x234] sm:$0xff]  }
 0x1cb   : > { %v3386_v0 = vpop.f32.mrf.mxu0  ;;  %v3268_v3 = vpop.f32.mrf.mxu1 }
 0x1cc   : > { %v3405_v6 = vadd.f32 %v8186_v58, %v3287_v63  ;;  %v3285_v7 = vadd.f32 %v3268_v3, %v3167_v32 }
 0x1cd   : > { %v8201_v8 = vpop.f32.mrf.mxu0  ;;  %8440 = vmatmul.mubr.msk.bf16.vlgmr.msra.gmra.mxu0 %vm943_vm2, %v8779_v59  ;;  %v8191_v9 = vpop.f32.mrf.mxu1  ;;  %8430 = vmatmul.mubr.msk.bf16.vlgmr.msra.gmra.mxu1 %vm943_vm2, %v8778_v61  ;;  %v8790_v59 = vld [vmem:[%s9154_s12 + $0x1dc] sm:$0xff]  }
 0x1ce   : > { %8458 = vmatpush3.bf16.msra.mxu0 %v6635_v1  ;;  %v3403_v10 = vadd.f32 %v3386_v0, %v3285_v7  ;;  %v3518_v11 = vadd.f32 %v8191_v9, %v3400_v36  ;;  %8448 = vmatpush3.bf16.msra.mxu1 %v6517_v4 }
 0x1cf   : > { %v3603_v12 = vpop.f32.mrf.mxu0  ;;  %8433 = vmatprep.mubr.msk.bf16.mxu1 %vm943_vm2, %v8780_v2  ;;  %v3485_v13 = vpop.f32.mrf.mxu1  ;;  %8443 = vmatprep.mubr.msk.bf16.mxu0 %vm943_vm2, %v8781_v5 }
 0x1d0   : > { %v3636_v14 = vadd.f32 %v8201_v8, %v3518_v11  ;;  %v3516_v15 = vadd.f32 %v3485_v13, %v3398_v43 }
 0x1d1   : > { %v8202_v16 = vpop.f32.mrf.mxu0  ;;  %v8192_v18 = vpop.f32.mrf.mxu1 }
 0x1d2   : > { %v3634_v21 = vadd.f32 %v3603_v12, %v3516_v15  ;;  %v3519_v22 = vadd.f32 %v8192_v18, %v3401_v48 }
 0x1d3   : > { %v3606_v23 = vpop.f32.mrf.mxu0  ;;  %v3488_v25 = vpop.f32.mrf.mxu1 }
 0x1d4   : > { %v3637_v26 = vadd.f32 %v8202_v16, %v3519_v22  ;;  %v3517_v27 = vadd.f32 %v3488_v25, %v3399_v52 }
 0x1d5   : > { %v8205_v28 = vpop.f32.mrf.mxu0  ;;  %8444 = vmatmul.mubr.msk.bf16.gmra.mxu0 %vm943_vm2, %v8783_v17  ;;  %v8195_v29 = vpop.f32.mrf.mxu1  ;;  %8434 = vmatmul.mubr.msk.bf16.gmra.mxu1 %vm943_vm2, %v8782_v19 }
 0x1d6   : > { %8459 = vmatprep.mubr.msk.bf16.mxu0 %vm943_vm2, %v8785_v20  ;;  %v3635_v30 = vadd.f32 %v3606_v23, %v3517_v27  ;;  %v3522_v31 = vadd.f32 %v8195_v29, %v3404_v56  ;;  %8449 = vmatprep.mubr.msk.bf16.mxu1 %vm943_vm2, %v8784_v24 }
 0x1d7   : > { %v3619_v32 = vpop.f32.mrf.mxu0  ;;  %v3501_v33 = vpop.f32.mrf.mxu1 }
 0x1d8   : > { %v3640_v34 = vadd.f32 %v8205_v28, %v3522_v31  ;;  %v3520_v35 = vadd.f32 %v3501_v33, %v3402_v62 }
 0x1d9   : > { %v8206_v36 = vpop.f32.mrf.mxu0  ;;  %v8196_v38 = vpop.f32.mrf.mxu1 }
 0x1da   : > { %v3638_v41 = vadd.f32 %v3619_v32, %v3520_v35  ;;  %v3523_v42 = vadd.f32 %v8196_v38, %v3405_v6 }
 0x1db   : > { %v3622_v43 = vpop.f32.mrf.mxu0  ;;  %v3504_v45 = vpop.f32.mrf.mxu1 }
 0x1dc   : > { %v3641_v46 = vadd.f32 %v8206_v36, %v3523_v42  ;;  %v3521_v47 = vadd.f32 %v3504_v45, %v3403_v10 }
 0x1dd   : > { %v8221_v48 = vpop.f32.mrf.mxu0  ;;  %8460 = vmatmul.mubr.msk.bf16.vlgmr.msra.gmra.mxu0 %vm943_vm2, %v8787_v37  ;;  %v8211_v49 = vpop.f32.mrf.mxu1  ;;  %8450 = vmatmul.mubr.msk.bf16.vlgmr.msra.gmra.mxu1 %vm943_vm2, %v8786_v39 }
 0x1de   : > { %8463 = vmatprep.mubr.msk.bf16.mxu0 %vm943_vm2, %v8789_v40  ;;  %v3639_v50 = vadd.f32 %v3622_v43, %v3521_v47  ;;  %v3754_v51 = vadd.f32 %v8211_v49, %v3636_v14  ;;  %8453 = vmatprep.mubr.msk.bf16.mxu1 %vm943_vm2, %v8788_v44 }
 0x1df   : > { %v3839_v52 = vpop.f32.mrf.mxu0  ;;  %v3721_v53 = vpop.f32.mrf.mxu1 }
 0x1e0   : > { %v3872_v54 = vadd.f32 %v8221_v48, %v3754_v51  ;;  %v3752_v55 = vadd.f32 %v3721_v53, %v3634_v21 }
 0x1e1   : > { %v8222_v56 = vpop.f32.mrf.mxu0  ;;  %v8212_v58 = vpop.f32.mrf.mxu1 }
 0x1e2   : > { %v3870_v60 = vadd.f32 %v3839_v52, %v3752_v55  ;;  %v3755_v61 = vadd.f32 %v8212_v58, %v3637_v26 }
 0x1e3   : > { %v3842_v62 = vpop.f32.mrf.mxu0  ;;  %v3724_v63 = vpop.f32.mrf.mxu1 }
 0x1e4   : > { %v3873_v0 = vadd.f32 %v8222_v56, %v3755_v61  ;;  %v3753_v1 = vadd.f32 %v3724_v63, %v3635_v30 }
 0x1e5   : > { %v8225_v2 = vpop.f32.mrf.mxu0  ;;  %8464 = vmatmul.mubr.msk.bf16.gmra.mxu0 %vm943_vm2, %v8791_v57  ;;  %v8215_v3 = vpop.f32.mrf.mxu1  ;;  %8454 = vmatmul.mubr.msk.bf16.gmra.mxu1 %vm943_vm2, %v8790_v59 }
 0x1e6   : > { %v3871_v4 = vadd.f32 %v3842_v62, %v3753_v1  ;;  %v3758_v5 = vadd.f32 %v8215_v3, %v3640_v34 }
 0x1e7   : > { %v3855_v6 = vpop.f32.mrf.mxu0  ;;  %v3737_v7 = vpop.f32.mrf.mxu1 }
 0x1e8   : > { %v3876_v8 = vadd.f32 %v8225_v2, %v3758_v5  ;;  %v3756_v9 = vadd.f32 %v3737_v7, %v3638_v41 }
 0x1e9   : > { %v8226_v10 = vpop.f32.mrf.mxu0  ;;  %v8216_v11 = vpop.f32.mrf.mxu1 }
 0x1ea   : > { %v3874_v12 = vadd.f32 %v3855_v6, %v3756_v9  ;;  %v3759_v13 = vadd.f32 %v8216_v11, %v3641_v46 }
 0x1eb   : > { %v3858_v14 = vpop.f32.mrf.mxu0  ;;  %v3740_v15 = vpop.f32.mrf.mxu1 }
 0x1ec   : > { %v3877_v16 = vadd.f32 %v8226_v10, %v3759_v13  ;;  %v3757_v17 = vadd.f32 %v3740_v15, %v3639_v50 }
 0x1ed   : > { %v8241_v18 = vpop.f32.mrf.mxu0  ;;  %v8231_v19 = vpop.f32.mrf.mxu1 }
 0x1ee   : > { %v3875_v20 = vadd.f32 %v3858_v14, %v3757_v17  ;;  %v3990_v21 = vadd.f32 %v8231_v19, %v3872_v54 }
 0x1ef   : > { %v4075_v22 = vpop.f32.mrf.mxu0  ;;  %v3957_v23 = vpop.f32.mrf.mxu1 }
 0x1f0   : > { %v4108_v24 = vadd.f32 %v8241_v18, %v3990_v21  ;;  %v3988_v25 = vadd.f32 %v3957_v23, %v3870_v60 }
 0x1f1   : > { %v8242_v26 = vpop.f32.mrf.mxu0  ;;  %v8232_v27 = vpop.f32.mrf.mxu1 }
 0x1f2   : > { %v4106_v28 = vadd.f32 %v4075_v22, %v3988_v25  ;;  %v3991_v29 = vadd.f32 %v8232_v27, %v3873_v0 }
 0x1f3   : > { %v4078_v30 = vpop.f32.mrf.mxu0  ;;  %v3960_v31 = vpop.f32.mrf.mxu1 }
 0x1f4   : > { %v4109_v32 = vadd.f32 %v8242_v26, %v3991_v29  ;;  %v3989_v33 = vadd.f32 %v3960_v31, %v3871_v4 }
 0x1f5   : > { %v8245_v34 = vpop.f32.mrf.mxu0  ;;  %v8235_v35 = vpop.f32.mrf.mxu1 }
 0x1f6   : > { %v4107_v36 = vadd.f32 %v4078_v30, %v3989_v33  ;;  %v3994_v37 = vadd.f32 %v8235_v35, %v3876_v8 }
 0x1f7   : > { %v4091_v38 = vpop.f32.mrf.mxu0  ;;  %v3973_v39 = vpop.f32.mrf.mxu1 }
 0x1f8   : > { %v4112_v40 = vadd.f32 %v8245_v34, %v3994_v37  ;;  %v3992_v41 = vadd.f32 %v3973_v39, %v3874_v12 }
 0x1f9   : > { %v8246_v42 = vpop.f32.mrf.mxu0  ;;  %v8236_v43 = vpop.f32.mrf.mxu1 }
 0x1fa   : > { %v4110_v44 = vadd.f32 %v4091_v38, %v3992_v41  ;;  %v3995_v45 = vadd.f32 %v8236_v43, %v3877_v16 }
 0x1fb   : > { %v4094_v46 = vpop.f32.mrf.mxu0  ;;  %v3976_v47 = vpop.f32.mrf.mxu1 }
 0x1fc   : > { %v4113_v48 = vadd.f32 %v8246_v42, %v3995_v45  ;;  %v3993_v49 = vadd.f32 %v3976_v47, %v3875_v20 }
 0x1fd   : > { %v8261_v50 = vpop.f32.mrf.mxu0  ;;  %v8251_v51 = vpop.f32.mrf.mxu1 }
 0x1fe   : > { %v4111_v52 = vadd.f32 %v4094_v46, %v3993_v49  ;;  %v4226_v53 = vadd.f32 %v8251_v51, %v4108_v24 }
 0x1ff   : > { %v4311_v54 = vpop.f32.mrf.mxu0  ;;  %v4193_v55 = vpop.f32.mrf.mxu1 }
 0x200   : > { %v4344_v56 = vadd.f32 %v8261_v50, %v4226_v53  ;;  %v4224_v57 = vadd.f32 %v4193_v55, %v4106_v28 }
 0x201   : > { %v8262_v58 = vpop.f32.mrf.mxu0  ;;  %v8252_v59 = vpop.f32.mrf.mxu1 }
 0x202   : > { %v4342_v60 = vadd.f32 %v4311_v54, %v4224_v57  ;;  %v4227_v61 = vadd.f32 %v8252_v59, %v4109_v32 }
 0x203   : > { %v4314_v62 = vpop.f32.mrf.mxu0  ;;  %v4196_v63 = vpop.f32.mrf.mxu1 }
 0x204   : > { %v4345_v0 = vadd.f32 %v8262_v58, %v4227_v61  ;;  %v4225_v1 = vadd.f32 %v4196_v63, %v4107_v36 }
 0x205   : > { %v8265_v2 = vpop.f32.mrf.mxu0  ;;  %v8255_v3 = vpop.f32.mrf.mxu1 }
 0x206   : > { %v4343_v4 = vadd.f32 %v4314_v62, %v4225_v1  ;;  %v4230_v5 = vadd.f32 %v8255_v3, %v4112_v40 }
 0x207   : > { %v4327_v6 = vpop.f32.mrf.mxu0  ;;  %v4209_v7 = vpop.f32.mrf.mxu1 }
 0x208   : > { %v4348_v8 = vadd.f32 %v8265_v2, %v4230_v5  ;;  %v4228_v9 = vadd.f32 %v4209_v7, %v4110_v44 }
 0x209   : > { %v8266_v10 = vpop.f32.mrf.mxu0  ;;  %v8256_v11 = vpop.f32.mrf.mxu1 }
 0x20a   : > { %v4346_v12 = vadd.f32 %v4327_v6, %v4228_v9  ;;  %v4231_v13 = vadd.f32 %v8256_v11, %v4113_v48 }
 0x20b   : > { %v4330_v14 = vpop.f32.mrf.mxu0  ;;  %v4212_v15 = vpop.f32.mrf.mxu1 }
 0x20c   : > { %v4349_v16 = vadd.f32 %v8266_v10, %v4231_v13  ;;  %v4229_v17 = vadd.f32 %v4212_v15, %v4111_v52 }
 0x20d   : > { %v8281_v18 = vpop.f32.mrf.mxu0  ;;  %v8271_v19 = vpop.f32.mrf.mxu1 }
 0x20e   : > { %v4347_v20 = vadd.f32 %v4330_v14, %v4229_v17  ;;  %v4462_v21 = vadd.f32 %v8271_v19, %v4344_v56 }
 0x20f   : > { %v4547_v22 = vpop.f32.mrf.mxu0  ;;  %v4429_v23 = vpop.f32.mrf.mxu1 }
 0x210   : > { %v4580_v24 = vadd.f32 %v8281_v18, %v4462_v21  ;;  %v4460_v25 = vadd.f32 %v4429_v23, %v4342_v60 }
 0x211   : > { %v8282_v26 = vpop.f32.mrf.mxu0  ;;  %v8272_v27 = vpop.f32.mrf.mxu1 }
 0x212   : > { %v4578_v28 = vadd.f32 %v4547_v22, %v4460_v25  ;;  %v4463_v29 = vadd.f32 %v8272_v27, %v4345_v0 }
 0x213   : > { %v4550_v30 = vpop.f32.mrf.mxu0  ;;  %v4432_v31 = vpop.f32.mrf.mxu1 }
 0x214   : > { %v4581_v32 = vadd.f32 %v8282_v26, %v4463_v29  ;;  %v4461_v33 = vadd.f32 %v4432_v31, %v4343_v4 }
 0x215   : > { %v8285_v34 = vpop.f32.mrf.mxu0  ;;  %v8275_v35 = vpop.f32.mrf.mxu1 }
 0x216   : > { %v4579_v36 = vadd.f32 %v4550_v30, %v4461_v33  ;;  %v4466_v37 = vadd.f32 %v8275_v35, %v4348_v8 }
 0x217   : > { %v4563_v38 = vpop.f32.mrf.mxu0  ;;  %v4445_v39 = vpop.f32.mrf.mxu1 }
 0x218   : > { %v4584_v40 = vadd.f32 %v8285_v34, %v4466_v37  ;;  %v4464_v41 = vadd.f32 %v4445_v39, %v4346_v12 }
 0x219   : > { %v8286_v42 = vpop.f32.mrf.mxu0  ;;  %v8276_v43 = vpop.f32.mrf.mxu1 }
 0x21a   : > { %v4582_v44 = vadd.f32 %v4563_v38, %v4464_v41  ;;  %v4467_v45 = vadd.f32 %v8276_v43, %v4349_v16 }
 0x21b   : > { %v4566_v46 = vpop.f32.mrf.mxu0  ;;  %v4448_v47 = vpop.f32.mrf.mxu1 }
 0x21c   : > { %v4585_v48 = vadd.f32 %v8286_v42, %v4467_v45  ;;  %v4465_v49 = vadd.f32 %v4448_v47, %v4347_v20 }
 0x21d   : > { %v8301_v50 = vpop.f32.mrf.mxu0  ;;  %v8291_v51 = vpop.f32.mrf.mxu1 }
 0x21e   : > { %v4583_v52 = vadd.f32 %v4566_v46, %v4465_v49  ;;  %v4698_v53 = vadd.f32 %v8291_v51, %v4580_v24 }
 0x21f   : > { %v4783_v54 = vpop.f32.mrf.mxu0  ;;  %v4665_v55 = vpop.f32.mrf.mxu1 }
 0x220   : > { %v4816_v56 = vadd.f32 %v8301_v50, %v4698_v53  ;;  %v4696_v57 = vadd.f32 %v4665_v55, %v4578_v28 }
 0x221   : > { %v8302_v58 = vpop.f32.mrf.mxu0  ;;  %v8292_v59 = vpop.f32.mrf.mxu1 }
 0x222   : > { %v4814_v60 = vadd.f32 %v4783_v54, %v4696_v57  ;;  %v4699_v61 = vadd.f32 %v8292_v59, %v4581_v32 }
 0x223   : > { %v4786_v62 = vpop.f32.mrf.mxu0  ;;  %v4668_v63 = vpop.f32.mrf.mxu1 }
 0x224   : > { %v4817_v0 = vadd.f32 %v8302_v58, %v4699_v61  ;;  %v4697_v1 = vadd.f32 %v4668_v63, %v4579_v36 }
 0x225   : > { %v8305_v2 = vpop.f32.mrf.mxu0  ;;  %v8295_v3 = vpop.f32.mrf.mxu1 }
 0x226   : > { %v4815_v4 = vadd.f32 %v4786_v62, %v4697_v1  ;;  %v4702_v5 = vadd.f32 %v8295_v3, %v4584_v40 }
 0x227   : > { %v4799_v6 = vpop.f32.mrf.mxu0  ;;  %v4681_v7 = vpop.f32.mrf.mxu1 }
 0x228   : > { %v4820_v8 = vadd.f32 %v8305_v2, %v4702_v5  ;;  %v4700_v9 = vadd.f32 %v4681_v7, %v4582_v44 }
 0x229   : > { %v8306_v10 = vpop.f32.mrf.mxu0  ;;  %v8296_v11 = vpop.f32.mrf.mxu1 }
 0x22a   : > { %v4818_v12 = vadd.f32 %v4799_v6, %v4700_v9  ;;  %v4703_v13 = vadd.f32 %v8296_v11, %v4585_v48 }
 0x22b   : > { %v4802_v14 = vpop.f32.mrf.mxu0  ;;  %v4684_v15 = vpop.f32.mrf.mxu1 }
 0x22c   : > { %v4821_v16 = vadd.f32 %v8306_v10, %v4703_v13  ;;  %v4701_v17 = vadd.f32 %v4684_v15, %v4583_v52 }
 0x22d   : > { %v8321_v18 = vpop.f32.mrf.mxu0  ;;  %v8311_v19 = vpop.f32.mrf.mxu1 }
 0x22e   : > { %v4819_v20 = vadd.f32 %v4802_v14, %v4701_v17  ;;  %v4934_v21 = vadd.f32 %v8311_v19, %v4816_v56 }
 0x22f   : > { %v5019_v22 = vpop.f32.mrf.mxu0  ;;  %v4901_v23 = vpop.f32.mrf.mxu1 }
 0x230   : > { %v5052_v24 = vadd.f32 %v8321_v18, %v4934_v21  ;;  %v4932_v25 = vadd.f32 %v4901_v23, %v4814_v60 }
 0x231   : > { %v8322_v26 = vpop.f32.mrf.mxu0  ;;  %v8312_v27 = vpop.f32.mrf.mxu1 }
 0x232   : > { %v5050_v28 = vadd.f32 %v5019_v22, %v4932_v25  ;;  %v4935_v29 = vadd.f32 %v8312_v27, %v4817_v0 }
 0x233   : > { %v5022_v30 = vpop.f32.mrf.mxu0  ;;  %v4904_v31 = vpop.f32.mrf.mxu1 }
 0x234   : > { %v5053_v32 = vadd.f32 %v8322_v26, %v4935_v29  ;;  %v4933_v33 = vadd.f32 %v4904_v31, %v4815_v4 }
 0x235   : > { %v8325_v34 = vpop.f32.mrf.mxu0  ;;  %v8315_v35 = vpop.f32.mrf.mxu1 }
 0x236   : > { %v5051_v36 = vadd.f32 %v5022_v30, %v4933_v33  ;;  %v4938_v37 = vadd.f32 %v8315_v35, %v4820_v8 }
 0x237   : > { %v5035_v38 = vpop.f32.mrf.mxu0  ;;  %v4917_v39 = vpop.f32.mrf.mxu1 }
 0x238   : > { %v5056_v40 = vadd.f32 %v8325_v34, %v4938_v37  ;;  %v4936_v41 = vadd.f32 %v4917_v39, %v4818_v12 }
 0x239   : > { %v8326_v42 = vpop.f32.mrf.mxu0  ;;  %v8316_v43 = vpop.f32.mrf.mxu1 }
 0x23a   : > { %v5054_v44 = vadd.f32 %v5035_v38, %v4936_v41  ;;  %v4939_v45 = vadd.f32 %v8316_v43, %v4821_v16 }
 0x23b   : > { %v5038_v46 = vpop.f32.mrf.mxu0  ;;  %v4920_v47 = vpop.f32.mrf.mxu1 }
 0x23c   : > { %v5057_v48 = vadd.f32 %v8326_v42, %v4939_v45  ;;  %v4937_v49 = vadd.f32 %v4920_v47, %v4819_v20 }
 0x23d   : > { %v8341_v50 = vpop.f32.mrf.mxu0  ;;  %v8331_v51 = vpop.f32.mrf.mxu1 }
 0x23e   : > { %v5055_v52 = vadd.f32 %v5038_v46, %v4937_v49  ;;  %v5170_v53 = vadd.f32 %v8331_v51, %v5052_v24 }
 0x23f   : > { %v5255_v54 = vpop.f32.mrf.mxu0  ;;  %v5137_v55 = vpop.f32.mrf.mxu1 }
 0x240   : > { %v9701_v56 = vadd.f32 %v8341_v50, %v5170_v53  ;;  %v5168_v57 = vadd.f32 %v5137_v55, %v5050_v28 }
 0x241   : > { %v8342_v58 = vpop.f32.mrf.mxu0  ;;  %v8332_v59 = vpop.f32.mrf.mxu1 }
 0x242   : > { %v9703_v60 = vadd.f32 %v5255_v54, %v5168_v57  ;;  %v5171_v61 = vadd.f32 %v8332_v59, %v5053_v32 }
 0x243   : > { %v5258_v62 = vpop.f32.mrf.mxu0  ;;  %v5140_v63 = vpop.f32.mrf.mxu1 }
 0x244   : > { %v9705_v0 = vadd.f32 %v8342_v58, %v5171_v61  ;;  %v5169_v1 = vadd.f32 %v5140_v63, %v5051_v36 }
 0x245   : > { %v8345_v2 = vpop.f32.mrf.mxu0  ;;  %v8335_v3 = vpop.f32.mrf.mxu1 }
 0x246   : > { %v9707_v4 = vadd.f32 %v5258_v62, %v5169_v1  ;;  %v5174_v5 = vadd.f32 %v8335_v3, %v5056_v40 }
 0x247   : > { %v5271_v6 = vpop.f32.mrf.mxu0  ;;  %v5153_v7 = vpop.f32.mrf.mxu1 }
 0x248   : > { %v9709_v8 = vadd.f32 %v8345_v2, %v5174_v5  ;;  %v5172_v9 = vadd.f32 %v5153_v7, %v5054_v44 }
 0x249   : > { %v8346_v10 = vpop.f32.mrf.mxu0  ;;  %v8336_v11 = vpop.f32.mrf.mxu1 }
 0x24a   : > { %v9711_v12 = vadd.f32 %v5271_v6, %v5172_v9  ;;  %v5175_v13 = vadd.f32 %v8336_v11, %v5057_v48 }
 0x24b   : > { %v5274_v14 = vpop.f32.mrf.mxu0  ;;  %v5156_v15 = vpop.f32.mrf.mxu1 }
 0x24c   : > { %v9713_v16 = vadd.f32 %v8346_v10, %v5175_v13  ;;  %v5173_v17 = vadd.f32 %v5156_v15, %v5055_v52 }
 0x24d   : > { %v8361_v18 = vpop.f32.mrf.mxu0  ;;  %v8351_v19 = vpop.f32.mrf.mxu1 }
 0x24e   : > { %v9715_v20 = vadd.f32 %v5274_v14, %v5173_v17  ;;  %v5406_v13 = vadd.f32 %v8351_v19, %v9701_v56 }
 0x24f   : > { %v5491_v21 = vpop.f32.mrf.mxu0  ;;  %v5373_v22 = vpop.f32.mrf.mxu1 }
 0x250   : > { %v5404_v17 = vadd.f32 %v5373_v22, %v9703_v60 }
 0x251   : > { %v9717_v23 = vpop.f32.mrf.mxu0  ;;  %v8352_v24 = vpop.f32.mrf.mxu1 }
 0x253   : > { %v9719_v25 = vpop.f32.mrf.mxu0  ;;  %v5376_v26 = vpop.f32.mrf.mxu1 }
 0x254   : > { %v5405_v56 = vadd.f32 %v5376_v26, %v9707_v4 }
 0x255   : > { %v9721_v27 = vpop.f32.mrf.mxu0  ;;  %v8355_v28 = vpop.f32.mrf.mxu1 }
 0x256   : > { %v5410_v22 = vadd.f32 %v8355_v28, %v9709_v8 }
 0x257   : > { %v9723_v29 = vpop.f32.mrf.mxu0  ;;  %v5389_v30 = vpop.f32.mrf.mxu1 }
 0x258   : > { %v5528_v8 = vadd.f32 %v9721_v27, %v5410_v22 }
 0x259   : > { %v9725_v31 = vpop.f32.mrf.mxu0  ;;  %v9727_v32 = vpop.f32.mrf.mxu1 }
 0x25b   : > { %v9729_v33 = vpop.f32.mrf.mxu0  ;;  %v9731_v34 = vpop.f32.mrf.mxu1 }
 0x25d   : > { %v8381_v35 = vpop.f32.mrf.mxu0  ;;  %v8371_v36 = vpop.f32.mrf.mxu1 }
 0x25f   : > { %v5727_v37 = vpop.f32.mrf.mxu0  ;;  %v5609_v38 = vpop.f32.mrf.mxu1 }
 0x261   : > { %v9733_v39 = vpop.f32.mrf.mxu0  ;;  %v8372_v40 = vpop.f32.mrf.mxu1 }
 0x263   : > { %v9735_v41 = vpop.f32.mrf.mxu0  ;;  %v5612_v42 = vpop.f32.mrf.mxu1 }
 0x265   : > { %v9737_v43 = vpop.f32.mrf.mxu0  ;;  %v9739_v44 = vpop.f32.mrf.mxu1 }
 0x267   : > { %v9741_v45 = vpop.f32.mrf.mxu0  ;;  %v9743_v46 = vpop.f32.mrf.mxu1 }
 0x269   : > { %v9745_v47 = vpop.f32.mrf.mxu0  ;;  %v9747_v48 = vpop.f32.mrf.mxu1 }
 0x26b   : > { %v9749_v49 = vpop.f32.mrf.mxu0  ;;  %v9751_v50 = vpop.f32.mrf.mxu1 }
 0x26c   : > { %9920 = vst [vmem:[#allocation4_spill] sm:$0xff] %v9749_v49 }
 0x26d   : > { %v9753_v51 = vpop.f32.mrf.mxu0  ;;  %v8391_v52 = vpop.f32.mrf.mxu1 }
 0x26f   : > { %v9755_v53 = vpop.f32.mrf.mxu0  ;;  %v5845_v54 = vpop.f32.mrf.mxu1 }
 0x271   : > { %v9757_v55 = vpop.f32.mrf.mxu0  ;;  %v8392_v57 = vpop.f32.mrf.mxu1 }
 0x273   : > { %v9759_v58 = vpop.f32.mrf.mxu0  ;;  %v9761_v59 = vpop.f32.mrf.mxu1 }
 0x275   : > { %v9763_v61 = vpop.f32.mrf.mxu0  ;;  %v9765_v62 = vpop.f32.mrf.mxu1 }
 0x276   : > { %9921 = vst [vmem:[#allocation5_spill] sm:$0xff] %v9763_v61 }
 0x277   : > { %v9767_v63 = vpop.f32.mrf.mxu0  ;;  %v9769_v1 = vpop.f32.mrf.mxu1 }
 0x278   : > { %9922 = vst [vmem:[#allocation6_spill] sm:$0xff] %v9767_v63 }
 0x279   : > { %v9771_v2 = vpop.f32.mrf.mxu0  ;;  %v9773_v3 = vpop.f32.mrf.mxu1 }
 0x27a   : > { %9923 = vst [vmem:[#allocation7_spill] sm:$0xff] %v9771_v2  ;;  %9924 = vst [vmem:[#allocation8_spill] sm:$0xff] %v9773_v3 }
 0x27b   : > { %v9775_v5 = vpop.f32.mrf.mxu0  ;;  %v9777_v6 = vpop.f32.mrf.mxu1 }
 0x27c   : > { %9925 = vst [vmem:[#allocation9_spill] sm:$0xff] %v9775_v5  ;;  %9926 = vst [vmem:[#allocation10_spill] sm:$0xff] %v9777_v6  ;;  %v5524_v5 = vadd.f32 %v8361_v18, %v5406_v13  ;;  %v5407_v6 = vadd.f32 %v8352_v24, %v9705_v0  ;;  %v5408_v0 = vadd.f32 %v5389_v30, %v9711_v12 }
 0x27d   : > { %v9779_v7 = vpop.f32.mrf.mxu0  ;;  %v8411_v9 = vpop.f32.mrf.mxu1 }
 0x27e   : > { %v5642_v19 = vadd.f32 %v8371_v36, %v5524_v5  ;;  %v5525_v60 = vadd.f32 %v9717_v23, %v5407_v6  ;;  %v5411_v36 = vadd.f32 %v9727_v32, %v9713_v16  ;;  %v5526_v12 = vadd.f32 %v9723_v29, %v5408_v0 }
 0x27f   : > { %v9781_v10 = vpop.f32.mrf.mxu0  ;;  %v6081_v11 = vpop.f32.mrf.mxu1 }
 0x280   : > { %9927 = vst [vmem:[#allocation11_spill] sm:$0xff] %v9781_v10  ;;  %v5522_v10 = vadd.f32 %v5491_v21, %v5404_v17  ;;  %v5523_v21 = vadd.f32 %v9719_v25, %v5405_v56  ;;  %v5760_v13 = vadd.f32 %v8381_v35, %v5642_v19  ;;  %v5643_v4 = vadd.f32 %v8372_v40, %v5525_v60 }
 0x281   : > { %v9784_v14 = vpop.f32.mrf.mxu0  ;;  %v9786_v15 = vpop.f32.mrf.mxu1  ;;  %v5409_v25 = vadd.f32 %v9731_v34, %v9715_v20  ;;  %v5646_v40 = vadd.f32 %v9739_v44, %v5528_v8  ;;  %v5529_v32 = vadd.f32 %v9725_v31, %v5411_v36  ;;  %v5644_v27 = vadd.f32 %v9743_v46, %v5526_v12 }
 0x282   : > { %9928 = vst [vmem:[#allocation12_spill] sm:$0xff] %v9784_v14  ;;  %v5641_v28 = vadd.f32 %v5612_v42, %v5523_v21  ;;  %v5761_v35 = vadd.f32 %v9733_v39, %v5643_v4  ;;  %v9931_v21 = vld [vmem:[#allocation8_spill] sm:$0xff] }
 0x283   : > { %v9789_v2 = vpop.f32.mrf.mxu0  ;;  %v9791_v63 = vpop.f32.mrf.mxu1  ;;  %v5527_v20 = vadd.f32 %v9729_v33, %v5409_v25  ;;  %v5647_v34 = vadd.f32 %v9747_v48, %v5529_v32  ;;  %v5764_v44 = vadd.f32 %v9737_v43, %v5646_v40  ;;  %v5762_v56 = vadd.f32 %v9741_v45, %v5644_v27 }
 0x284   : > { %9929 = vst [vmem:[#allocation13_spill] sm:$0xff] %v9789_v2  ;;  %v5640_v2 = vadd.f32 %v5609_v38, %v5522_v10  ;;  %v5878_v38 = vadd.f32 %v8391_v52, %v5760_v13  ;;  %v5759_v42 = vadd.f32 %v9735_v41, %v5641_v28  ;;  %v5879_v29 = vadd.f32 %v8392_v57, %v5761_v35  ;;  %v9935_v28 = vld [vmem:[#allocation10_spill] sm:$0xff] }
 0x285   : > { %v9794_v61 = vpop.f32.mrf.mxu0  ;;  %v9796_v3 = vpop.f32.mrf.mxu1  ;;  %v5645_v41 = vadd.f32 %v9751_v50, %v5527_v20  ;;  %v5882_v33 = vadd.f32 %v9765_v62, %v5764_v44  ;;  %v5765_v60 = vadd.f32 %v9745_v47, %v5647_v34  ;;  %v5880_v43 = vadd.f32 %v9769_v1, %v5762_v56  ;;  %v9930_v50 = vld [vmem:[#allocation4_spill] sm:$0xff]  ;;  %v9932_v62 = vld [vmem:[#allocation5_spill] sm:$0xff] }
 0x286   : > { %v5758_v23 = vadd.f32 %v5727_v37, %v5640_v2  ;;  %v5996_v52 = vadd.f32 %v9753_v51, %v5878_v38  ;;  %v5877_v31 = vadd.f32 %v9761_v59, %v5759_v42  ;;  %v5997_v57 = vadd.f32 %v9757_v55, %v5879_v29  ;;  %v9939_v34 = vld [vmem:[#allocation9_spill] sm:$0xff] }
 0x287   : > { %v9799_v14 = vpop.f32.mrf.mxu0  ;;  %v9801_v49 = vpop.f32.mrf.mxu1  ;;  %v5763_v0 = vadd.f32 %v9930_v50, %v5645_v41  ;;  %v5883_v55 = vadd.f32 %v9931_v21, %v5765_v60  ;;  %v9933_v4 = vld [vmem:[#allocation11_spill] sm:$0xff] }
 0x288   : > { %v5876_v10 = vadd.f32 %v5845_v54, %v5758_v23  ;;  %v6114_v17 = vadd.f32 %v8411_v9, %v5996_v52  ;;  %v5995_v59 = vadd.f32 %v9759_v58, %v5877_v31  ;;  %v6115_v45 = vadd.f32 %v9786_v15, %v5997_v57  ;;  %v9934_v23 = vld [vmem:[#allocation6_spill] sm:$0xff] }
 0x289   : > { %v9805_v18 = vpop.f32.mrf.mxu0  ;;  %v9808_v24 = vpop.f32.mrf.mxu1  ;;  %v5998_v58 = vadd.f32 %v9934_v23, %v5880_v43  ;;  %v9936_v15 = vld [vmem:[#allocation12_spill] sm:$0xff] }
 0x28a   : > { %v5994_v54 = vadd.f32 %v9755_v53, %v5876_v10  ;;  %v6232_v9 = vadd.f32 %v9779_v7, %v6114_v17  ;;  %v6113_v47 = vadd.f32 %v9791_v63, %v5995_v59  ;;  %v5881_v7 = vadd.f32 %v9935_v28, %v5763_v0  ;;  %v9937_v10 = vld [vmem:[#allocation7_spill] sm:$0xff] }
 0x28b   : > { %v9811_v26 = vpop.f32.mrf.mxu0  ;;  %v9815_v5 = vpop.f32.mrf.mxu1  ;;  %v6233_v12 = vadd.f32 %v9936_v15, %v6115_v45  ;;  %v6001_v32 = vadd.f32 %v9937_v10, %v5883_v55  ;;  %v6116_v27 = vadd.f32 %v9801_v49, %v5998_v58  ;;  %v9938_v52 = vld [vmem:[#allocation13_spill] sm:$0xff] }
 0x28c   : > { %v6112_v19 = vadd.f32 %v6081_v11, %v5994_v54  ;;  %v6000_v11 = vadd.f32 %v9932_v62, %v5882_v33  ;;  %v6231_v63 = vadd.f32 %v9938_v52, %v6113_v47  ;;  %v5999_v44 = vadd.f32 %v9939_v34, %v5881_v7 }
 0x28d   : > { %v8441_v6 = vpop.f32.mrf.mxu0  ;;  %v8431_v30 = vpop.f32.mrf.mxu1  ;;  %v6119_v54 = vadd.f32 %v9808_v24, %v6001_v32  ;;  %v6234_v57 = vadd.f32 %v9799_v14, %v6116_v27 }
 0x28e   : > { %v6230_v36 = vadd.f32 %v9933_v4, %v6112_v19  ;;  %v6350_v1 = vadd.f32 %v8431_v30, %v6232_v9  ;;  %v6118_v25 = vadd.f32 %v9796_v3, %v6000_v11  ;;  %v6117_v49 = vadd.f32 %v9815_v5, %v5999_v44 }
 0x28f   : > { %v6435_v16 = vpop.f32.mrf.mxu0  ;;  %v6317_v37 = vpop.f32.mrf.mxu1  ;;  %v6237_v59 = vadd.f32 %v9805_v18, %v6119_v54 }
 0x290   : > { %v6348_v35 = vadd.f32 %v6317_v37, %v6230_v36  ;;  %v6468_v30 = vadd.f32 %v8441_v6, %v6350_v1  ;;  %v6236_v17 = vadd.f32 %v9794_v61, %v6118_v25  ;;  %v6235_v14 = vadd.f32 %v9811_v26, %v6117_v49 }
 0x291   : > { %v8442_v2 = vpop.f32.mrf.mxu0  ;;  %v8432_v39 = vpop.f32.mrf.mxu1 }
 0x292   : > { %v6351_v29 = vadd.f32 %v8432_v39, %v6233_v12  ;;  %v6466_v3 = vadd.f32 %v6435_v16, %v6348_v35 }
 0x293   : > { %v6438_v46 = vpop.f32.mrf.mxu0  ;;  %v6320_v51 = vpop.f32.mrf.mxu1 }
 0x294   : > { %v6349_v37 = vadd.f32 %v6320_v51, %v6231_v63  ;;  %v6469_v19 = vadd.f32 %v8442_v2, %v6351_v29 }
 0x295   : > { %v8445_v48 = vpop.f32.mrf.mxu0  ;;  %v8435_v53 = vpop.f32.mrf.mxu1 }
 0x296   : > { %v6354_v6 = vadd.f32 %v8435_v53, %v6236_v17  ;;  %v6467_v9 = vadd.f32 %v6438_v46, %v6349_v37 }
 0x297   : > { %v6451_v22 = vpop.f32.mrf.mxu0  ;;  %v6333_v13 = vpop.f32.mrf.mxu1 }
 0x298   : > { %v6352_v45 = vadd.f32 %v6333_v13, %v6234_v57  ;;  %v6472_v5 = vadd.f32 %v8445_v48, %v6354_v6 }
 0x299   : > { %v8446_v8 = vpop.f32.mrf.mxu0  ;;  %v8436_v38 = vpop.f32.mrf.mxu1 }
 0x29a   : > { %v6355_v0 = vadd.f32 %v8436_v38, %v6237_v59  ;;  %v6470_v18 = vadd.f32 %v6451_v22, %v6352_v45 }
 0x29b   : > { %v6454_v40 = vpop.f32.mrf.mxu0  ;;  %v6336_v42 = vpop.f32.mrf.mxu1 }
 0x29c   : > { %v6353_v62 = vadd.f32 %v6336_v42, %v6235_v14  ;;  %v6473_v36 = vadd.f32 %v8446_v8, %v6355_v0 }
 0x29d   : > { %v8461_v20 = vpop.f32.mrf.mxu0  ;;  %v8451_v31 = vpop.f32.mrf.mxu1 }
 0x29e   : > { %v6586_v56 = vadd.f32 %v8451_v31, %v6468_v30  ;;  %v6471_v23 = vadd.f32 %v6454_v40, %v6353_v62 }
 0x29f   : > { %v6671_v41 = vpop.f32.mrf.mxu0  ;;  %v6553_v33 = vpop.f32.mrf.mxu1 }
 0x2a0   : > { %v6704_v39 = vadd.f32 %v8461_v20, %v6586_v56  ;;  %v6584_v60 = vadd.f32 %v6553_v33, %v6466_v3 }
 0x2a1   : > { %v8462_v43 = vpop.f32.mrf.mxu0  ;;  %v8452_v24 = vpop.f32.mrf.mxu1 }
 0x2a2   : > { %6712 = vst.msk [vmem:[#allocation2 + $0x10] sm:$0xff] %vm943_vm2, %v6704_v39  ;;  %v6702_v61 = vadd.f32 %v6671_v41, %v6584_v60  ;;  %v6587_v16 = vadd.f32 %v8452_v24, %v6469_v19 }
 0x2a3   : > { %v6674_v51 = vpop.f32.mrf.mxu0  ;;  %v6556_v50 = vpop.f32.mrf.mxu1 }
 0x2a4   : > { %6710 = vst.msk [vmem:[#allocation2] sm:$0xff] %vm943_vm2, %v6702_v61  ;;  %v6705_v2 = vadd.f32 %v8462_v43, %v6587_v16  ;;  %v6585_v53 = vadd.f32 %v6556_v50, %v6467_v9 }
 0x2a5   : > { %v8465_v21 = vpop.f32.mrf.mxu0  ;;  %v8455_v55 = vpop.f32.mrf.mxu1 }
 0x2a6   : > { %6713 = vst.msk [vmem:[#allocation2 + $0x18] sm:$0xff] %vm943_vm2, %v6705_v2  ;;  %v6703_v46 = vadd.f32 %v6674_v51, %v6585_v53  ;;  %v6590_v13 = vadd.f32 %v8455_v55, %v6472_v5 }
 0x2a7   : > { %v6687_v11 = vpop.f32.mrf.mxu0  ;;  %v6569_v4 = vpop.f32.mrf.mxu1 }
 0x2a8   : > { %6711 = vst.msk [vmem:[#allocation2 + $0x8] sm:$0xff] %vm943_vm2, %v6703_v46  ;;  %v6708_v26 = vadd.f32 %v8465_v21, %v6590_v13  ;;  %v6588_v48 = vadd.f32 %v6569_v4, %v6470_v18 }
 0x2a9   : > { %v8456_v47 = vpop.f32.mrf.mxu1  ;;  %v8466_v1 = vpop.f32.mrf.mxu0 }
 0x2aa   : > { %6716 = vst.msk [vmem:[#allocation2 + $0x30] sm:$0xff] %vm943_vm2, %v6708_v26  ;;  %v6706_v58 = vadd.f32 %v6687_v11, %v6588_v48  ;;  %v6591_v28 = vadd.f32 %v8456_v47, %v6473_v36 }
 0x2ab   : > { %v6572_v22 = vpop.f32.mrf.mxu1  ;;  %v6690_v15 = vpop.f32.mrf.mxu0 }
 0x2ac   : > { %6714 = vst.msk [vmem:[#allocation2 + $0x20] sm:$0xff] %vm943_vm2, %v6706_v58  ;;  %v6709_v7 = vadd.f32 %v8466_v1, %v6591_v28  ;;  %v6589_v38 = vadd.f32 %v6572_v22, %v6471_v23  ;;  %6721 = sbr.rel (%p7711_p0) target bundleno = 703 (0x2bf), region = 81 }
 0x2ae   : > { %6717 = vst.msk [vmem:[#allocation2 + $0x38] sm:$0xff] %vm943_vm2, %v6709_v7  ;;  %v6707_v8 = vadd.f32 %v6690_v15, %v6589_v38 }
 0x2b0   : > { %6715 = vst.msk [vmem:[#allocation2 + $0x28] sm:$0xff] %vm943_vm2, %v6707_v8 }
 0x2b1   : > { %v6722_v12 = vld [vmem:[#allocation2] sm:$0xff]  ;;  %v6723_v35 = vld [vmem:[#allocation2 + $0x8] sm:$0xff]  ;;  %v6724_v32 = vld [vmem:[#allocation2 + $0x10] sm:$0xff]  ;;  %vm6785_vm3 = vcmask 60416  }
 0x2b2   : > { %v7712_v25 = vld [vmem:[%s9917_s2] ss:$0 sm:$0xff]  ;;  %v6725_v27 = vld [vmem:[#allocation2 + $0x18] sm:$0xff]  ;;  %v6728_v20 = vld [vmem:[#allocation2 + $0x30] sm:$0xff] }
 0x2b3   : > { %v6737_v40 = vadd.f32 %v7712_v25, %v6722_v12  ;;  %v6738_v10 = vadd.f32 %v7712_v25, %v6723_v35  ;;  %v6726_v42 = vld [vmem:[#allocation2 + $0x20] sm:$0xff]  ;;  %v6739_v52 = vadd.f32 %v7712_v25, %v6724_v32  ;;  %v6740_v63 = vadd.f32 %v7712_v25, %v6725_v27 }
 0x2b4   : > { %v6741_v30 = vadd.f32 %v7712_v25, %v6726_v42  ;;  %v6743_v17 = vadd.f32 %v7712_v25, %v6728_v20 }
 0x2b5   : > { %v6729_v34 = vld [vmem:[#allocation2 + $0x38] sm:$0xff]  ;;  %v6745_v44 = vmax.f32 %v6737_v40, 0.0  ;;  %v6746_v54 = vmax.f32 %v6738_v10, 0.0  ;;  %v6747_v3 = vmax.f32 %v6739_v52, 0.0  ;;  %v6748_v37 = vmax.f32 %v6740_v63, 0.0 }
 0x2b6   : > { %v6749_v56 = vmax.f32 %v6741_v30, 0.0  ;;  %v6744_v41 = vadd.f32 %v7712_v25, %v6729_v34  ;;  %v6751_v19 = vmax.f32 %v6743_v17, 0.0 }
 0x2b7   : > { %v6727_v29 = vld [vmem:[#allocation2 + $0x28] sm:$0xff]  ;;  %v7724_v57 = vpack.c.bf16 %v6745_v44, %v6745_v44  ;;  %v7725_v49 = vpack.c.bf16 %v6746_v54, %v6746_v54  ;;  %v7726_v6 = vpack.c.bf16 %v6747_v3, %v6747_v3  ;;  %v7727_v39 = vpack.c.bf16 %v6748_v37, %v6748_v37 }
 0x2b8   : > { %v6742_v31 = vadd.f32 %v7712_v25, %v6727_v29  ;;  %v7728_v60 = vpack.c.bf16 %v6749_v56, %v6749_v56  ;;  %v6752_v43 = vmax.f32 %v6744_v41, 0.0  ;;  %v7730_v24 = vpack.c.bf16 %v6751_v19, %v6751_v19 }
 0x2b9   : > { %6786 = vst.msk [vmem:[%s9152_s27] sm:$0xf] %vm6785_vm3, %v7724_v57  ;;  %6787 = vst.msk [vmem:[%s9152_s27 + $0x4] sm:$0xf] %vm6785_vm3, %v7725_v49 }
 0x2ba   : > { %v6750_v33 = vmax.f32 %v6742_v31, 0.0  ;;  %6788 = vst.msk [vmem:[%s9152_s27 + $0x8] sm:$0xf] %vm6785_vm3, %v7726_v6  ;;  %6789 = vst.msk [vmem:[%s9152_s27 + $0xc] sm:$0xf] %vm6785_vm3, %v7727_v39  ;;  %v7731_v9 = vpack.c.bf16 %v6752_v43, %v6752_v43 }
 0x2bb   : > { %6790 = vst.msk [vmem:[%s9152_s27 + $0x10] sm:$0xf] %vm6785_vm3, %v7728_v60  ;;  %6792 = vst.msk [vmem:[%s9152_s27 + $0x18] sm:$0xf] %vm6785_vm3, %v7730_v24 }
 0x2bc   : > { %v7729_v59 = vpack.c.bf16 %v6750_v33, %v6750_v33  ;;  %6793 = vst.msk [vmem:[%s9152_s27 + $0x1c] sm:$0xf] %vm6785_vm3, %v7731_v9 }
 0x2be   : > { %6791 = vst.msk [vmem:[%s9152_s27 + $0x14] sm:$0xf] %vm6785_vm3, %v7729_v59 }
 0x2bf PF: > { %s13_s20 = sadd.s32 1, %s8862_s20   ;;  %s9940_s12 = smov %s8834_s13 }
 0x2c0   : > { %p10_p1 = scmp.ge.s32.totalorder %s13_s20, 114   ;;  %s9941_s13 = smov %s8956_s8 }
 0x2c1   : > { %s9942_s14 = smov %s8850_s17  ;;  %s9943_s15 = smov %s8854_s18 }
 0x2c2   : > { %s9944_s16 = smov %s8858_s19  ;;  %s9945_s17 = smov %s9951_s21 }
 0x2c3   : > { %s9946_s18 = smov %s9953_s22  ;;  %s9947_s19 = smov %s9957_s23 }
 0x2c4   :  { %12 = sbr.rel (!%p10_p1) target bundleno = 5 (0x5), region = 180 }

</bundles_post_ra>
